<compile_context>
chip_gen: v6e
topology: v6e:2x2x1
jax: 0.10.0
libtpu: 0.0.40
codegen_flags: <defaults>
</compile_context>

<pallas_src>
from functools import partial

import numpy as np
import jax
import jax.numpy as jnp
from jax import lax
from jax.experimental import pallas as pl
from jax.experimental.pallas import tpu as pltpu

# Make plain-JAX reference matmuls and in-kernel dots both f32 accurate.
jax.config.update("jax_default_matmul_precision", "highest")

# ---- sizes (small synthetic SMPL; real model has V=6890) --------------------
B = 2          # batch
V = 256        # vertices
NB = 10        # num betas
NJ = 24        # joints (kinematic tree)
NP = 207       # pose-blend basis = 23 * 9
NC = 19        # cocoplus regressed joints

# SMPL kinematic tree (kintree_table[0]); entry 0 is the root (unused).
PARENTS = np.array([0, 0, 0, 0, 1, 2, 3, 4, 5, 6, 7, 8, 9, 9, 9,
                    12, 13, 14, 16, 17, 18, 19, 20, 21], dtype=np.int32)


def _pick_v_tile(v):
    """Largest lane-aligned tile that still gives >=2 grid steps (pipelining)."""
    for tv in (1024, 512, 256, 128):
        if v % tv == 0 and v // tv >= 2:
            return tv
    # TODO(synk): for real SMPL (V=6890, not a multiple of 128) pad V up to a
    # multiple of the tile so the grid stays lane-aligned.
    return v


TV = _pick_v_tile(V)          # vertex tile (lane axis)
NVT = V // TV                 # number of vertex tiles

# dot_general dims: contract the (lane) last axis of both operands (NT form).
NT_DIMS = (((1,), (1,)), ((), ()))


# =============================================================================
# Pallas kernels (the matmul hot paths)
# =============================================================================
def _blend_kernel(beta_ref, pf_ref, sd_ref, pd_ref, vt_ref, jrt_ref,
                  vposed_ref, j_ref):
    """Shape blend + pose blend + joint regression for one V tile.

    beta (B, NB); pf (B, NP); sd (3, NB, TV); pd (3, NP, TV); vt (3, TV);
    jrt (NJ, TV)  ->  vposed block (B, 3, TV), j partial block (1, 3, B, NJ)
    """
    beta = beta_ref[...]
    pf = pf_ref[...]
    jrt = jrt_ref[...]
    for c in range(3):                                    # unrolled over x/y/z
        vs_c = jnp.dot(beta, sd_ref[c],
                       preferred_element_type=jnp.float32) + vt_ref[c:c + 1, :]
        vp_c = vs_c + jnp.dot(pf, pd_ref[c],
                              preferred_element_type=jnp.float32)
        vposed_ref[:, c, :] = vp_c                        # (B, TV) lane-dense
        # partial J for this V tile (lane-axis contraction, NT matmul)
        j_ref[0, c] = lax.dot_general(vs_c, jrt, NT_DIMS,
                                      preferred_element_type=jnp.float32)


def _skin_kernel(a2_ref, w_t_ref, jregt_ref, vp_ref, verts_ref, joints_ref):
    """Linear blend skinning + cocoplus joint regression (all batches at once).

    a2 (B*16, NJ); w_t (NJ, V); jregt (NC, V); vp (B, 3, V)
    -> verts (B, 3, V), joints (B, 3, NC)
    """
    # Batch folded into the matmul M dimension: one (B*16, NJ) x (NJ, V) dot.
    tt = jnp.dot(a2_ref[...], w_t_ref[...],
                 preferred_element_type=jnp.float32)      # (B*16, V)
    jregt = jregt_ref[...]                                # (NC, V)
    nb = vp_ref.shape[0]
    for b in range(nb):
        vp = vp_ref[b]                                    # (3, V)
        rows = []
        for c in range(3):
            base = 16 * b + 4 * c
            # translation folded in directly (no ones-row concatenate)
            acc = tt[base + 3:base + 4, :]
            for k in range(3):
                acc = acc + tt[base + k:base + k + 1, :] * vp[k:k + 1, :]
            rows.append(acc)
        verts_b = jnp.concatenate(rows, axis=0)           # (3, V)
        verts_ref[b] = verts_b
        joints_ref[b] = lax.dot_general(verts_b, jregt, NT_DIMS,
                                        preferred_element_type=jnp.float32)


def blend_call(beta, pose_feature, sd3, pd3, vt3, jr_t):
    cost = pl.CostEstimate(
        flops=2 * B * 3 * V * (NB + NP + NJ),
        transcendentals=0,
        bytes_accessed=4 * (B * NB + B * NP + 3 * NB * V + 3 * NP * V
                            + 3 * V + NJ * V + B * 3 * V + NVT * 3 * B * NJ))
    return pl.pallas_call(
        _blend_kernel,
        grid=(NVT,),
        in_specs=[
            pl.BlockSpec((B, NB), lambda i: (0, 0)),
            pl.BlockSpec((B, NP), lambda i: (0, 0)),
            pl.BlockSpec((3, NB, TV), lambda i: (0, 0, i)),
            pl.BlockSpec((3, NP, TV), lambda i: (0, 0, i)),
            pl.BlockSpec((3, TV), lambda i: (0, i)),
            pl.BlockSpec((NJ, TV), lambda i: (0, i)),
        ],
        out_specs=(
            pl.BlockSpec((B, 3, TV), lambda i: (0, 0, i)),
            pl.BlockSpec((1, 3, B, NJ), lambda i: (i, 0, 0, 0)),
        ),
        out_shape=(jax.ShapeDtypeStruct((B, 3, V), jnp.float32),
                   jax.ShapeDtypeStruct((NVT, 3, B, NJ), jnp.float32)),
        compiler_params=pltpu.CompilerParams(
            dimension_semantics=("parallel",)),
        cost_estimate=cost,
    )(beta, pose_feature, sd3, pd3, vt3, jr_t)


def skin_call(a2, w_t, jreg_t, v_posed):
    vspec = pl.BlockSpec(memory_space=pltpu.MemorySpace.VMEM)
    cost = pl.CostEstimate(
        flops=2 * B * 16 * NJ * V + 6 * B * 3 * V + 2 * B * 3 * V * NC,
        transcendentals=0,
        bytes_accessed=4 * (B * 16 * NJ + NJ * V + NC * V
                            + 2 * B * 3 * V + B * 3 * NC))
    return pl.pallas_call(
        _skin_kernel,
        in_specs=[vspec] * 4,
        out_specs=(vspec, vspec),
        out_shape=(jax.ShapeDtypeStruct((B, 3, V), jnp.float32),
                   jax.ShapeDtypeStruct((B, 3, NC), jnp.float32)),
        cost_estimate=cost,
    )(a2, w_t, jreg_t, v_posed)


# =============================================================================
# Glue (small per-joint math, kept in plain JAX inside one jit region)
# =============================================================================
def quat2mat(quat):
    norm_quat = quat / jnp.sqrt(jnp.sum(quat * quat, axis=1, keepdims=True))
    w, x, y, z = (norm_quat[:, 0], norm_quat[:, 1],
                  norm_quat[:, 2], norm_quat[:, 3])
    n = quat.shape[0]
    w2, x2, y2, z2 = w * w, x * x, y * y, z * z
    wx, wy, wz = w * x, w * y, w * z
    xy, xz, yz = x * y, x * z, y * z
    rot = jnp.stack([
        w2 + x2 - y2 - z2, 2 * xy - 2 * wz, 2 * wy + 2 * xz,
        2 * wz + 2 * xy, w2 - x2 + y2 - z2, 2 * yz - 2 * wx,
        2 * xz - 2 * wy, 2 * wx + 2 * yz, w2 - x2 - y2 + z2], axis=1)
    return rot.reshape(n, 3, 3)


def batch_rodrigues(theta):
    l1norm = jnp.sqrt(jnp.sum((theta + 1e-8) ** 2, axis=1))
    angle = l1norm[:, None]
    normalized = theta / angle
    half = angle * 0.5
    quat = jnp.concatenate([jnp.cos(half), jnp.sin(half) * normalized], axis=1)
    return quat2mat(quat)


def batch_global_rigid_transformation(Rs, Js, parents):
    n = Rs.shape[0]
    Js = Js[..., None]                                    # (B, NJ, 3, 1)

    def make_A(R, t):
        R_homo = jnp.concatenate([R, jnp.zeros((n, 1, 3), jnp.float32)], axis=1)
        t_homo = jnp.concatenate([t, jnp.ones((n, 1, 1), jnp.float32)], axis=1)
        return jnp.concatenate([R_homo, t_homo], axis=2)  # (B, 4, 4)

    results = [make_A(Rs[:, 0], Js[:, 0])]
    for i in range(1, parents.shape[0]):
        p = int(parents[i])
        j_here = Js[:, i] - Js[:, p]
        A_here = make_A(Rs[:, i], j_here)
        results.append(jnp.matmul(results[p], A_here))
    results = jnp.stack(results, axis=1)                  # (B, NJ, 4, 4)
    new_J = results[:, :, :3, 3]
    Js_w0 = jnp.concatenate([Js, jnp.zeros((n, NJ, 1, 1), jnp.float32)], axis=2)
    init_bone = jnp.matmul(results, Js_w0)                # (B, NJ, 4, 1)
    init_bone = jnp.pad(init_bone, ((0, 0), (0, 0), (0, 0), (3, 0)))
    return new_J, results - init_bone


# =============================================================================
# SMPL parameters + forward
# =============================================================================
def make_smpl_params(key):
    ks = jax.random.split(key, 6)
    v_template = jax.random.normal(ks[0], (V, 3), jnp.float32) * 0.5
    shapedirs = jax.random.normal(ks[1], (V, 3, NB), jnp.float32) * 0.03
    posedirs = jax.random.normal(ks[2], (V, 3, NP), jnp.float32) * 0.01
    j_regressor = jnp.abs(jax.random.normal(ks[3], (V, NJ), jnp.float32))
    j_regressor = j_regressor / jnp.sum(j_regressor, axis=0, keepdims=True)
    joint_regressor = jnp.abs(jax.random.normal(ks[4], (V, NC), jnp.float32))
    joint_regressor = joint_regressor / jnp.sum(joint_regressor, axis=0,
                                                keepdims=True)
    weights = jnp.abs(jax.random.normal(ks[5], (V, NJ), jnp.float32))
    weights = weights / jnp.sum(weights, axis=1, keepdims=True)
    return dict(v_template=v_template, shapedirs=shapedirs, posedirs=posedirs,
                j_regressor=j_regressor, joint_regressor=joint_regressor,
                weights=weights)


def prepare_smpl_params(params):
    """One-time re-layout to kernel-friendly buffers (done at load time)."""
    return dict(
        sd3=jnp.transpose(params['shapedirs'], (1, 2, 0)),   # (3, NB, V)
        pd3=jnp.transpose(params['posedirs'], (1, 2, 0)),    # (3, NP, V)
        vt3=params['v_template'].T,                          # (3, V)
        w_t=params['weights'].T,                             # (NJ, V)
        jr_t=params['j_regressor'].T,                        # (NJ, V)
        jreg_t=params['joint_regressor'].T,                  # (NC, V)
    )


@partial(jax.jit, static_argnames=("get_skin",))
def smpl_forward(prep, beta, theta, get_skin=False):
    rs = batch_rodrigues(theta.reshape(-1, 3)).reshape(-1, NJ, 3, 3)
    pose_feature = (rs[:, 1:, :, :]
                    - jnp.eye(3, dtype=jnp.float32)).reshape(-1, NP)

    # blend kernel: v_posed (B, 3, V) + per-tile partial J (NVT, 3, B, NJ)
    v_posed, j_partial = blend_call(beta, pose_feature, prep['sd3'],
                                    prep['pd3'], prep['vt3'], prep['jr_t'])
    J = jnp.transpose(jnp.sum(j_partial, axis=0), (1, 2, 0))   # (B, NJ, 3)

    # forward kinematics (24 sequential 4x4 matmuls) — tiny plain-JAX glue.
    # TODO(synk): fold FK + Rodrigues into the skin Pallas kernel to remove the
    # remaining small intermediate HBM hops.
    _, A = batch_global_rigid_transformation(rs, J, PARENTS)
    a2 = jnp.transpose(A.reshape(-1, NJ, 16), (0, 2, 1)).reshape(-1, NJ)

    verts3, joints3 = skin_call(a2, prep['w_t'], prep['jreg_t'], v_posed)
    joints = jnp.transpose(joints3, (0, 2, 1))                  # (B, NC, 3)
    if get_skin:
        verts = jnp.transpose(verts3, (0, 2, 1))                # (B, V, 3)
        return verts, joints, rs
    return joints


def smpl_forward_ref(params, beta, theta):
    """Pure-JAX mirror of the PyTorch forward, used as a correctness check."""
    sd = params['shapedirs'].reshape(V * 3, NB).T
    pd = params['posedirs'].reshape(V * 3, NP).T
    v_shaped = jnp.matmul(beta, sd).reshape(-1, V, 3) + params['v_template']
    jx = jnp.matmul(v_shaped[:, :, 0], params['j_regressor'])
    jy = jnp.matmul(v_shaped[:, :, 1], params['j_regressor'])
    jz = jnp.matmul(v_shaped[:, :, 2], params['j_regressor'])
    J = jnp.stack([jx, jy, jz], axis=2)
    rs = batch_rodrigues(theta.reshape(-1, 3)).reshape(-1, NJ, 3, 3)
    pose_feature = (rs[:, 1:, :, :]
                    - jnp.eye(3, dtype=jnp.float32)).reshape(-1, NP)
    v_posed = jnp.matmul(pose_feature, pd).reshape(-1, V, 3) + v_shaped
    _, A = batch_global_rigid_transformation(rs, J, PARENTS)
    n = beta.shape[0]
    W = jnp.broadcast_to(params['weights'][None], (n, V, NJ))
    T = jnp.matmul(W, A.reshape(n, NJ, 16)).reshape(n, V, 4, 4)
    vph = jnp.concatenate([v_posed, jnp.ones((n, V, 1), jnp.float32)], axis=2)
    v_homo = jnp.matmul(T, vph[..., None])
    verts = v_homo[:, :, :3, 0]
    jx = jnp.matmul(verts[:, :, 0], params['joint_regressor'])
    jy = jnp.matmul(verts[:, :, 1], params['joint_regressor'])
    jz = jnp.matmul(verts[:, :, 2], params['joint_regressor'])
    return jnp.stack([jx, jy, jz], axis=2)


if __name__ == "__main__":
    key = jax.random.PRNGKey(0)
    kp, kb, kt = jax.random.split(key, 3)
    params = make_smpl_params(kp)
    prep = prepare_smpl_params(params)          # layout work done once
    beta = jax.random.normal(kb, (B, NB), jnp.float32)
    theta = jax.random.normal(kt, (B, NJ * 3), jnp.float32) * 0.3

    joints = smpl_forward(prep, beta, theta)    # (B, 19, 3)
    joints = jax.block_until_ready(joints)

    ref = smpl_forward_ref(params, beta, theta)
    assert joints.shape == (B, NC, 3)
    assert np.allclose(np.asarray(joints), np.asarray(ref),
                       atol=1e-2, rtol=1e-2)
    print("KERNEL_OK")
</pallas_src>

<mosaic_0001>
module attributes {stable_mosaic.version = 11 : i64} {
  func.func @_blend_kernel(%arg0: i32, %arg1: memref<2x10xf32, #tpu.memory_space<vmem>>, %arg2: memref<2x207xf32, #tpu.memory_space<vmem>>, %arg3: memref<3x10x128xf32, #tpu.memory_space<vmem>>, %arg4: memref<3x207x128xf32, #tpu.memory_space<vmem>>, %arg5: memref<3x128xf32, #tpu.memory_space<vmem>>, %arg6: memref<24x128xf32, #tpu.memory_space<vmem>>, %arg7: memref<2x3x128xf32, #tpu.memory_space<vmem>>, %arg8: memref<1x3x2x24xf32, #tpu.memory_space<vmem>>) attributes {dimension_semantics = [#tpu.dimension_semantics<parallel>], iteration_bounds = array<i64: 2>, scalar_prefetch = 0 : i64, scratch_operands = 0 : i64, tpu.core_type = #tpu.core_type<tc>, window_params = [{pipeline_mode = #tpu.pipeline_mode<synchronous>, transform_indices = @transform_0, window_bounds = array<i64: 2, 10>}, {pipeline_mode = #tpu.pipeline_mode<synchronous>, transform_indices = @transform_1, window_bounds = array<i64: 2, 207>}, {transform_indices = @transform_2, window_bounds = array<i64: 3, 10, 128>}, {transform_indices = @transform_3, window_bounds = array<i64: 3, 207, 128>}, {transform_indices = @transform_4, window_bounds = array<i64: 3, 128>}, {transform_indices = @transform_5, window_bounds = array<i64: 24, 128>}, {transform_indices = @transform_6, window_bounds = array<i64: 2, 3, 128>}, {transform_indices = @transform_7, window_bounds = array<i64: 1, 3, 2, 24>}]} {
    %c0 = arith.constant 0 : index
    %c0_0 = arith.constant 0 : index
    %0 = vector.load %arg1[%c0, %c0_0] : memref<2x10xf32, #tpu.memory_space<vmem>>, vector<2x10xf32>
    %c0_1 = arith.constant 0 : index
    %c0_2 = arith.constant 0 : index
    %1 = vector.load %arg2[%c0_1, %c0_2] : memref<2x207xf32, #tpu.memory_space<vmem>>, vector<2x207xf32>
    %c0_3 = arith.constant 0 : index
    %c0_4 = arith.constant 0 : index
    %2 = vector.load %arg6[%c0_3, %c0_4] : memref<24x128xf32, #tpu.memory_space<vmem>>, vector<24x128xf32>
    %c0_5 = arith.constant 0 : index
    %c0_6 = arith.constant 0 : index
    %c0_7 = arith.constant 0 : index
    %3 = vector.load %arg3[%c0_5, %c0_6, %c0_7] : memref<3x10x128xf32, #tpu.memory_space<vmem>>, vector<1x10x128xf32>
    %4 = vector.shape_cast %3 : vector<1x10x128xf32> to vector<10x128xf32>
    %cst = arith.constant dense<0.000000e+00> : vector<2x128xf32>
    %5 = tpu.matmul %0, %4, %cst {dimension_numbers = #tpu.dot_dimension_numbers<[1], [0], [0], [1], [0, 0, 1, 1], [], []>, precision = #tpu.contract_precision<fp32>} : vector<2x10xf32>, vector<10x128xf32>, vector<2x128xf32> -> vector<2x128xf32>
    %c0_8 = arith.constant 0 : index
    %c0_9 = arith.constant 0 : index
    %6 = vector.load %arg5[%c0_8, %c0_9] : memref<3x128xf32, #tpu.memory_space<vmem>>, vector<1x128xf32>
    %7 = vector.broadcast %6 : vector<1x128xf32> to vector<2x128xf32>
    %8 = arith.addf %5, %7 : vector<2x128xf32>
    %c0_10 = arith.constant 0 : index
    %c0_11 = arith.constant 0 : index
    %c0_12 = arith.constant 0 : index
    %9 = vector.load %arg4[%c0_10, %c0_11, %c0_12] : memref<3x207x128xf32, #tpu.memory_space<vmem>>, vector<1x207x128xf32>
    %10 = vector.shape_cast %9 : vector<1x207x128xf32> to vector<207x128xf32>
    %cst_13 = arith.constant dense<0.000000e+00> : vector<2x128xf32>
    %11 = tpu.matmul %1, %10, %cst_13 {dimension_numbers = #tpu.dot_dimension_numbers<[1], [0], [0], [1], [0, 0, 1, 1], [], []>, precision = #tpu.contract_precision<fp32>} : vector<2x207xf32>, vector<207x128xf32>, vector<2x128xf32> -> vector<2x128xf32>
    %12 = arith.addf %8, %11 : vector<2x128xf32>
    %c0_14 = arith.constant 0 : index
    %c0_15 = arith.constant 0 : index
    %c0_16 = arith.constant 0 : index
    %13 = vector.load %arg7[%c0_14, %c0_15, %c0_16] : memref<2x3x128xf32, #tpu.memory_space<vmem>>, vector<2x1x128xf32>
    %14 = vector.shape_cast %13 : vector<2x1x128xf32> to vector<2x128xf32>
    %15 = vector.shape_cast %12 : vector<2x128xf32> to vector<2x1x128xf32>
    tpu.vector_store %arg7[%c0_14, %c0_15, %c0_16], %15 {strides = array<i32>} : memref<2x3x128xf32, #tpu.memory_space<vmem>>, vector<2x1x128xf32>,
    %cst_17 = arith.constant dense<0.000000e+00> : vector<2x24xf32>
    %16 = tpu.matmul %8, %2, %cst_17 {dimension_numbers = #tpu.dot_dimension_numbers<[1], [1], [0], [0], [0, 0, 1, 0], [], []>, precision = #tpu.contract_precision<fp32>} : vector<2x128xf32>, vector<24x128xf32>, vector<2x24xf32> -> vector<2x24xf32>
    %c0_18 = arith.constant 0 : index
    %c0_19 = arith.constant 0 : index
    %c0_20 = arith.constant 0 : index
    %c0_21 = arith.constant 0 : index
    %17 = vector.load %arg8[%c0_18, %c0_19, %c0_20, %c0_21] : memref<1x3x2x24xf32, #tpu.memory_space<vmem>>, vector<1x1x2x24xf32>
    %18 = vector.shape_cast %17 : vector<1x1x2x24xf32> to vector<2x24xf32>
    %19 = vector.shape_cast %16 : vector<2x24xf32> to vector<1x1x2x24xf32>
    tpu.vector_store %arg8[%c0_18, %c0_19, %c0_20, %c0_21], %19 {strides = array<i32>} : memref<1x3x2x24xf32, #tpu.memory_space<vmem>>, vector<1x1x2x24xf32>,
    %c1 = arith.constant 1 : index
    %c0_22 = arith.constant 0 : index
    %c0_23 = arith.constant 0 : index
    %20 = vector.load %arg3[%c1, %c0_22, %c0_23] : memref<3x10x128xf32, #tpu.memory_space<vmem>>, vector<1x10x128xf32>
    %21 = vector.shape_cast %20 : vector<1x10x128xf32> to vector<10x128xf32>
    %cst_24 = arith.constant dense<0.000000e+00> : vector<2x128xf32>
    %22 = tpu.matmul %0, %21, %cst_24 {dimension_numbers = #tpu.dot_dimension_numbers<[1], [0], [0], [1], [0, 0, 1, 1], [], []>, precision = #tpu.contract_precision<fp32>} : vector<2x10xf32>, vector<10x128xf32>, vector<2x128xf32> -> vector<2x128xf32>
    %c1_25 = arith.constant 1 : index
    %c0_26 = arith.constant 0 : index
    %23 = vector.load %arg5[%c1_25, %c0_26] : memref<3x128xf32, #tpu.memory_space<vmem>>, vector<1x128xf32>
    %24 = vector.broadcast %23 : vector<1x128xf32> to vector<2x128xf32>
    %25 = arith.addf %22, %24 : vector<2x128xf32>
    %c1_27 = arith.constant 1 : index
    %c0_28 = arith.constant 0 : index
    %c0_29 = arith.constant 0 : index
    %26 = vector.load %arg4[%c1_27, %c0_28, %c0_29] : memref<3x207x128xf32, #tpu.memory_space<vmem>>, vector<1x207x128xf32>
    %27 = vector.shape_cast %26 : vector<1x207x128xf32> to vector<207x128xf32>
    %cst_30 = arith.constant dense<0.000000e+00> : vector<2x128xf32>
    %28 = tpu.matmul %1, %27, %cst_30 {dimension_numbers = #tpu.dot_dimension_numbers<[1], [0], [0], [1], [0, 0, 1, 1], [], []>, precision = #tpu.contract_precision<fp32>} : vector<2x207xf32>, vector<207x128xf32>, vector<2x128xf32> -> vector<2x128xf32>
    %29 = arith.addf %25, %28 : vector<2x128xf32>
    %c0_31 = arith.constant 0 : index
    %c1_32 = arith.constant 1 : index
    %c0_33 = arith.constant 0 : index
    %30 = vector.load %arg7[%c0_31, %c1_32, %c0_33] : memref<2x3x128xf32, #tpu.memory_space<vmem>>, vector<2x1x128xf32>
    %31 = vector.shape_cast %30 : vector<2x1x128xf32> to vector<2x128xf32>
    %32 = vector.shape_cast %29 : vector<2x128xf32> to vector<2x1x128xf32>
    tpu.vector_store %arg7[%c0_31, %c1_32, %c0_33], %32 {strides = array<i32>} : memref<2x3x128xf32, #tpu.memory_space<vmem>>, vector<2x1x128xf32>,
    %cst_34 = arith.constant dense<0.000000e+00> : vector<2x24xf32>
    %33 = tpu.matmul %25, %2, %cst_34 {dimension_numbers = #tpu.dot_dimension_numbers<[1], [1], [0], [0], [0, 0, 1, 0], [], []>, precision = #tpu.contract_precision<fp32>} : vector<2x128xf32>, vector<24x128xf32>, vector<2x24xf32> -> vector<2x24xf32>
    %c0_35 = arith.constant 0 : index
    %c1_36 = arith.constant 1 : index
    %c0_37 = arith.constant 0 : index
    %c0_38 = arith.constant 0 : index
    %34 = vector.load %arg8[%c0_35, %c1_36, %c0_37, %c0_38] : memref<1x3x2x24xf32, #tpu.memory_space<vmem>>, vector<1x1x2x24xf32>
    %35 = vector.shape_cast %34 : vector<1x1x2x24xf32> to vector<2x24xf32>
    %36 = vector.shape_cast %33 : vector<2x24xf32> to vector<1x1x2x24xf32>
    tpu.vector_store %arg8[%c0_35, %c1_36, %c0_37, %c0_38], %36 {strides = array<i32>} : memref<1x3x2x24xf32, #tpu.memory_space<vmem>>, vector<1x1x2x24xf32>,
    %c2 = arith.constant 2 : index
    %c0_39 = arith.constant 0 : index
    %c0_40 = arith.constant 0 : index
    %37 = vector.load %arg3[%c2, %c0_39, %c0_40] : memref<3x10x128xf32, #tpu.memory_space<vmem>>, vector<1x10x128xf32>
    %38 = vector.shape_cast %37 : vector<1x10x128xf32> to vector<10x128xf32>
    %cst_41 = arith.constant dense<0.000000e+00> : vector<2x128xf32>
    %39 = tpu.matmul %0, %38, %cst_41 {dimension_numbers = #tpu.dot_dimension_numbers<[1], [0], [0], [1], [0, 0, 1, 1], [], []>, precision = #tpu.contract_precision<fp32>} : vector<2x10xf32>, vector<10x128xf32>, vector<2x128xf32> -> vector<2x128xf32>
    %c2_42 = arith.constant 2 : index
    %c0_43 = arith.constant 0 : index
    %40 = vector.load %arg5[%c2_42, %c0_43] : memref<3x128xf32, #tpu.memory_space<vmem>>, vector<1x128xf32>
    %41 = vector.broadcast %40 : vector<1x128xf32> to vector<2x128xf32>
    %42 = arith.addf %39, %41 : vector<2x128xf32>
    %c2_44 = arith.constant 2 : index
    %c0_45 = arith.constant 0 : index
    %c0_46 = arith.constant 0 : index
    %43 = vector.load %arg4[%c2_44, %c0_45, %c0_46] : memref<3x207x128xf32, #tpu.memory_space<vmem>>, vector<1x207x128xf32>
    %44 = vector.shape_cast %43 : vector<1x207x128xf32> to vector<207x128xf32>
    %cst_47 = arith.constant dense<0.000000e+00> : vector<2x128xf32>
    %45 = tpu.matmul %1, %44, %cst_47 {dimension_numbers = #tpu.dot_dimension_numbers<[1], [0], [0], [1], [0, 0, 1, 1], [], []>, precision = #tpu.contract_precision<fp32>} : vector<2x207xf32>, vector<207x128xf32>, vector<2x128xf32> -> vector<2x128xf32>
    %46 = arith.addf %42, %45 : vector<2x128xf32>
    %c0_48 = arith.constant 0 : index
    %c2_49 = arith.constant 2 : index
    %c0_50 = arith.constant 0 : index
    %47 = vector.load %arg7[%c0_48, %c2_49, %c0_50] : memref<2x3x128xf32, #tpu.memory_space<vmem>>, vector<2x1x128xf32>
    %48 = vector.shape_cast %47 : vector<2x1x128xf32> to vector<2x128xf32>
    %49 = vector.shape_cast %46 : vector<2x128xf32> to vector<2x1x128xf32>
    tpu.vector_store %arg7[%c0_48, %c2_49, %c0_50], %49 {strides = array<i32>} : memref<2x3x128xf32, #tpu.memory_space<vmem>>, vector<2x1x128xf32>,
    %cst_51 = arith.constant dense<0.000000e+00> : vector<2x24xf32>
    %50 = tpu.matmul %42, %2, %cst_51 {dimension_numbers = #tpu.dot_dimension_numbers<[1], [1], [0], [0], [0, 0, 1, 0], [], []>, precision = #tpu.contract_precision<fp32>} : vector<2x128xf32>, vector<24x128xf32>, vector<2x24xf32> -> vector<2x24xf32>
    %c0_52 = arith.constant 0 : index
    %c2_53 = arith.constant 2 : index
    %c0_54 = arith.constant 0 : index
    %c0_55 = arith.constant 0 : index
    %51 = vector.load %arg8[%c0_52, %c2_53, %c0_54, %c0_55] : memref<1x3x2x24xf32, #tpu.memory_space<vmem>>, vector<1x1x2x24xf32>
    %52 = vector.shape_cast %51 : vector<1x1x2x24xf32> to vector<2x24xf32>
    %53 = vector.shape_cast %50 : vector<2x24xf32> to vector<1x1x2x24xf32>
    tpu.vector_store %arg8[%c0_52, %c2_53, %c0_54, %c0_55], %53 {strides = array<i32>} : memref<1x3x2x24xf32, #tpu.memory_space<vmem>>, vector<1x1x2x24xf32>,
    return
  }
  func.func @transform_0(%arg0: i32) -> (i32, i32) {
    %c0_i32 = arith.constant 0 : i32
    %c0_i32_0 = arith.constant 0 : i32
    %c0_i32_1 = arith.constant 0 : i32
    return %c0_i32, %c0_i32_0 : i32, i32
  }
  func.func @transform_1(%arg0: i32) -> (i32, i32) {
    %c0_i32 = arith.constant 0 : i32
    %c0_i32_0 = arith.constant 0 : i32
    %c0_i32_1 = arith.constant 0 : i32
    return %c0_i32, %c0_i32_0 : i32, i32
  }
  func.func @transform_2(%arg0: i32) -> (i32, i32, i32) {
    %c0_i32 = arith.constant 0 : i32
    %c0_i32_0 = arith.constant 0 : i32
    %c0_i32_1 = arith.constant 0 : i32
    return %c0_i32, %c0_i32_0, %arg0 : i32, i32, i32
  }
  func.func @transform_3(%arg0: i32) -> (i32, i32, i32) {
    %c0_i32 = arith.constant 0 : i32
    %c0_i32_0 = arith.constant 0 : i32
    %c0_i32_1 = arith.constant 0 : i32
    return %c0_i32, %c0_i32_0, %arg0 : i32, i32, i32
  }
  func.func @transform_4(%arg0: i32) -> (i32, i32) {
    %c0_i32 = arith.constant 0 : i32
    %c0_i32_0 = arith.constant 0 : i32
    return %c0_i32, %arg0 : i32, i32
  }
  func.func @transform_5(%arg0: i32) -> (i32, i32) {
    %c0_i32 = arith.constant 0 : i32
    %c0_i32_0 = arith.constant 0 : i32
    return %c0_i32, %arg0 : i32, i32
  }
  func.func @transform_6(%arg0: i32) -> (i32, i32, i32) {
    %c0_i32 = arith.constant 0 : i32
    %c0_i32_0 = arith.constant 0 : i32
    %c0_i32_1 = arith.constant 0 : i32
    return %c0_i32, %c0_i32_0, %arg0 : i32, i32, i32
  }
  func.func @transform_7(%arg0: i32) -> (i32, i32, i32, i32) {
    %c0_i32 = arith.constant 0 : i32
    %c0_i32_0 = arith.constant 0 : i32
    %c0_i32_1 = arith.constant 0 : i32
    %c0_i32_2 = arith.constant 0 : i32
    return %arg0, %c0_i32, %c0_i32_0, %c0_i32_1 : i32, i32, i32, i32
  }
}

module attributes {stable_mosaic.version = 11 : i64} {
  func.func @_skin_kernel(%arg0: memref<32x24xf32, #tpu.memory_space<vmem>>, %arg1: memref<24x256xf32, #tpu.memory_space<vmem>>, %arg2: memref<19x256xf32, #tpu.memory_space<vmem>>, %arg3: memref<2x3x256xf32, #tpu.memory_space<vmem>>, %arg4: memref<2x3x256xf32, #tpu.memory_space<vmem>>, %arg5: memref<2x3x19xf32, #tpu.memory_space<vmem>>) attributes {dimension_semantics = [], scalar_prefetch = 0 : i64, scratch_operands = 0 : i64, tpu.core_type = #tpu.core_type<tc>} {
    %c0 = arith.constant 0 : index
    %c0_0 = arith.constant 0 : index
    %0 = vector.load %arg0[%c0, %c0_0] : memref<32x24xf32, #tpu.memory_space<vmem>>, vector<32x24xf32>
    %c0_1 = arith.constant 0 : index
    %c0_2 = arith.constant 0 : index
    %1 = vector.load %arg1[%c0_1, %c0_2] : memref<24x256xf32, #tpu.memory_space<vmem>>, vector<24x256xf32>
    %cst = arith.constant dense<0.000000e+00> : vector<32x256xf32>
    %2 = tpu.matmul %0, %1, %cst {dimension_numbers = #tpu.dot_dimension_numbers<[1], [0], [0], [1], [0, 0, 1, 1], [], []>, precision = #tpu.contract_precision<fp32>} : vector<32x24xf32>, vector<24x256xf32>, vector<32x256xf32> -> vector<32x256xf32>
    %c0_3 = arith.constant 0 : index
    %c0_4 = arith.constant 0 : index
    %3 = vector.load %arg2[%c0_3, %c0_4] : memref<19x256xf32, #tpu.memory_space<vmem>>, vector<19x256xf32>
    %c0_5 = arith.constant 0 : index
    %c0_6 = arith.constant 0 : index
    %c0_7 = arith.constant 0 : index
    %4 = vector.load %arg3[%c0_5, %c0_6, %c0_7] : memref<2x3x256xf32, #tpu.memory_space<vmem>>, vector<1x3x256xf32>
    %5 = vector.shape_cast %4 : vector<1x3x256xf32> to vector<3x256xf32>
    %6 = vector.extract_strided_slice %2 {offsets = [3, 0], sizes = [1, 256], strides = [1, 1]} : vector<32x256xf32> to vector<1x256xf32>
    %7 = vector.extract_strided_slice %2 {offsets = [0, 0], sizes = [1, 256], strides = [1, 1]} : vector<32x256xf32> to vector<1x256xf32>
    %8 = vector.extract_strided_slice %5 {offsets = [0, 0], sizes = [1, 256], strides = [1, 1]} : vector<3x256xf32> to vector<1x256xf32>
    %9 = arith.mulf %7, %8 : vector<1x256xf32>
    %10 = arith.addf %6, %9 : vector<1x256xf32>
    %11 = vector.extract_strided_slice %2 {offsets = [1, 0], sizes = [1, 256], strides = [1, 1]} : vector<32x256xf32> to vector<1x256xf32>
    %12 = vector.extract_strided_slice %5 {offsets = [1, 0], sizes = [1, 256], strides = [1, 1]} : vector<3x256xf32> to vector<1x256xf32>
    %13 = arith.mulf %11, %12 : vector<1x256xf32>
    %14 = arith.addf %10, %13 : vector<1x256xf32>
    %15 = vector.extract_strided_slice %2 {offsets = [2, 0], sizes = [1, 256], strides = [1, 1]} : vector<32x256xf32> to vector<1x256xf32>
    %16 = vector.extract_strided_slice %5 {offsets = [2, 0], sizes = [1, 256], strides = [1, 1]} : vector<3x256xf32> to vector<1x256xf32>
    %17 = arith.mulf %15, %16 : vector<1x256xf32>
    %18 = arith.addf %14, %17 : vector<1x256xf32>
    %19 = vector.extract_strided_slice %2 {offsets = [7, 0], sizes = [1, 256], strides = [1, 1]} : vector<32x256xf32> to vector<1x256xf32>
    %20 = vector.extract_strided_slice %2 {offsets = [4, 0], sizes = [1, 256], strides = [1, 1]} : vector<32x256xf32> to vector<1x256xf32>
    %21 = vector.extract_strided_slice %5 {offsets = [0, 0], sizes = [1, 256], strides = [1, 1]} : vector<3x256xf32> to vector<1x256xf32>
    %22 = arith.mulf %20, %21 : vector<1x256xf32>
    %23 = arith.addf %19, %22 : vector<1x256xf32>
    %24 = vector.extract_strided_slice %2 {offsets = [5, 0], sizes = [1, 256], strides = [1, 1]} : vector<32x256xf32> to vector<1x256xf32>
    %25 = vector.extract_strided_slice %5 {offsets = [1, 0], sizes = [1, 256], strides = [1, 1]} : vector<3x256xf32> to vector<1x256xf32>
    %26 = arith.mulf %24, %25 : vector<1x256xf32>
    %27 = arith.addf %23, %26 : vector<1x256xf32>
    %28 = vector.extract_strided_slice %2 {offsets = [6, 0], sizes = [1, 256], strides = [1, 1]} : vector<32x256xf32> to vector<1x256xf32>
    %29 = vector.extract_strided_slice %5 {offsets = [2, 0], sizes = [1, 256], strides = [1, 1]} : vector<3x256xf32> to vector<1x256xf32>
    %30 = arith.mulf %28, %29 : vector<1x256xf32>
    %31 = arith.addf %27, %30 : vector<1x256xf32>
    %32 = vector.extract_strided_slice %2 {offsets = [11, 0], sizes = [1, 256], strides = [1, 1]} : vector<32x256xf32> to vector<1x256xf32>
    %33 = vector.extract_strided_slice %2 {offsets = [8, 0], sizes = [1, 256], strides = [1, 1]} : vector<32x256xf32> to vector<1x256xf32>
    %34 = vector.extract_strided_slice %5 {offsets = [0, 0], sizes = [1, 256], strides = [1, 1]} : vector<3x256xf32> to vector<1x256xf32>
    %35 = arith.mulf %33, %34 : vector<1x256xf32>
    %36 = arith.addf %32, %35 : vector<1x256xf32>
    %37 = vector.extract_strided_slice %2 {offsets = [9, 0], sizes = [1, 256], strides = [1, 1]} : vector<32x256xf32> to vector<1x256xf32>
    %38 = vector.extract_strided_slice %5 {offsets = [1, 0], sizes = [1, 256], strides = [1, 1]} : vector<3x256xf32> to vector<1x256xf32>
    %39 = arith.mulf %37, %38 : vector<1x256xf32>
    %40 = arith.addf %36, %39 : vector<1x256xf32>
    %41 = vector.extract_strided_slice %2 {offsets = [10, 0], sizes = [1, 256], strides = [1, 1]} : vector<32x256xf32> to vector<1x256xf32>
    %42 = vector.extract_strided_slice %5 {offsets = [2, 0], sizes = [1, 256], strides = [1, 1]} : vector<3x256xf32> to vector<1x256xf32>
    %43 = arith.mulf %41, %42 : vector<1x256xf32>
    %44 = arith.addf %40, %43 : vector<1x256xf32>
    %45 = tpu.concatenate %18, %31, %44 in 0 : vector<1x256xf32>, vector<1x256xf32>, vector<1x256xf32> -> vector<3x256xf32>
    %c0_8 = arith.constant 0 : index
    %c0_9 = arith.constant 0 : index
    %c0_10 = arith.constant 0 : index
    %46 = vector.load %arg4[%c0_8, %c0_9, %c0_10] : memref<2x3x256xf32, #tpu.memory_space<vmem>>, vector<1x3x256xf32>
    %47 = vector.shape_cast %46 : vector<1x3x256xf32> to vector<3x256xf32>
    %48 = vector.shape_cast %45 : vector<3x256xf32> to vector<1x3x256xf32>
    tpu.vector_store %arg4[%c0_8, %c0_9, %c0_10], %48 {strides = array<i32>} : memref<2x3x256xf32, #tpu.memory_space<vmem>>, vector<1x3x256xf32>,
    %cst_11 = arith.constant dense<0.000000e+00> : vector<3x19xf32>
    %49 = tpu.matmul %45, %3, %cst_11 {dimension_numbers = #tpu.dot_dimension_numbers<[1], [1], [0], [0], [0, 0, 1, 0], [], []>, precision = #tpu.contract_precision<fp32>} : vector<3x256xf32>, vector<19x256xf32>, vector<3x19xf32> -> vector<3x19xf32>
    %c0_12 = arith.constant 0 : index
    %c0_13 = arith.constant 0 : index
    %c0_14 = arith.constant 0 : index
    %50 = vector.load %arg5[%c0_12, %c0_13, %c0_14] : memref<2x3x19xf32, #tpu.memory_space<vmem>>, vector<1x3x19xf32>
    %51 = vector.shape_cast %50 : vector<1x3x19xf32> to vector<3x19xf32>
    %52 = vector.shape_cast %49 : vector<3x19xf32> to vector<1x3x19xf32>
    tpu.vector_store %arg5[%c0_12, %c0_13, %c0_14], %52 {strides = array<i32>} : memref<2x3x19xf32, #tpu.memory_space<vmem>>, vector<1x3x19xf32>,
    %c1 = arith.constant 1 : index
    %c0_15 = arith.constant 0 : index
    %c0_16 = arith.constant 0 : index
    %53 = vector.load %arg3[%c1, %c0_15, %c0_16] : memref<2x3x256xf32, #tpu.memory_space<vmem>>, vector<1x3x256xf32>
    %54 = vector.shape_cast %53 : vector<1x3x256xf32> to vector<3x256xf32>
    %55 = vector.extract_strided_slice %2 {offsets = [19, 0], sizes = [1, 256], strides = [1, 1]} : vector<32x256xf32> to vector<1x256xf32>
    %56 = vector.extract_strided_slice %2 {offsets = [16, 0], sizes = [1, 256], strides = [1, 1]} : vector<32x256xf32> to vector<1x256xf32>
    %57 = vector.extract_strided_slice %54 {offsets = [0, 0], sizes = [1, 256], strides = [1, 1]} : vector<3x256xf32> to vector<1x256xf32>
    %58 = arith.mulf %56, %57 : vector<1x256xf32>
    %59 = arith.addf %55, %58 : vector<1x256xf32>
    %60 = vector.extract_strided_slice %2 {offsets = [17, 0], sizes = [1, 256], strides = [1, 1]} : vector<32x256xf32> to vector<1x256xf32>
    %61 = vector.extract_strided_slice %54 {offsets = [1, 0], sizes = [1, 256], strides = [1, 1]} : vector<3x256xf32> to vector<1x256xf32>
    %62 = arith.mulf %60, %61 : vector<1x256xf32>
    %63 = arith.addf %59, %62 : vector<1x256xf32>
    %64 = vector.extract_strided_slice %2 {offsets = [18, 0], sizes = [1, 256], strides = [1, 1]} : vector<32x256xf32> to vector<1x256xf32>
    %65 = vector.extract_strided_slice %54 {offsets = [2, 0], sizes = [1, 256], strides = [1, 1]} : vector<3x256xf32> to vector<1x256xf32>
    %66 = arith.mulf %64, %65 : vector<1x256xf32>
    %67 = arith.addf %63, %66 : vector<1x256xf32>
    %68 = vector.extract_strided_slice %2 {offsets = [23, 0], sizes = [1, 256], strides = [1, 1]} : vector<32x256xf32> to vector<1x256xf32>
    %69 = vector.extract_strided_slice %2 {offsets = [20, 0], sizes = [1, 256], strides = [1, 1]} : vector<32x256xf32> to vector<1x256xf32>
    %70 = vector.extract_strided_slice %54 {offsets = [0, 0], sizes = [1, 256], strides = [1, 1]} : vector<3x256xf32> to vector<1x256xf32>
    %71 = arith.mulf %69, %70 : vector<1x256xf32>
    %72 = arith.addf %68, %71 : vector<1x256xf32>
    %73 = vector.extract_strided_slice %2 {offsets = [21, 0], sizes = [1, 256], strides = [1, 1]} : vector<32x256xf32> to vector<1x256xf32>
    %74 = vector.extract_strided_slice %54 {offsets = [1, 0], sizes = [1, 256], strides = [1, 1]} : vector<3x256xf32> to vector<1x256xf32>
    %75 = arith.mulf %73, %74 : vector<1x256xf32>
    %76 = arith.addf %72, %75 : vector<1x256xf32>
    %77 = vector.extract_strided_slice %2 {offsets = [22, 0], sizes = [1, 256], strides = [1, 1]} : vector<32x256xf32> to vector<1x256xf32>
    %78 = vector.extract_strided_slice %54 {offsets = [2, 0], sizes = [1, 256], strides = [1, 1]} : vector<3x256xf32> to vector<1x256xf32>
    %79 = arith.mulf %77, %78 : vector<1x256xf32>
    %80 = arith.addf %76, %79 : vector<1x256xf32>
    %81 = vector.extract_strided_slice %2 {offsets = [27, 0], sizes = [1, 256], strides = [1, 1]} : vector<32x256xf32> to vector<1x256xf32>
    %82 = vector.extract_strided_slice %2 {offsets = [24, 0], sizes = [1, 256], strides = [1, 1]} : vector<32x256xf32> to vector<1x256xf32>
    %83 = vector.extract_strided_slice %54 {offsets = [0, 0], sizes = [1, 256], strides = [1, 1]} : vector<3x256xf32> to vector<1x256xf32>
    %84 = arith.mulf %82, %83 : vector<1x256xf32>
    %85 = arith.addf %81, %84 : vector<1x256xf32>
    %86 = vector.extract_strided_slice %2 {offsets = [25, 0], sizes = [1, 256], strides = [1, 1]} : vector<32x256xf32> to vector<1x256xf32>
    %87 = vector.extract_strided_slice %54 {offsets = [1, 0], sizes = [1, 256], strides = [1, 1]} : vector<3x256xf32> to vector<1x256xf32>
    %88 = arith.mulf %86, %87 : vector<1x256xf32>
    %89 = arith.addf %85, %88 : vector<1x256xf32>
    %90 = vector.extract_strided_slice %2 {offsets = [26, 0], sizes = [1, 256], strides = [1, 1]} : vector<32x256xf32> to vector<1x256xf32>
    %91 = vector.extract_strided_slice %54 {offsets = [2, 0], sizes = [1, 256], strides = [1, 1]} : vector<3x256xf32> to vector<1x256xf32>
    %92 = arith.mulf %90, %91 : vector<1x256xf32>
    %93 = arith.addf %89, %92 : vector<1x256xf32>
    %94 = tpu.concatenate %67, %80, %93 in 0 : vector<1x256xf32>, vector<1x256xf32>, vector<1x256xf32> -> vector<3x256xf32>
    %c1_17 = arith.constant 1 : index
    %c0_18 = arith.constant 0 : index
    %c0_19 = arith.constant 0 : index
    %95 = vector.load %arg4[%c1_17, %c0_18, %c0_19] : memref<2x3x256xf32, #tpu.memory_space<vmem>>, vector<1x3x256xf32>
    %96 = vector.shape_cast %95 : vector<1x3x256xf32> to vector<3x256xf32>
    %97 = vector.shape_cast %94 : vector<3x256xf32> to vector<1x3x256xf32>
    tpu.vector_store %arg4[%c1_17, %c0_18, %c0_19], %97 {strides = array<i32>} : memref<2x3x256xf32, #tpu.memory_space<vmem>>, vector<1x3x256xf32>,
    %cst_20 = arith.constant dense<0.000000e+00> : vector<3x19xf32>
    %98 = tpu.matmul %94, %3, %cst_20 {dimension_numbers = #tpu.dot_dimension_numbers<[1], [1], [0], [0], [0, 0, 1, 0], [], []>, precision = #tpu.contract_precision<fp32>} : vector<3x256xf32>, vector<19x256xf32>, vector<3x19xf32> -> vector<3x19xf32>
    %c1_21 = arith.constant 1 : index
    %c0_22 = arith.constant 0 : index
    %c0_23 = arith.constant 0 : index
    %99 = vector.load %arg5[%c1_21, %c0_22, %c0_23] : memref<2x3x19xf32, #tpu.memory_space<vmem>>, vector<1x3x19xf32>
    %100 = vector.shape_cast %99 : vector<1x3x19xf32> to vector<3x19xf32>
    %101 = vector.shape_cast %98 : vector<3x19xf32> to vector<1x3x19xf32>
    tpu.vector_store %arg5[%c1_21, %c0_22, %c0_23], %101 {strides = array<i32>} : memref<2x3x19xf32, #tpu.memory_space<vmem>>, vector<1x3x19xf32>,
    return
  }
}

</mosaic_0001>

<bundles_post_ra>
// kernel: smpl_forward.2
= control target key start
LH: loop header
LB: loop body
LE: loop exit
PB: predicated region body
PF: predicated region fallthrough
CT: control target
= control target key end

     0   :  { %13 = vsyncpa [#allocation5], 0  ;;  %s9521_s0 = inlined_call_operand.vmem [shape: f32[2,10], index: 0, kind: input, shape index: {}]   ;;  %s9522_s1 = inlined_call_operand.vmem [shape: f32[2,207], index: 1, kind: input, shape index: {}]   ;;  %s9523_s2 = inlined_call_operand.vmem [shape: f32[3,10,256], index: 2, kind: input, shape index: {}]   ;;  %s9524_s3 = inlined_call_operand.vmem [shape: f32[3,207,256], index: 3, kind: input, shape index: {}]   ;;  %s9525_s4 = inlined_call_operand.vmem [shape: f32[3,256], index: 4, kind: input, shape index: {}]   ;;  %s9526_s5 = inlined_call_operand.hbm [shape: f32[24,256], index: 5, kind: input, shape index: {}]   ;;  %s9527_s6 = inlined_call_operand.vmem [shape: f32[2,3,256], index: 6, kind: output, shape index: {0}]   ;;  %s9528_s7 = inlined_call_operand.vmem [shape: f32[2,3,2,24], index: 7, kind: output, shape index: {1}]  }
   0x1   :  { %15 = vsyncpa [#allocation5 + $0x1], 0  ;;  %s6989_s24 = smov 0   ;;  %s6991_s25 = smov 0  }
   0x2   :  { %s6993_s26 = smov 0   ;;  %s6995_s27 = smov 0  }
   0x3 LB: > { %s7008_s28 = sadd.s32 4294967295, %s6940_s27   ;;  %s7011_s29 = sadd.s32 1, %s6940_s27   ;;  %s6940_s27 = sphi %s6995_s27, %s9877_s27   ;;  %s6936_s26 = sphi %s6993_s26, %s9876_s26   ;;  %s6932_s25 = sphi %s6991_s25, %s9875_s25   ;;  %s6928_s24 = sphi %s6989_s24, %s9874_s24  }
   0x4   : > { %s67_s30 = ssub.s32 %s6940_s27, %s7011_s29  ;;  %s70_s8 = sadd.s32 1, %s6936_s26 }
   0x5   : > { %p68_p0 = scmp.eq.s32.totalorder %s67_s30, 0  ;;  %p77_p1 = scmp.ne.s32.totalorder %s6936_s26, %s6932_s25 }
   0x6   : > { %p78_p2 = scmp.eq.s32.totalorder %s6940_s27, 0  ;;  %p161_p3 = scmp.ne.s32.totalorder %s6932_s25, %s6928_s24 }
   0x7   : > { %s7021_s9 = scalar_select %p68_p0, %s6936_s26, %s70_s8  }
   0x8   : > { %p7023_p4 = por %p78_p2, %p77_p1  ;;  %p162_p5 = scmp.eq.s32.totalorder %s7008_s28, 0 }
   0x9   : > { %p185_p6 = scmp.eq.s32.totalorder %s7008_s28, 1  ;;  %p6339_p9 = scmp.ge.s32.totalorder %s6940_s27, 2 }
   0xa   : > { %p7029_p7 = por %p162_p5, %p161_p3 }
   0xb   : > { %p7033_p8 = por %p185_p6, %p77_p1  ;;  %239 = sbr.rel (%p6339_p9) target bundleno = 92 (0x5c), region = 24 }
   0xd   : > { %s9653_s12 = scalar_select %p7033_p8, 1, 0 }
  0x10   : > { %242 = sbr.rel (!%p7023_p4) target bundleno = 23 (0x17), region = 28  ;;  %s244_s13 = sand.u32 (%p7023_p4), 1, %s6936_s26  }
  0x11   : > { %s6340_s14 = sshll.u32 (%p7023_p4), %s6940_s27, 3  ;;  %s6833_s15 = smul.u32 (%p7023_p4), 48, %s244_s13 }
  0x12   : > { %s248_s18 = scalar_lea.vmem (%p7023_p4), %s9523_s2, %s6340_s14 }
  0x13   : > { %v287_v0 = vld [vmem:[%s248_s18] sm:$0xff] (%p7023_p4)  ;;  %v289_v1 = vld [vmem:[%s248_s18 + $0x10] sm:$0xff] (%p7023_p4)  ;;  %s246_s19 = scalar_lea.vmem (%p7023_p4), [#allocation2], %s6833_s15 }
  0x14   : > { %v291_v2 = vld [vmem:[%s248_s18 + $0x20] sm:$0xff] (%p7023_p4)  ;;  %v293_v3 = vld [vmem:[%s248_s18 + $0x30] sm:$0xff] (%p7023_p4)  ;;  %288 = vst [vmem:[%s246_s19] sm:$0xff] (%p7023_p4), %v287_v0  ;;  %290 = vst [vmem:[%s246_s19 + $0x8] sm:$0xff] (%p7023_p4), %v289_v1 }
  0x15   : > { %v295_v4 = vld [vmem:[%s248_s18 + $0x40] sm:$0xff]  ;;  %v297_v5 = vld [vmem:[%s248_s18 + $0x50] sm:$0xff]  ;;  %292 = vst [vmem:[%s246_s19 + $0x10] sm:$0xff] %v291_v2  ;;  %294 = vst [vmem:[%s246_s19 + $0x18] sm:$0xff] %v293_v3 }
  0x16   : > { %296 = vst [vmem:[%s246_s19 + $0x20] sm:$0xff] %v295_v4  ;;  %298 = vst [vmem:[%s246_s19 + $0x28] sm:$0xff] %v297_v5 }
  0x17 PF: > { %304 = sbr.rel (!%p7023_p4) target bundleno = 66 (0x42), region = 66  ;;  %s306_s20 = sand.u32 (%p7023_p4), 1, %s6936_s26  }
  0x18   : > { %s6341_s21 = sshll.u32 (%p7023_p4), %s6940_s27, 3  ;;  %s6834_s22 = smul.u32 (%p7023_p4), 624, %s306_s20 }
  0x19   : > { %s7052_s30 = scalar_lea.vmem (%p7023_p4), %s9524_s3, %s6341_s21 }
  0x1a   : > { %v493_v6 = vld [vmem:[%s7052_s30] sm:$0xff] (%p7023_p4)  ;;  %v495_v7 = vld [vmem:[%s7052_s30 + $0x10] sm:$0xff] (%p7023_p4)  ;;  %s7060_s8 = scalar_lea.vmem (%p7023_p4), [#allocation3], %s6834_s22 }
  0x1b   : > { %v497_v8 = vld [vmem:[%s7052_s30 + $0x20] sm:$0xff] (%p7023_p4)  ;;  %v499_v9 = vld [vmem:[%s7052_s30 + $0x30] sm:$0xff] (%p7023_p4)  ;;  %494 = vst [vmem:[%s7060_s8] sm:$0xff] (%p7023_p4), %v493_v6  ;;  %496 = vst [vmem:[%s7060_s8 + $0x8] sm:$0xff] (%p7023_p4), %v495_v7 }
  0x1c   : > { %v501_v10 = vld [vmem:[%s7052_s30 + $0x40] sm:$0xff]  ;;  %v503_v11 = vld [vmem:[%s7052_s30 + $0x50] sm:$0xff]  ;;  %498 = vst [vmem:[%s7060_s8 + $0x10] sm:$0xff] %v497_v8  ;;  %500 = vst [vmem:[%s7060_s8 + $0x18] sm:$0xff] %v499_v9 }
  0x1d   : > { %502 = vst [vmem:[%s7060_s8 + $0x20] sm:$0xff] %v501_v10  ;;  %504 = vst [vmem:[%s7060_s8 + $0x28] sm:$0xff] %v503_v11  ;;  %v505_v12 = vld [vmem:[%s7052_s30 + $0x60] sm:$0xff]  ;;  %v507_v13 = vld [vmem:[%s7052_s30 + $0x70] sm:$0xff] }
  0x1e   : > { %v509_v14 = vld [vmem:[%s7052_s30 + $0x80] sm:$0xff]  ;;  %506 = vst [vmem:[%s7060_s8 + $0x30] sm:$0xff] %v505_v12  ;;  %508 = vst [vmem:[%s7060_s8 + $0x38] sm:$0xff] %v507_v13  ;;  %v511_v15 = vld [vmem:[%s7052_s30 + $0x90] sm:$0xff] }
  0x1f   : > { %510 = vst [vmem:[%s7060_s8 + $0x40] sm:$0xff] %v509_v14  ;;  %v513_v16 = vld [vmem:[%s7052_s30 + $0xa0] sm:$0xff]  ;;  %v515_v17 = vld [vmem:[%s7052_s30 + $0xb0] sm:$0xff]  ;;  %512 = vst [vmem:[%s7060_s8 + $0x48] sm:$0xff] %v511_v15 }
  0x20   : > { %514 = vst [vmem:[%s7060_s8 + $0x50] sm:$0xff] %v513_v16  ;;  %516 = vst [vmem:[%s7060_s8 + $0x58] sm:$0xff] %v515_v17  ;;  %v517_v18 = vld [vmem:[%s7052_s30 + $0xc0] sm:$0xff]  ;;  %v519_v19 = vld [vmem:[%s7052_s30 + $0xd0] sm:$0xff] }
  0x21   : > { %v521_v20 = vld [vmem:[%s7052_s30 + $0xe0] sm:$0xff]  ;;  %518 = vst [vmem:[%s7060_s8 + $0x60] sm:$0xff] %v517_v18  ;;  %520 = vst [vmem:[%s7060_s8 + $0x68] sm:$0xff] %v519_v19  ;;  %v523_v21 = vld [vmem:[%s7052_s30 + $0xf0] sm:$0xff] }
  0x22   : > { %522 = vst [vmem:[%s7060_s8 + $0x70] sm:$0xff] %v521_v20  ;;  %v525_v22 = vld [vmem:[%s7052_s30 + $0x100] sm:$0xff]  ;;  %v527_v23 = vld [vmem:[%s7052_s30 + $0x110] sm:$0xff]  ;;  %524 = vst [vmem:[%s7060_s8 + $0x78] sm:$0xff] %v523_v21 }
  0x23   : > { %526 = vst [vmem:[%s7060_s8 + $0x80] sm:$0xff] %v525_v22  ;;  %528 = vst [vmem:[%s7060_s8 + $0x88] sm:$0xff] %v527_v23  ;;  %v529_v24 = vld [vmem:[%s7052_s30 + $0x120] sm:$0xff]  ;;  %v531_v25 = vld [vmem:[%s7052_s30 + $0x130] sm:$0xff] }
  0x24   : > { %v533_v26 = vld [vmem:[%s7052_s30 + $0x140] sm:$0xff]  ;;  %530 = vst [vmem:[%s7060_s8 + $0x90] sm:$0xff] %v529_v24  ;;  %532 = vst [vmem:[%s7060_s8 + $0x98] sm:$0xff] %v531_v25  ;;  %v535_v27 = vld [vmem:[%s7052_s30 + $0x150] sm:$0xff] }
  0x25   : > { %534 = vst [vmem:[%s7060_s8 + $0xa0] sm:$0xff] %v533_v26  ;;  %v537_v28 = vld [vmem:[%s7052_s30 + $0x160] sm:$0xff]  ;;  %v539_v29 = vld [vmem:[%s7052_s30 + $0x170] sm:$0xff]  ;;  %536 = vst [vmem:[%s7060_s8 + $0xa8] sm:$0xff] %v535_v27 }
  0x26   : > { %538 = vst [vmem:[%s7060_s8 + $0xb0] sm:$0xff] %v537_v28  ;;  %540 = vst [vmem:[%s7060_s8 + $0xb8] sm:$0xff] %v539_v29  ;;  %v541_v30 = vld [vmem:[%s7052_s30 + $0x180] sm:$0xff]  ;;  %v543_v31 = vld [vmem:[%s7052_s30 + $0x190] sm:$0xff] }
  0x27   : > { %v545_v32 = vld [vmem:[%s7052_s30 + $0x1a0] sm:$0xff]  ;;  %542 = vst [vmem:[%s7060_s8 + $0xc0] sm:$0xff] %v541_v30  ;;  %544 = vst [vmem:[%s7060_s8 + $0xc8] sm:$0xff] %v543_v31  ;;  %v547_v33 = vld [vmem:[%s7052_s30 + $0x1b0] sm:$0xff] }
  0x28   : > { %546 = vst [vmem:[%s7060_s8 + $0xd0] sm:$0xff] %v545_v32  ;;  %v549_v34 = vld [vmem:[%s7052_s30 + $0x1c0] sm:$0xff]  ;;  %v551_v35 = vld [vmem:[%s7052_s30 + $0x1d0] sm:$0xff]  ;;  %548 = vst [vmem:[%s7060_s8 + $0xd8] sm:$0xff] %v547_v33 }
  0x29   : > { %550 = vst [vmem:[%s7060_s8 + $0xe0] sm:$0xff] %v549_v34  ;;  %552 = vst [vmem:[%s7060_s8 + $0xe8] sm:$0xff] %v551_v35  ;;  %v553_v36 = vld [vmem:[%s7052_s30 + $0x1e0] sm:$0xff]  ;;  %v555_v37 = vld [vmem:[%s7052_s30 + $0x1f0] sm:$0xff] }
  0x2a   : > { %v557_v38 = vld [vmem:[%s7052_s30 + $0x200] sm:$0xff]  ;;  %554 = vst [vmem:[%s7060_s8 + $0xf0] sm:$0xff] %v553_v36  ;;  %556 = vst [vmem:[%s7060_s8 + $0xf8] sm:$0xff] %v555_v37  ;;  %v559_v39 = vld [vmem:[%s7052_s30 + $0x210] sm:$0xff] }
  0x2b   : > { %558 = vst [vmem:[%s7060_s8 + $0x100] sm:$0xff] %v557_v38  ;;  %v561_v40 = vld [vmem:[%s7052_s30 + $0x220] sm:$0xff]  ;;  %v563_v41 = vld [vmem:[%s7052_s30 + $0x230] sm:$0xff]  ;;  %560 = vst [vmem:[%s7060_s8 + $0x108] sm:$0xff] %v559_v39 }
  0x2c   : > { %562 = vst [vmem:[%s7060_s8 + $0x110] sm:$0xff] %v561_v40  ;;  %564 = vst [vmem:[%s7060_s8 + $0x118] sm:$0xff] %v563_v41  ;;  %v565_v42 = vld [vmem:[%s7052_s30 + $0x240] sm:$0xff]  ;;  %v567_v43 = vld [vmem:[%s7052_s30 + $0x250] sm:$0xff] }
  0x2d   : > { %v569_v44 = vld [vmem:[%s7052_s30 + $0x260] sm:$0xff]  ;;  %566 = vst [vmem:[%s7060_s8 + $0x120] sm:$0xff] %v565_v42  ;;  %568 = vst [vmem:[%s7060_s8 + $0x128] sm:$0xff] %v567_v43  ;;  %v571_v45 = vld [vmem:[%s7052_s30 + $0x270] sm:$0xff] }
  0x2e   : > { %570 = vst [vmem:[%s7060_s8 + $0x130] sm:$0xff] %v569_v44  ;;  %v573_v46 = vld [vmem:[%s7052_s30 + $0x280] sm:$0xff]  ;;  %v575_v47 = vld [vmem:[%s7052_s30 + $0x290] sm:$0xff]  ;;  %572 = vst [vmem:[%s7060_s8 + $0x138] sm:$0xff] %v571_v45 }
  0x2f   : > { %574 = vst [vmem:[%s7060_s8 + $0x140] sm:$0xff] %v573_v46  ;;  %576 = vst [vmem:[%s7060_s8 + $0x148] sm:$0xff] %v575_v47  ;;  %v577_v48 = vld [vmem:[%s7052_s30 + $0x2a0] sm:$0xff]  ;;  %v579_v49 = vld [vmem:[%s7052_s30 + $0x2b0] sm:$0xff] }
  0x30   : > { %v581_v50 = vld [vmem:[%s7052_s30 + $0x2c0] sm:$0xff]  ;;  %578 = vst [vmem:[%s7060_s8 + $0x150] sm:$0xff] %v577_v48  ;;  %580 = vst [vmem:[%s7060_s8 + $0x158] sm:$0xff] %v579_v49  ;;  %v583_v51 = vld [vmem:[%s7052_s30 + $0x2d0] sm:$0xff] }
  0x31   : > { %582 = vst [vmem:[%s7060_s8 + $0x160] sm:$0xff] %v581_v50  ;;  %v585_v52 = vld [vmem:[%s7052_s30 + $0x2e0] sm:$0xff]  ;;  %v587_v53 = vld [vmem:[%s7052_s30 + $0x2f0] sm:$0xff]  ;;  %584 = vst [vmem:[%s7060_s8 + $0x168] sm:$0xff] %v583_v51 }
  0x32   : > { %586 = vst [vmem:[%s7060_s8 + $0x170] sm:$0xff] %v585_v52  ;;  %588 = vst [vmem:[%s7060_s8 + $0x178] sm:$0xff] %v587_v53  ;;  %v589_v54 = vld [vmem:[%s7052_s30 + $0x300] sm:$0xff]  ;;  %v591_v55 = vld [vmem:[%s7052_s30 + $0x310] sm:$0xff] }
  0x33   : > { %v593_v56 = vld [vmem:[%s7052_s30 + $0x320] sm:$0xff]  ;;  %590 = vst [vmem:[%s7060_s8 + $0x180] sm:$0xff] %v589_v54  ;;  %592 = vst [vmem:[%s7060_s8 + $0x188] sm:$0xff] %v591_v55  ;;  %v595_v57 = vld [vmem:[%s7052_s30 + $0x330] sm:$0xff] }
  0x34   : > { %594 = vst [vmem:[%s7060_s8 + $0x190] sm:$0xff] %v593_v56  ;;  %v597_v58 = vld [vmem:[%s7052_s30 + $0x340] sm:$0xff]  ;;  %v599_v59 = vld [vmem:[%s7052_s30 + $0x350] sm:$0xff]  ;;  %596 = vst [vmem:[%s7060_s8 + $0x198] sm:$0xff] %v595_v57 }
  0x35   : > { %598 = vst [vmem:[%s7060_s8 + $0x1a0] sm:$0xff] %v597_v58  ;;  %600 = vst [vmem:[%s7060_s8 + $0x1a8] sm:$0xff] %v599_v59  ;;  %v601_v60 = vld [vmem:[%s7052_s30 + $0x360] sm:$0xff]  ;;  %v603_v61 = vld [vmem:[%s7052_s30 + $0x370] sm:$0xff] }
  0x36   : > { %v605_v62 = vld [vmem:[%s7052_s30 + $0x380] sm:$0xff]  ;;  %602 = vst [vmem:[%s7060_s8 + $0x1b0] sm:$0xff] %v601_v60  ;;  %604 = vst [vmem:[%s7060_s8 + $0x1b8] sm:$0xff] %v603_v61  ;;  %v607_v63 = vld [vmem:[%s7052_s30 + $0x390] sm:$0xff] }
  0x37   : > { %606 = vst [vmem:[%s7060_s8 + $0x1c0] sm:$0xff] %v605_v62  ;;  %v609_v0 = vld [vmem:[%s7052_s30 + $0x3a0] sm:$0xff]  ;;  %v611_v1 = vld [vmem:[%s7052_s30 + $0x3b0] sm:$0xff]  ;;  %608 = vst [vmem:[%s7060_s8 + $0x1c8] sm:$0xff] %v607_v63 }
  0x38   : > { %610 = vst [vmem:[%s7060_s8 + $0x1d0] sm:$0xff] %v609_v0  ;;  %612 = vst [vmem:[%s7060_s8 + $0x1d8] sm:$0xff] %v611_v1  ;;  %v613_v2 = vld [vmem:[%s7052_s30 + $0x3c0] sm:$0xff]  ;;  %v615_v3 = vld [vmem:[%s7052_s30 + $0x3d0] sm:$0xff] }
  0x39   : > { %v617_v4 = vld [vmem:[%s7052_s30 + $0x3e0] sm:$0xff]  ;;  %614 = vst [vmem:[%s7060_s8 + $0x1e0] sm:$0xff] %v613_v2  ;;  %616 = vst [vmem:[%s7060_s8 + $0x1e8] sm:$0xff] %v615_v3  ;;  %v619_v5 = vld [vmem:[%s7052_s30 + $0x3f0] sm:$0xff] }
  0x3a   : > { %618 = vst [vmem:[%s7060_s8 + $0x1f0] sm:$0xff] %v617_v4  ;;  %v621_v6 = vld [vmem:[%s7052_s30 + $0x400] sm:$0xff]  ;;  %v623_v7 = vld [vmem:[%s7052_s30 + $0x410] sm:$0xff]  ;;  %620 = vst [vmem:[%s7060_s8 + $0x1f8] sm:$0xff] %v619_v5 }
  0x3b   : > { %622 = vst [vmem:[%s7060_s8 + $0x200] sm:$0xff] %v621_v6  ;;  %624 = vst [vmem:[%s7060_s8 + $0x208] sm:$0xff] %v623_v7  ;;  %v625_v8 = vld [vmem:[%s7052_s30 + $0x420] sm:$0xff]  ;;  %v627_v9 = vld [vmem:[%s7052_s30 + $0x430] sm:$0xff] }
  0x3c   : > { %v629_v10 = vld [vmem:[%s7052_s30 + $0x440] sm:$0xff]  ;;  %626 = vst [vmem:[%s7060_s8 + $0x210] sm:$0xff] %v625_v8  ;;  %628 = vst [vmem:[%s7060_s8 + $0x218] sm:$0xff] %v627_v9  ;;  %v631_v11 = vld [vmem:[%s7052_s30 + $0x450] sm:$0xff] }
  0x3d   : > { %630 = vst [vmem:[%s7060_s8 + $0x220] sm:$0xff] %v629_v10  ;;  %v633_v12 = vld [vmem:[%s7052_s30 + $0x460] sm:$0xff]  ;;  %v635_v13 = vld [vmem:[%s7052_s30 + $0x470] sm:$0xff]  ;;  %632 = vst [vmem:[%s7060_s8 + $0x228] sm:$0xff] %v631_v11 }
  0x3e   : > { %634 = vst [vmem:[%s7060_s8 + $0x230] sm:$0xff] %v633_v12  ;;  %636 = vst [vmem:[%s7060_s8 + $0x238] sm:$0xff] %v635_v13  ;;  %v637_v14 = vld [vmem:[%s7052_s30 + $0x480] sm:$0xff]  ;;  %v639_v15 = vld [vmem:[%s7052_s30 + $0x490] sm:$0xff] }
  0x3f   : > { %v641_v16 = vld [vmem:[%s7052_s30 + $0x4a0] sm:$0xff]  ;;  %638 = vst [vmem:[%s7060_s8 + $0x240] sm:$0xff] %v637_v14  ;;  %640 = vst [vmem:[%s7060_s8 + $0x248] sm:$0xff] %v639_v15  ;;  %v643_v17 = vld [vmem:[%s7052_s30 + $0x4b0] sm:$0xff] }
  0x40   : > { %642 = vst [vmem:[%s7060_s8 + $0x250] sm:$0xff] %v641_v16  ;;  %v645_v18 = vld [vmem:[%s7052_s30 + $0x4c0] sm:$0xff]  ;;  %v647_v19 = vld [vmem:[%s7052_s30 + $0x4d0] sm:$0xff]  ;;  %644 = vst [vmem:[%s7060_s8 + $0x258] sm:$0xff] %v643_v17 }
  0x41   : > { %646 = vst [vmem:[%s7060_s8 + $0x260] sm:$0xff] %v645_v18  ;;  %648 = vst [vmem:[%s7060_s8 + $0x268] sm:$0xff] %v647_v19 }
  0x42 PF: > { %s662_s13 = sand.u32 1, %s6936_s26   ;;  %s6342_s14 = sshll.u32 %s6940_s27, 7 }
  0x43   : > { %s6835_s15 = smul.u32 24, %s662_s13  ;;  %s7217_s18 = scalar_lea.hbm %s9526_s5, %s6342_s14 }
  0x44   : > { %s7221_s21 = scalar_lea.sflag [#allocation5], %s662_s13  ;;  %s6880_s22 = scalar_lea.hbm %s7217_s18, 384 }
  0x45   : > { %s666_s19 = scalar_lea.vmem [#allocation4], %s6835_s15  ;;  %p6881_p10 = scmp.ne.s32.totalorder %s7217_s18, %s6880_s22 }
  0x46   : > { %s672_s20 = sshll.u32 %s666_s19, 4  ;;  %s6884_s30 = scalar_lea.hbm %s9526_s5, 768  ;;  %s7219_s20 = int_to_ptr.vmem [resolvable:$true] %s672_s20 }
  0x47   : > { %p6882_p11 = pnand %p6881_p10, %p7023_p4  ;;  %p6885_p13 = scmp.lt.s32.totalorder %s7217_s18, %s9526_s5 }
  0x48   : > { %p6886_p0 = scmp.lt.s32.totalorder %s6884_s30, %s6880_s22 }
  0x49   : > { %p6883_p12 = pneg %p6882_p11 }
  0x4a   : > { %p6887_p1 = por %p6886_p0, %p6885_p13 }
  0x4c   : > { %p6888_p2 = pnand %p6887_p1, %p6883_p12 }
  0x4e   : > { %6891 = shalt.err (!%p6888_p2)
}
  0x4f   : > { %s6892_s13 = scalar_lea.vmem %s7219_s20, 384  ;;  %s6942_s15 = smov [#allocation4]  }
  0x50   : > { %p6893_p3 = scmp.ne.s32.totalorder %s7219_s20, %s6892_s13  ;;  %s6896_s16 = sshll.u32 %s6942_s15, 4  ;;  %s6897_s16 = int_to_ptr.vmem [resolvable:$false] %s6896_s16 }
  0x51   : > { %s6898_s17 = scalar_lea.vmem %s6897_s16, 768  ;;  %p6899_p9 = scmp.lt.s32.totalorder %s7219_s20, %s6897_s16 }
  0x52   : > { %p6894_p5 = pnand %p6893_p3, %p7023_p4  ;;  %p6900_p10 = scmp.lt.s32.totalorder %s6898_s17, %s6892_s13 }
  0x54   : > { %p6895_p6 = pneg %p6894_p5  ;;  %p6901_p11 = por %p6900_p10, %p6899_p9 }
  0x56   : > { %p6902_p8 = pnand %p6901_p11, %p6895_p6 }
  0x58   : > { %6905 = shalt.err (!%p6902_p8)
}
  0x59   : > { %s6943_s19 = smov 256   ;;  %s6944_s22 = smov 128  }
  0x5a   : > { %s6945_s23 = smov 8  }
  0x5b   : > { %6840 = dma.hbm_to_vmem [thread:$0]  (%p7023_p4), %s7217_s18, 384, %s7219_s20, %s7221_s21, %s6943_s19, %s6944_s22, %s6945_s23  }
  0x5c PF: > { %p6343_p12 = scmp.ge.s32.totalorder %s6940_s27, 1  ;;  %p680_p13 = scmp.lt.s32.totalorder %s6940_s27, 3 }
  0x5e   : > { %p681_p0 = pnand %p6343_p12, %p680_p13 }
  0x60   : > { %684 = sbr.rel (%p681_p0) target bundleno = 1049 (0x419), region = 112 }
  0x65   : > { %s7247_s24 = sand.u32 1, %s6932_s25  }
  0x66   : > { %s6836_s30 = smul.u32 48, %s7247_s24  ;;  %s701_s20 = scalar_lea.sflag [#allocation5], %s7247_s24 }
  0x67   : > { %s6837_s8 = smul.u32 624, %s7247_s24 }
  0x68   : > { %s6838_s14 = smul.u32 24, %s7247_s24  ;;  %s7252_s10 = scalar_lea.vmem [#allocation2], %s6836_s30 }
  0x69   : > { %s7254_s18 = scalar_lea.vmem [#allocation3], %s6837_s8 }
  0x6a   : > { %s7257_s21 = scalar_lea.vmem [#allocation4], %s6838_s14 }
  0x6b   : > { %6923 = dma.done.wait (%p7029_p7), %s701_s20, 384  }
  0x6c   : > { %6925 = vsyncadd (%p7029_p7), %s701_s20, 4294966912  ;;  %v6946_v20 = vmov 0.0   ;;  %vm6947_vm0 = vmmov 0   ;;  %vm776_vm1 = vcmask 1041408   ;;  %vm772_vm2 = vcmask 80896   ;;  %v765_v22 = vld [vmem:[%s7252_s10] sm:$0xff] }
  0x6d   : > { %6545 = vmatprep.subr.mxu0 %v6946_v20  ;;  %6549 = vmatprep.mubr.msk.f32.mxu0 %vm6947_vm0, %v6946_v20  ;;  %v766_v21 = vld [vmem:[%s7252_s10 + $0x8] sm:$0x3]  ;;  %v760_v23 = vld [vmem:[%s9521_s0] sm:$0x3]  ;;  %v7275_v25 = vand.u32 4294901760, %v765_v22  ;;  %v1254_v35 = vld [vmem:[%s7254_s18 + $0x78] sm:$0xff] }
  0x6e   : > { %6552 = vmatprep.subr.mxu1 %v6946_v20  ;;  %6556 = vmatprep.mubr.msk.f32.mxu1 %vm6947_vm0, %v6946_v20  ;;  %v778_v24 = vsel %vm776_vm1, %v766_v21, 0  ;;  %v774_v26 = vsel %vm772_vm2, %v760_v23, 0  ;;  %v1253_v39 = vld [vmem:[%s7254_s18 + $0x70] sm:$0xff]  ;;  %v7297_v40 = vand.u32 4294901760, %v1254_v35  ;;  %v1252_v41 = vld [vmem:[%s7254_s18 + $0x68] sm:$0xff]  ;;  %v1251_v46 = vld [vmem:[%s7254_s18 + $0x60] sm:$0xff] }
  0x6f   : > { %v7277_v27 = vand.u32 4294901760, %v778_v24  ;;  %v7279_v28 = vand.u32 4294901760, %v774_v26  ;;  %v894_v29 = vsub.f32 %v765_v22, %v7275_v25  ;;  %v7302_v45 = vand.u32 4294901760, %v1253_v39  ;;  %v1250_v50 = vld [vmem:[%s7254_s18 + $0x58] sm:$0xff]  ;;  %v1249_v53 = vld [vmem:[%s7254_s18 + $0x50] sm:$0xff]  ;;  %v1248_v57 = vld [vmem:[%s7254_s18 + $0x48] sm:$0xff] }
  0x70   : > { %v7306_v47 = vand.u32 4294901760, %v1252_v41  ;;  %v7310_v48 = vsub.f32 %v1254_v35, %v7297_v40  ;;  %v7313_v49 = vand.u32 4294901760, %v1251_v46  ;;  %v7330_v55 = vand.u32 4294901760, %v1250_v50  ;;  %v1247_v61 = vld [vmem:[%s7254_s18 + $0x40] sm:$0xff]  ;;  %v1246_v2 = vld [vmem:[%s7254_s18 + $0x38] sm:$0xff]  ;;  %v1245_v7 = vld [vmem:[%s7254_s18 + $0x30] sm:$0xff] }
  0x71   : > { %9654 = vst [vmem:[#allocation8_spill] sm:$0xff] %v7279_v28  ;;  %6546 = vmatpush3.msra.mxu0 %v7277_v27  ;;  %v7284_v30 = vsub.f32 %v774_v26, %v7279_v28  ;;  %v887_v31 = vsub.f32 %v778_v24, %v7277_v27  ;;  %v895_v32 = vand.u32 4294901760, %v894_v29  ;;  %v7318_v51 = vsub.f32 %v1253_v39, %v7302_v45  ;;  %v1244_v13 = vld [vmem:[%s7254_s18 + $0x28] sm:$0xff]  ;;  %v1243_v18 = vld [vmem:[%s7254_s18 + $0x20] sm:$0xff]  ;;  %v1241_v35 = vld [vmem:[%s7254_s18 + $0x10] sm:$0xff]  ;;  %p751_p4 = scmp.lt.s32.totalorder %s7008_s28, 1 }
  0x72   : > { %6547 = vmatprep.subr.mxu0 %v6946_v20  ;;  %v7324_v52 = vsub.f32 %v1252_v41, %v7306_v47  ;;  %v9543_v54 = vand.u32 4294901760, %v7310_v48  ;;  %v7334_v56 = vsub.f32 %v1251_v46, %v7313_v49  ;;  %v7340_v59 = vand.u32 4294901760, %v1249_v53  ;;  %v1240_v41 = vld [vmem:[%s7254_s18 + $0x8] sm:$0xff]  ;;  %s6344_s30 = sshll.u32 %s7247_s24, 3  ;;  %p9873_p7 = scmp.ne.s32.totalorder %s9653_s12, 0 }
  0x73   : > { %9655 = vst [vmem:[#allocation9_spill] sm:$0xff] %v7284_v30  ;;  %6548 = vmatpush3.msra.mxu0 %v7275_v25  ;;  %v7290_v33 = vand.u32 4294901760, %v7284_v30  ;;  %v888_v34 = vand.u32 4294901760, %v887_v31  ;;  %v896_v36 = vsub.f32 %v894_v29, %v895_v32  ;;  %v9542_v58 = vand.u32 4294901760, %v7318_v51  ;;  %s7990_s16 = scalar_select %p751_p4, %s7008_s28, 1 }
  0x74   : > { %6559 = vmatprep.subr.mxu0 %v6946_v20  ;;  %v9541_v60 = vand.u32 4294901760, %v7324_v52  ;;  %v1392_v62 = vsub.f32 %v7310_v48, %v9543_v54  ;;  %v7352_v63 = vsub.f32 %v1250_v50, %v7330_v55  ;;  %v7354_v0 = vand.u32 4294901760, %v1248_v57  ;;  %v1257_v54 = vld [vmem:[%s7254_s18 + $0x90] sm:$0xff]  ;;  %s8607_s24 = scalar_lea.vmem [#allocation6], %s6344_s30 }
  0x75   : > { %9656 = vst [vmem:[#allocation10_spill] sm:$0xff] %v7290_v33  ;;  %v850_v37 = vsub.f32 %v7284_v30, %v7290_v33  ;;  %v889_v38 = vsub.f32 %v887_v31, %v888_v34  ;;  %v897_v44 = vand.u32 4294901760, %v896_v36  ;;  %v9540_v1 = vand.u32 4294901760, %v7334_v56  ;;  %s6345_s17 = sshll.u32 %s7990_s16, 2  ;;  %s6839_s8 = smul.u32 6, %s7990_s16 }
  0x76   : > { %v1399_v3 = vsub.f32 %v7318_v51, %v9542_v58  ;;  %v7367_v4 = vsub.f32 %v1249_v53, %v7340_v59  ;;  %v7369_v5 = vand.u32 4294901760, %v1247_v61  ;;  %v1406_v6 = vsub.f32 %v7324_v52, %v9541_v60  ;;  %s8006_s23 = scalar_lea.vmem %s9525_s4, %s6345_s17 }
  0x77   : > { %v7300_v42 = vand.u32 4294901760, %v850_v37  ;;  %v890_v43 = vand.u32 4294901760, %v889_v38  ;;  %v1393_v8 = vand.u32 4294901760, %v1392_v62  ;;  %v7380_v9 = vsub.f32 %v1248_v57, %v7354_v0  ;;  %v1264_v57 = vld [vmem:[%s7254_s18 + $0xc8] sm:$0x7f]  ;;  %v1239_v62 = vld [vmem:[%s7254_s18] sm:$0xff] }
  0x78   : > { %v9538_v10 = vand.u32 4294901760, %v7352_v63  ;;  %v7383_v11 = vand.u32 4294901760, %v1246_v2  ;;  %v1413_v12 = vsub.f32 %v7334_v56, %v9540_v1  ;;  %v1400_v14 = vand.u32 4294901760, %v1399_v3 }
  0x79   : > { %9657 = vst [vmem:[#allocation11_spill] sm:$0xff] %v7300_v42  ;;  %6550 = vmatmul.mubr.f32.vlgmr.msra.gmra.mxu0 %v7300_v42  ;;  %6553 = vmatpush3.msra.mxu1 %v890_v43  ;;  %v7395_v15 = vsub.f32 %v1247_v61, %v7369_v5  ;;  %v9537_v16 = vand.u32 4294901760, %v7367_v4  ;;  %v7398_v17 = vand.u32 4294901760, %v1245_v7  ;;  %v1407_v19 = vand.u32 4294901760, %v1406_v6 }
  0x7a   : > { %6560 = vmatpush3.msra.mxu0 %v887_v31  ;;  %6554 = vmatprep.subr.mxu1 %v6946_v20  ;;  %v1420_v21 = vsub.f32 %v7352_v63, %v9538_v10  ;;  %v7408_v22 = vsub.f32 %v1246_v2, %v7383_v11  ;;  %v9535_v23 = vand.u32 4294901760, %v7380_v9  ;;  %v7411_v24 = vand.u32 4294901760, %v1244_v13 }
  0x7b   : > { %6561 = vmatprep.subr.mxu0 %v6946_v20  ;;  %6555 = vmatpush3.msra.mxu1 %v897_v44  ;;  %v7416_v26 = vand.u32 4294901760, %v1243_v18  ;;  %v7423_v31 = vsub.f32 %v1245_v7, %v7398_v17  ;;  %vm1278_vm3 = vcmask 1046528   ;;  %v7450_v53 = vand.u32 4294901760, %v1241_v35 }
  0x7c   : > { %6562 = vmatpush3.msra.mxu0 %v894_v29  ;;  %6557 = vmatmul.mubr.f32.vlgmr.msra.gmra.mxu1 %v7279_v28  ;;  %v1427_v29 = vsub.f32 %v7367_v4, %v9537_v16  ;;  %v1421_v36 = vand.u32 4294901760, %v1420_v21  ;;  %v1434_v37 = vsub.f32 %v7380_v9, %v9535_v23  ;;  %v7436_v38 = vsub.f32 %v1244_v13, %v7411_v24 }
  0x7d   : > { %6563 = vmatprep.mubr.msk.f32.mxu0 %vm6947_vm0, %v6946_v20  ;;  %6566 = vmatprep.subr.mxu1 %v6946_v20  ;;  %v9532_v39 = vand.u32 4294901760, %v7408_v22  ;;  %v7443_v43 = vsub.f32 %v1243_v18, %v7416_v26  ;;  %v9531_v50 = vand.u32 4294901760, %v7423_v31  ;;  %v7455_v61 = vand.u32 4294901760, %v1240_v41 }
  0x7e   : > { %6573 = vmatprep.subr.mxu0 %v6946_v20  ;;  %6564 = vmatmul.mubr.f32.vlgmr.msra.gmra.mxu0 %v7284_v30  ;;  %v1428_v44 = vand.u32 4294901760, %v1427_v29  ;;  %v1435_v2 = vand.u32 4294901760, %v1434_v37  ;;  %v9529_v7 = vand.u32 4294901760, %v7436_v38  ;;  %v7475_v18 = vsub.f32 %v1241_v35, %v7450_v53  ;;  %v1262_v37 = vld [vmem:[%s7254_s18 + $0xb8] sm:$0xff] }
  0x7f   : > { %6567 = vmatpush3.msra.mxu1 %v7277_v27  ;;  %6574 = vmatpush3.msra.mxu0 %v888_v34  ;;  %v1448_v3 = vsub.f32 %v7408_v22, %v9532_v39  ;;  %v7482_v21 = vsub.f32 %v1240_v41, %v7455_v61  ;;  %v1260_v39 = vld [vmem:[%s7254_s18 + $0xa8] sm:$0xff]  ;;  %vm1275_vm4 = vcmask 646144   ;;  %v7588_v30 = vand.u32 4294901760, %v1257_v54 }
  0x80   : > { %6568 = vmatprep.subr.mxu1 %v6946_v20  ;;  %6575 = vmatprep.subr.mxu0 %v6946_v20  ;;  %v1462_v29 = vsub.f32 %v7436_v38, %v9529_v7  ;;  %v7547_v16 = vand.u32 4294901760, %v1260_v39  ;;  %vm2566_vm5 = vcmask 189440  }
  0x81   : > { %6569 = vmatpush3.msra.mxu1 %v7275_v25  ;;  %6570 = vmatprep.mubr.msk.f32.mxu1 %vm6947_vm0, %v6946_v20  ;;  %v9539_v7 = vand.u32 4294901760, %v7482_v21 }
  0x82   : > { %6576 = vmatpush3.msra.mxu0 %v895_v32  ;;  %6571 = vmatmul.mubr.f32.vlgmr.msra.gmra.mxu1 %v7290_v33  ;;  %v9534_v32 = vand.u32 4294901760, %v7395_v15  ;;  %9662 = vst [vmem:[#allocation16_spill] sm:$0xff] %v7547_v16  ;;  %v1255_v33 = vld [vmem:[%s7254_s18 + $0x80] sm:$0xff] }
  0x83   : > { %6577 = vmatprep.mubr.msk.f32.mxu0 %vm6947_vm0, %v6946_v20  ;;  %6580 = vmatprep.subr.mxu1 %v6946_v20  ;;  %v1490_v23 = vsub.f32 %v7482_v21, %v9539_v7  ;;  %v1258_v7 = vld [vmem:[%s7254_s18 + $0x98] sm:$0xff] }
  0x84   : > { %1282 = vmatprep.subr.mxu0 %v6946_v20  ;;  %6578 = vmatmul.mubr.f32.vlgmr.msra.gmra.mxu0 %v7279_v28  ;;  %v1441_v46 = vsub.f32 %v7395_v15, %v9534_v32 }
  0x85   : > { %6581 = vmatpush3.msra.mxu1 %v7277_v27  ;;  %1284 = vmatpush1.msra.mxu0 %v7297_v40  ;;  %v1414_v27 = vand.u32 4294901760, %v1413_v12  ;;  %v1280_v12 = vsel %vm1278_vm3, %v1264_v57, 0  ;;  %v9536_v57 = vand.u32 4294901760, %v7475_v18 }
  0x86   : > { %6582 = vmatprep.subr.mxu1 %v6946_v20  ;;  %1285 = vmatprep.subr.mxu0 %v6946_v20  ;;  %v1442_v13 = vand.u32 4294901760, %v1441_v46 }
  0x87   : > { %6583 = vmatpush3.msra.mxu1 %v7275_v25  ;;  %6584 = vmatprep.mubr.msk.f32.mxu1 %vm6947_vm0, %v6946_v20  ;;  %v1242_v25 = vld [vmem:[%s7254_s18 + $0x18] sm:$0xff] }
  0x88   : > { %1287 = vmatpush1.msra.mxu0 %v7302_v45  ;;  %6585 = vmatmul.mubr.f32.vlgmr.msra.gmra.mxu1 %v7279_v28  ;;  %v7428_v34 = vand.u32 4294901760, %v1242_v25 }
  0x89   : > { %1288 = vmatprep.subr.mxu0 %v6946_v20  ;;  %1388 = vmatprep.subr.mxu1 %v6946_v20 }
  0x8a   : > { %1290 = vmatpush1.msra.mxu0 %v7306_v47  ;;  %1394 = vmatpush1.msra.mxu1 %v1393_v8  ;;  %v7463_v6 = vsub.f32 %v1242_v25, %v7428_v34  ;;  %v9530_v8 = vand.u32 4294901760, %v7443_v43  ;;  %v1263_v25 = vld [vmem:[%s7254_s18 + $0xc0] sm:$0xff] }
  0x8b   : > { %1291 = vmatprep.subr.mxu0 %v6946_v20  ;;  %1395 = vmatprep.subr.mxu1 %v6946_v20 }
  0x8c   : > { %1293 = vmatpush1.msra.mxu0 %v7313_v49  ;;  %1401 = vmatpush1.msra.mxu1 %v1400_v14  ;;  %v1455_v14 = vsub.f32 %v7423_v31, %v9531_v50  ;;  %v9533_v35 = vand.u32 4294901760, %v7463_v6  ;;  %v1469_v41 = vsub.f32 %v7443_v43, %v9530_v8  ;;  %v7509_v8 = vand.u32 4294901760, %v1262_v37 }
  0x8d   : > { %1294 = vmatprep.subr.mxu0 %v6946_v20  ;;  %1402 = vmatprep.subr.mxu1 %v6946_v20 }
  0x8e   : > { %1296 = vmatpush1.msra.mxu0 %v7330_v55  ;;  %1408 = vmatpush1.msra.mxu1 %v1407_v19  ;;  %v7477_v19 = vand.u32 4294901760, %v1239_v62 }
  0x8f   : > { %1297 = vmatprep.subr.mxu0 %v6946_v20  ;;  %1409 = vmatprep.subr.mxu1 %v6946_v20 }
  0x90   : > { %1299 = vmatpush1.msra.mxu0 %v7340_v59  ;;  %1415 = vmatpush1.msra.mxu1 %v1414_v27  ;;  %9658 = vst [vmem:[#allocation12_spill] sm:$0xff] %v7477_v19  ;;  %v1449_v27 = vand.u32 4294901760, %v1448_v3  ;;  %v7500_v46 = vsub.f32 %v1239_v62, %v7477_v19  ;;  %v1261_v3 = vld [vmem:[%s7254_s18 + $0xb0] sm:$0xff]  ;;  %v1476_v62 = vsub.f32 %v7463_v6, %v9533_v35 }
  0x91   : > { %1300 = vmatprep.subr.mxu0 %v6946_v20  ;;  %1416 = vmatprep.subr.mxu1 %v6946_v20  ;;  %v7520_v50 = vand.u32 4294901760, %v1261_v3 }
  0x92   : > { %1302 = vmatpush1.msra.mxu0 %v7354_v0  ;;  %1422 = vmatpush1.msra.mxu1 %v1421_v36  ;;  %v7490_v36 = vand.u32 4294901760, %v1280_v12  ;;  %v9544_v32 = vand.u32 4294901760, %v7500_v46 }
  0x93   : > { %1303 = vmatprep.subr.mxu0 %v6946_v20  ;;  %1423 = vmatprep.subr.mxu1 %v6946_v20  ;;  %9660 = vst [vmem:[#allocation14_spill] sm:$0xff] %v7520_v50 }
  0x94   : > { %1305 = vmatpush1.msra.mxu0 %v7369_v5  ;;  %1429 = vmatpush1.msra.mxu1 %v1428_v44  ;;  %9659 = vst [vmem:[#allocation13_spill] sm:$0xff] %v7490_v36  ;;  %v1456_v44 = vand.u32 4294901760, %v1455_v14  ;;  %v7516_v14 = vsub.f32 %v1280_v12, %v7490_v36  ;;  %v1483_v12 = vsub.f32 %v7475_v18, %v9536_v57 }
  0x95   : > { %1306 = vmatprep.subr.mxu0 %v6946_v20  ;;  %1430 = vmatprep.subr.mxu1 %v6946_v20 }
  0x96   : > { %1308 = vmatpush1.msra.mxu0 %v7383_v11  ;;  %1436 = vmatpush1.msra.mxu1 %v1435_v2  ;;  %v7503_v2 = vand.u32 4294901760, %v1263_v25  ;;  %v9545_v57 = vand.u32 4294901760, %v7516_v14 }
  0x97   : > { %1309 = vmatprep.subr.mxu0 %v6946_v20  ;;  %1437 = vmatprep.subr.mxu1 %v6946_v20 }
  0x98   : > { %1311 = vmatpush1.msra.mxu0 %v7398_v17  ;;  %1443 = vmatpush1.msra.mxu1 %v1442_v13  ;;  %v1463_v13 = vand.u32 4294901760, %v1462_v29  ;;  %v1470_v29 = vand.u32 4294901760, %v1469_v41  ;;  %v7533_v35 = vsub.f32 %v1263_v25, %v7503_v2  ;;  %v7542_v41 = vsub.f32 %v1262_v37, %v7509_v8 }
  0x99   : > { %1312 = vmatprep.subr.mxu0 %v6946_v20  ;;  %1444 = vmatprep.subr.mxu1 %v6946_v20  ;;  %v1477_v25 = vand.u32 4294901760, %v1476_v62  ;;  %v7554_v37 = vsub.f32 %v1261_v3, %v7520_v50  ;;  %v1497_v62 = vsub.f32 %v7500_v46, %v9544_v32  ;;  %v1491_v3 = vand.u32 4294901760, %v1490_v23 }
  0x9a   : > { %1314 = vmatpush1.msra.mxu0 %v7411_v24  ;;  %1450 = vmatpush1.msra.mxu1 %v1449_v27  ;;  %v7526_v27 = vld.sshfl [vmem:[%s9522_s1] sm:$0x33 pattern:$0x76325410]  ;;  %9661 = vst [vmem:[#allocation15_spill] sm:$0xff] %v7542_v41  ;;  %v7575_v32 = vand.u32 4294901760, %v1258_v7 }
  0x9b   : > { %1315 = vmatprep.subr.mxu0 %v6946_v20  ;;  %1451 = vmatprep.subr.mxu1 %v6946_v20  ;;  %v1273_v10 = vcombine.high %v7526_v27, %v7526_v27  ;;  %v9664_v23 = vand.u32 4294901760, %v7542_v41  ;;  %v7605_v28 = vand.u32 4294901760, %v7526_v27 }
  0x9c   : > { %1317 = vmatpush1.msra.mxu0 %v7416_v26  ;;  %1457 = vmatpush1.msra.mxu1 %v1456_v44  ;;  %v1259_v44 = vld [vmem:[%s7254_s18 + $0xa0] sm:$0xff] }
  0x9d   : > { %1318 = vmatprep.subr.mxu0 %v6946_v20  ;;  %1458 = vmatprep.subr.mxu1 %v6946_v20  ;;  %v7562_v60 = vand.u32 4294901760, %v1259_v44  ;;  %v1276_v1 = vsel %vm1275_vm4, %v1273_v10, 0  ;;  %v1256_v10 = vld [vmem:[%s7254_s18 + $0x88] sm:$0xff]  ;;  %v1530_v42 = vsub.f32 %v7542_v41, %v9664_v23  ;;  %9666 = vst [vmem:[#allocation18_spill] sm:$0xff] %v7605_v28  ;;  %v7621_v41 = vand.u32 4294901760, %v1255_v33 }
  0x9e   : > { %1320 = vmatpush1.msra.mxu0 %v7428_v34  ;;  %1464 = vmatpush1.msra.mxu1 %v1463_v13  ;;  %v1484_v13 = vand.u32 4294901760, %v1483_v12  ;;  %v7573_v12 = vsub.f32 %v1260_v39, %v7547_v16  ;;  %v7609_v23 = vand.u32 4294901760, %v1256_v10 }
  0x9f   : > { %1321 = vmatprep.subr.mxu0 %v6946_v20  ;;  %1465 = vmatprep.subr.mxu1 %v6946_v20  ;;  %v7586_v58 = vsub.f32 %v1259_v44, %v7562_v60  ;;  %v7600_v44 = vsub.f32 %v1258_v7, %v7575_v32 }
  0xa0   : > { %1323 = vmatpush1.msra.mxu0 %v7450_v53  ;;  %1471 = vmatpush1.msra.mxu1 %v1470_v29  ;;  %v1516_v29 = vsub.f32 %v7516_v14, %v9545_v57  ;;  %v9663_v57 = vand.u32 4294901760, %v7533_v35 }
  0xa1   : > { %1324 = vmatprep.subr.mxu0 %v6946_v20  ;;  %1472 = vmatprep.subr.mxu1 %v6946_v20 }
  0xa2   : > { %1326 = vmatpush1.msra.mxu0 %v7455_v61  ;;  %1478 = vmatpush1.msra.mxu1 %v1477_v25  ;;  %v1498_v25 = vand.u32 4294901760, %v1497_v62  ;;  %v1523_v39 = vsub.f32 %v7533_v35, %v9663_v57  ;;  %v1517_v57 = vand.u32 4294901760, %v1516_v29  ;;  %v9667_v29 = vand.u32 4294901760, %v7554_v37 }
  0xa3   : > { %1327 = vmatprep.subr.mxu0 %v6946_v20  ;;  %1479 = vmatprep.subr.mxu1 %v6946_v20  ;;  %v7616_v62 = vsub.f32 %v1257_v54, %v7588_v30 }
  0xa4   : > { %1329 = vmatpush1.msra.mxu0 %v7477_v19  ;;  %1485 = vmatpush1.msra.mxu1 %v1484_v13  ;;  %v7596_v13 = vand.u32 4294901760, %v1276_v1  ;;  %v1537_v7 = vsub.f32 %v7554_v37, %v9667_v29 }
  0xa5   : > { %1342 = vmatprep.subr.mxu0 %v6946_v20  ;;  %1486 = vmatprep.subr.mxu1 %v6946_v20 }
  0xa6   : > { %9665 = vst [vmem:[#allocation17_spill] sm:$0xff] %v7596_v13  ;;  %1344 = vmatpush2.msra.mxu0 %v7490_v36  ;;  %1492 = vmatpush1.msra.mxu1 %v1491_v3  ;;  %v1524_v3 = vand.u32 4294901760, %v1523_v39  ;;  %v7624_v19 = vsub.f32 %v1276_v1, %v7596_v13  ;;  %v9669_v39 = vand.u32 4294901760, %v7573_v12  ;;  %v7633_v36 = vsub.f32 %v7526_v27, %v7605_v28 }
  0xa7   : > { %1345 = vmatprep.subr.mxu0 %v6946_v20  ;;  %1493 = vmatprep.subr.mxu1 %v6946_v20  ;;  %v7638_v1 = vsub.f32 %v1256_v10, %v7609_v23  ;;  %v7648_v27 = vsub.f32 %v1255_v33, %v7621_v41 }
  0xa8   : > { %1347 = vmatpush2.msra.mxu0 %v7503_v2  ;;  %1499 = vmatpush1.msra.mxu1 %v1498_v25  ;;  %9668 = vst [vmem:[#allocation19_spill] sm:$0xff] %v7624_v19  ;;  %v1531_v25 = vand.u32 4294901760, %v1530_v42  ;;  %v1544_v54 = vsub.f32 %v7573_v12, %v9669_v39  ;;  %9670 = vst [vmem:[#allocation20_spill] sm:$0xff] %v7633_v36  ;;  %v1538_v42 = vand.u32 4294901760, %v1537_v7  ;;  %v7651_v10 = vand.u32 4294901760, %v7624_v19 }
  0xa9   : > { %1348 = vmatprep.subr.mxu0 %v6946_v20  ;;  %1512 = vmatprep.subr.mxu1 %v6946_v20  ;;  %v9673_v7 = vand.u32 4294901760, %v7600_v44  ;;  %v7658_v29 = vand.u32 4294901760, %v7633_v36 }
  0xaa   : > { %1350 = vmatpush2.msra.mxu0 %v7509_v8  ;;  %1518 = vmatpush2.msra.mxu1 %v1517_v57  ;;  %v9671_v57 = vand.u32 4294901760, %v7586_v58  ;;  %9672 = vst [vmem:[#allocation21_spill] sm:$0xff] %v7651_v10 }
  0xab   : > { %1351 = vmatprep.subr.mxu0 %v6946_v20  ;;  %1519 = vmatprep.subr.mxu1 %v6946_v20  ;;  %9674 = vst [vmem:[#allocation22_spill] sm:$0xff] %v7658_v29 }
  0xac   : > { %1353 = vmatpush2.msra.mxu0 %v7520_v50  ;;  %1525 = vmatpush2.msra.mxu1 %v1524_v3  ;;  %v1551_v39 = vsub.f32 %v7586_v58, %v9671_v57  ;;  %v1545_v3 = vand.u32 4294901760, %v1544_v54  ;;  %v1558_v57 = vsub.f32 %v7600_v44, %v9673_v7  ;;  %v1375_v7 = vsub.f32 %v7624_v19, %v7651_v10 }
  0xad   : > { %1354 = vmatprep.subr.mxu0 %v6946_v20  ;;  %1526 = vmatprep.subr.mxu1 %v6946_v20 }
  0xae   : > { %1356 = vmatpush2.msra.mxu0 %v7547_v16  ;;  %1532 = vmatpush2.msra.mxu1 %v1531_v25  ;;  %v1552_v50 = vand.u32 4294901760, %v1551_v39  ;;  %v9675_v25 = vand.u32 4294901760, %v7616_v62  ;;  %v1578_v16 = vand.u32 4294901760, %v7648_v27  ;;  %v1559_v33 = vand.u32 4294901760, %v1558_v57 }
  0xaf   : > { %1357 = vmatprep.subr.mxu0 %v6946_v20  ;;  %1533 = vmatprep.subr.mxu1 %v6946_v20  ;;  %v9676_v39 = vand.u32 4294901760, %v7638_v1 }
  0xb0   : > { %1359 = vmatpush2.msra.mxu0 %v7562_v60  ;;  %1539 = vmatpush2.msra.mxu1 %v1538_v42  ;;  %v1565_v54 = vsub.f32 %v7616_v62, %v9675_v25  ;;  %v1381_v42 = vsub.f32 %v7633_v36, %v7658_v29  ;;  %v1579_v57 = vsub.f32 %v7648_v27, %v1578_v16 }
  0xb1   : > { %1360 = vmatprep.subr.mxu0 %v6946_v20  ;;  %1540 = vmatprep.subr.mxu1 %v6946_v20  ;;  %v1572_v25 = vsub.f32 %v7638_v1, %v9676_v39  ;;  %v9683_v39 = vld [vmem:[#allocation16_spill] sm:$0xff] }
  0xb2   : > { %1362 = vmatpush2.msra.mxu0 %v7575_v32  ;;  %1546 = vmatpush2.msra.mxu1 %v1545_v3  ;;  %v1566_v10 = vand.u32 4294901760, %v1565_v54  ;;  %v7683_v3 = vand.u32 4294901760, %v1375_v7  ;;  %v7689_v29 = vand.u32 4294901760, %v1381_v42  ;;  %v1580_v54 = vand.u32 4294901760, %v1579_v57  ;;  %v9681_v7 = vld [vmem:[#allocation13_spill] sm:$0xff]  ;;  %v9682_v42 = vld [vmem:[#allocation14_spill] sm:$0xff] }
  0xb3   : > { %1363 = vmatprep.subr.mxu0 %v6946_v20  ;;  %1547 = vmatprep.subr.mxu1 %v6946_v20  ;;  %v9685_v57 = vld [vmem:[#allocation21_spill] sm:$0xff] }
  0xb4   : > { %1365 = vmatpush2.msra.mxu0 %v7588_v30  ;;  %1553 = vmatpush2.msra.mxu1 %v1552_v50  ;;  %9677 = vst [vmem:[#allocation23_spill] sm:$0xff] %v7683_v3  ;;  %9678 = vst [vmem:[#allocation24_spill] sm:$0xff] %v7689_v29  ;;  %v1573_v50 = vand.u32 4294901760, %v1572_v25  ;;  %v9684_v25 = vand.u32 4294901760, %v7310_v48 }
  0xb5   : > { %1366 = vmatprep.subr.mxu0 %v6946_v20  ;;  %1554 = vmatprep.subr.mxu1 %v6946_v20 }
  0xb6   : > { %1368 = vmatpush2.msra.mxu0 %v7609_v23  ;;  %1560 = vmatpush2.msra.mxu1 %v1559_v33  ;;  %v9680_v33 = vld [vmem:[#allocation15_spill] sm:$0xff] }
  0xb7   : > { %1369 = vmatprep.subr.mxu0 %v6946_v20  ;;  %1561 = vmatprep.subr.mxu1 %v6946_v20 }
  0xb8   : > { %1371 = vmatpush2.msra.mxu0 %v7621_v41  ;;  %1567 = vmatpush2.msra.mxu1 %v1566_v10  ;;  %v9679_v10 = vld [vmem:[#allocation12_spill] sm:$0xff] }
  0xb9   : > { %1377 = vmatprep.mubr.f32.mxu0 %v7683_v3  ;;  %1568 = vmatprep.subr.mxu1 %v6946_v20 }
  0xba   : > { %1590 = vmatprep.subr.mxu0 %v6946_v20  ;;  %1383 = vmatmul.mubr.f32.vlgmr.msra.gmra.mxu0 %v7689_v29 }
  0xbb   : > { %1574 = vmatpush2.msra.mxu1 %v1573_v50  ;;  %1593 = vmatpush1.msra.mxu0 %v7310_v48  ;;  %v9686_v50 = vand.u32 4294901760, %v7318_v51  ;;  %v9688_v48 = vand.u32 4294901760, %v7324_v52 }
  0xbc   : > { %1575 = vmatprep.subr.mxu1 %v6946_v20  ;;  %1594 = vmatprep.subr.mxu0 %v6946_v20 }
  0xbd   : > { %1581 = vmatpush2.msra.mxu1 %v1580_v54  ;;  %1597 = vmatpush1.msra.mxu0 %v7318_v51  ;;  %v9687_v54 = vld [vmem:[#allocation22_spill] sm:$0xff]  ;;  %v9690_v51 = vand.u32 4294901760, %v7352_v63 }
  0xbe   : > { %1583 = vmatprep.mubr.f32.mxu1 %v7596_v13  ;;  %1598 = vmatprep.subr.mxu0 %v6946_v20 }
  0xbf   : > { %1716 = vmatprep.subr.mxu1 %v6946_v20  ;;  %1585 = vmatmul.mubr.f32.vlgmr.msra.gmra.mxu1 %v7605_v28 }
  0xc0   : > { %1601 = vmatpush1.msra.mxu0 %v7324_v52  ;;  %1718 = vmatpush1.msra.mxu1 %v7297_v40  ;;  %v9695_v52 = vand.u32 4294901760, %v7423_v31 }
  0xc1   : > { %1602 = vmatprep.subr.mxu0 %v6946_v20  ;;  %1719 = vmatprep.subr.mxu1 %v6946_v20 }
  0xc2   : > { %1605 = vmatpush1.msra.mxu0 %v7334_v56  ;;  %1721 = vmatpush1.msra.mxu1 %v7302_v45 }
  0xc3   : > { %1606 = vmatprep.subr.mxu0 %v6946_v20  ;;  %1722 = vmatprep.subr.mxu1 %v6946_v20 }
  0xc4   : > { %1609 = vmatpush1.msra.mxu0 %v7352_v63  ;;  %1724 = vmatpush1.msra.mxu1 %v7306_v47  ;;  %v9699_v63 = vand.u32 4294901760, %v7475_v18 }
  0xc5   : > { %1610 = vmatprep.subr.mxu0 %v6946_v20  ;;  %1725 = vmatprep.subr.mxu1 %v6946_v20 }
  0xc6   : > { %1613 = vmatpush1.msra.mxu0 %v7367_v4  ;;  %1727 = vmatpush1.msra.mxu1 %v7313_v49 }
  0xc7   : > { %1614 = vmatprep.subr.mxu0 %v6946_v20  ;;  %1728 = vmatprep.subr.mxu1 %v6946_v20 }
  0xc8   : > { %1617 = vmatpush1.msra.mxu0 %v7380_v9  ;;  %1730 = vmatpush1.msra.mxu1 %v7330_v55 }
  0xc9   : > { %1618 = vmatprep.subr.mxu0 %v6946_v20  ;;  %1731 = vmatprep.subr.mxu1 %v6946_v20 }
  0xca   : > { %1621 = vmatpush1.msra.mxu0 %v7395_v15  ;;  %1733 = vmatpush1.msra.mxu1 %v7340_v59 }
  0xcb   : > { %1622 = vmatprep.subr.mxu0 %v6946_v20  ;;  %1734 = vmatprep.subr.mxu1 %v6946_v20 }
  0xcc   : > { %1625 = vmatpush1.msra.mxu0 %v7408_v22  ;;  %1736 = vmatpush1.msra.mxu1 %v7354_v0 }
  0xcd   : > { %1626 = vmatprep.subr.mxu0 %v6946_v20  ;;  %1737 = vmatprep.subr.mxu1 %v6946_v20 }
  0xce   : > { %1629 = vmatpush1.msra.mxu0 %v7423_v31  ;;  %1739 = vmatpush1.msra.mxu1 %v7369_v5 }
  0xcf   : > { %1630 = vmatprep.subr.mxu0 %v6946_v20  ;;  %1740 = vmatprep.subr.mxu1 %v6946_v20 }
  0xd0   : > { %1633 = vmatpush1.msra.mxu0 %v7436_v38  ;;  %1742 = vmatpush1.msra.mxu1 %v7383_v11 }
  0xd1   : > { %1634 = vmatprep.subr.mxu0 %v6946_v20  ;;  %1743 = vmatprep.subr.mxu1 %v6946_v20 }
  0xd2   : > { %1637 = vmatpush1.msra.mxu0 %v7443_v43  ;;  %1745 = vmatpush1.msra.mxu1 %v7398_v17 }
  0xd3   : > { %1638 = vmatprep.subr.mxu0 %v6946_v20  ;;  %1746 = vmatprep.subr.mxu1 %v6946_v20 }
  0xd4   : > { %1641 = vmatpush1.msra.mxu0 %v7463_v6  ;;  %1748 = vmatpush1.msra.mxu1 %v7411_v24 }
  0xd5   : > { %1642 = vmatprep.subr.mxu0 %v6946_v20  ;;  %1749 = vmatprep.subr.mxu1 %v6946_v20 }
  0xd6   : > { %1645 = vmatpush1.msra.mxu0 %v7475_v18  ;;  %1751 = vmatpush1.msra.mxu1 %v7416_v26  ;;  %v9716_v18 = vand.u32 4294901760, %v7638_v1 }
  0xd7   : > { %1646 = vmatprep.subr.mxu0 %v6946_v20  ;;  %1752 = vmatprep.subr.mxu1 %v6946_v20 }
  0xd8   : > { %1649 = vmatpush1.msra.mxu0 %v7482_v21  ;;  %1754 = vmatpush1.msra.mxu1 %v7428_v34 }
  0xd9   : > { %1650 = vmatprep.subr.mxu0 %v6946_v20  ;;  %1755 = vmatprep.subr.mxu1 %v6946_v20 }
  0xda   : > { %1653 = vmatpush1.msra.mxu0 %v7500_v46  ;;  %1757 = vmatpush1.msra.mxu1 %v7450_v53 }
  0xdb   : > { %1666 = vmatprep.subr.mxu0 %v6946_v20  ;;  %1758 = vmatprep.subr.mxu1 %v6946_v20 }
  0xdc   : > { %1669 = vmatpush2.msra.mxu0 %v7516_v14  ;;  %1760 = vmatpush1.msra.mxu1 %v7455_v61 }
  0xdd   : > { %1670 = vmatprep.subr.mxu0 %v6946_v20  ;;  %1761 = vmatprep.subr.mxu1 %v6946_v20 }
  0xde   : > { %1673 = vmatpush2.msra.mxu0 %v7533_v35  ;;  %1763 = vmatpush1.msra.mxu1 %v9679_v10 }
  0xdf   : > { %1674 = vmatprep.subr.mxu0 %v6946_v20  ;;  %1776 = vmatprep.subr.mxu1 %v6946_v20 }
  0xe0   : > { %1677 = vmatpush2.msra.mxu0 %v9680_v33  ;;  %1778 = vmatpush2.msra.mxu1 %v9681_v7 }
  0xe1   : > { %1678 = vmatprep.subr.mxu0 %v6946_v20  ;;  %1779 = vmatprep.subr.mxu1 %v6946_v20 }
  0xe2   : > { %1681 = vmatpush2.msra.mxu0 %v7554_v37  ;;  %1781 = vmatpush2.msra.mxu1 %v7503_v2 }
  0xe3   : > { %1682 = vmatprep.subr.mxu0 %v6946_v20  ;;  %1782 = vmatprep.subr.mxu1 %v6946_v20 }
  0xe4   : > { %1685 = vmatpush2.msra.mxu0 %v7573_v12  ;;  %1784 = vmatpush2.msra.mxu1 %v7509_v8 }
  0xe5   : > { %1686 = vmatprep.subr.mxu0 %v6946_v20  ;;  %1785 = vmatprep.subr.mxu1 %v6946_v20 }
  0xe6   : > { %1689 = vmatpush2.msra.mxu0 %v7586_v58  ;;  %1787 = vmatpush2.msra.mxu1 %v9682_v42 }
  0xe7   : > { %1690 = vmatprep.subr.mxu0 %v6946_v20  ;;  %1788 = vmatprep.subr.mxu1 %v6946_v20 }
  0xe8   : > { %1693 = vmatpush2.msra.mxu0 %v7600_v44  ;;  %1790 = vmatpush2.msra.mxu1 %v9683_v39 }
  0xe9   : > { %1694 = vmatprep.subr.mxu0 %v6946_v20  ;;  %1791 = vmatprep.subr.mxu1 %v6946_v20 }
  0xea   : > { %1697 = vmatpush2.msra.mxu0 %v7616_v62  ;;  %1793 = vmatpush2.msra.mxu1 %v7562_v60 }
  0xeb   : > { %1698 = vmatprep.subr.mxu0 %v6946_v20  ;;  %1794 = vmatprep.subr.mxu1 %v6946_v20 }
  0xec   : > { %1701 = vmatpush2.msra.mxu0 %v7638_v1  ;;  %1796 = vmatpush2.msra.mxu1 %v7575_v32 }
  0xed   : > { %1702 = vmatprep.subr.mxu0 %v6946_v20  ;;  %1797 = vmatprep.subr.mxu1 %v6946_v20 }
  0xee   : > { %1705 = vmatpush2.msra.mxu0 %v7648_v27  ;;  %1708 = vmatprep.mubr.f32.mxu0 %v7624_v19 }
  0xef   : > { %1799 = vmatpush2.msra.mxu1 %v7588_v30  ;;  %1711 = vmatmul.mubr.f32.vlgmr.msra.gmra.mxu0 %v7633_v36  ;;  %v6371_v36 = vld [vmem:[%s7254_s18 + $0x158] sm:$0xff] }
  0xf0   : > { %1800 = vmatprep.subr.mxu1 %v6946_v20  ;;  %1818 = vmatprep.subr.mxu0 %v6946_v20 }
  0xf1   : > { %1802 = vmatpush2.msra.mxu1 %v7609_v23  ;;  %1822 = vmatpush1.msra.mxu0 %v9684_v25  ;;  %v9689_v25 = vand.u32 4294901760, %v7334_v56  ;;  %v9697_v56 = vand.u32 4294901760, %v7443_v43  ;;  %v762_v43 = vld [vmem:[%s7257_s21] sm:$0xff] }
  0xf2   : > { %1803 = vmatprep.subr.mxu1 %v6946_v20  ;;  %1823 = vmatprep.subr.mxu0 %v6946_v20 }
  0xf3   : > { %1805 = vmatpush2.msra.mxu1 %v7621_v41  ;;  %1809 = vmatprep.mubr.f32.mxu1 %v9685_v57  ;;  %v6372_v57 = vld [vmem:[%s7254_s18 + $0x160] sm:$0xff] }
  0xf4   : > { %1827 = vmatpush1.msra.mxu0 %v9686_v50  ;;  %1813 = vmatmul.mubr.f32.vlgmr.msra.gmra.mxu1 %v9687_v54 }
  0xf5   : > { %1828 = vmatprep.subr.mxu0 %v6946_v20  ;;  %1968 = vmatprep.subr.mxu1 %v6946_v20 }
  0xf6   : > { %1832 = vmatpush1.msra.mxu0 %v9688_v48  ;;  %1970 = vmatpush1.msra.mxu1 %v7297_v40  ;;  %v9691_v40 = vand.u32 4294901760, %v7367_v4  ;;  %v9701_v4 = vand.u32 4294901760, %v7500_v46 }
  0xf7   : > { %1833 = vmatprep.subr.mxu0 %v6946_v20  ;;  %1971 = vmatprep.subr.mxu1 %v6946_v20 }
  0xf8   : > { %1837 = vmatpush1.msra.mxu0 %v9689_v25  ;;  %1973 = vmatpush1.msra.mxu1 %v7302_v45  ;;  %v9692_v45 = vand.u32 4294901760, %v7380_v9  ;;  %v9703_v9 = vand.u32 4294901760, %v7533_v35 }
  0xf9   : > { %1838 = vmatprep.subr.mxu0 %v6946_v20  ;;  %1974 = vmatprep.subr.mxu1 %v6946_v20 }
  0xfa   : > { %1842 = vmatpush1.msra.mxu0 %v9690_v51  ;;  %1976 = vmatpush1.msra.mxu1 %v7306_v47  ;;  %v9693_v47 = vand.u32 4294901760, %v7395_v15  ;;  %v9704_v15 = vand.u32 4294901760, %v9680_v33 }
  0xfb   : > { %1843 = vmatprep.subr.mxu0 %v6946_v20  ;;  %1977 = vmatprep.subr.mxu1 %v6946_v20 }
  0xfc   : > { %1847 = vmatpush1.msra.mxu0 %v9691_v40  ;;  %1979 = vmatpush1.msra.mxu1 %v7313_v49  ;;  %v9694_v49 = vand.u32 4294901760, %v7408_v22  ;;  %v9706_v22 = vand.u32 4294901760, %v7554_v37 }
  0xfd   : > { %1848 = vmatprep.subr.mxu0 %v6946_v20  ;;  %1980 = vmatprep.subr.mxu1 %v6946_v20 }
  0xfe   : > { %1852 = vmatpush1.msra.mxu0 %v9692_v45  ;;  %1982 = vmatpush1.msra.mxu1 %v7330_v55  ;;  %v9696_v55 = vand.u32 4294901760, %v7436_v38  ;;  %v9710_v38 = vand.u32 4294901760, %v7586_v58 }
  0xff   : > { %1853 = vmatprep.subr.mxu0 %v6946_v20  ;;  %1983 = vmatprep.subr.mxu1 %v6946_v20 }
 0x100   : > { %1857 = vmatpush1.msra.mxu0 %v9693_v47  ;;  %1985 = vmatpush1.msra.mxu1 %v7340_v59  ;;  %v9698_v59 = vand.u32 4294901760, %v7463_v6  ;;  %v7937_v6 = vand.u32 4294901760, %v762_v43 }
 0x101   : > { %1858 = vmatprep.subr.mxu0 %v6946_v20  ;;  %1986 = vmatprep.subr.mxu1 %v6946_v20 }
 0x102   : > { %1862 = vmatpush1.msra.mxu0 %v9694_v49  ;;  %1988 = vmatpush1.msra.mxu1 %v7354_v0  ;;  %v9700_v0 = vand.u32 4294901760, %v7482_v21  ;;  %9714 = vst [vmem:[#allocation25_spill] sm:$0xff] %v7937_v6  ;;  %v6352_v49 = vld [vmem:[%s7252_s10 + $0x18] sm:$0x3] }
 0x103   : > { %1863 = vmatprep.subr.mxu0 %v6946_v20  ;;  %1989 = vmatprep.subr.mxu1 %v6946_v20 }
 0x104   : > { %1867 = vmatpush1.msra.mxu0 %v9695_v52  ;;  %1991 = vmatpush1.msra.mxu1 %v7369_v5  ;;  %v9702_v5 = vand.u32 4294901760, %v7516_v14 }
 0x105   : > { %1868 = vmatprep.subr.mxu0 %v6946_v20  ;;  %1992 = vmatprep.subr.mxu1 %v6946_v20 }
 0x106   : > { %1872 = vmatpush1.msra.mxu0 %v9696_v55  ;;  %1994 = vmatpush1.msra.mxu1 %v7383_v11  ;;  %v764_v11 = vld [vmem:[%s7257_s21 + $0x10] sm:$0xff] }
 0x107   : > { %1873 = vmatprep.subr.mxu0 %v6946_v20  ;;  %1995 = vmatprep.subr.mxu1 %v6946_v20 }
 0x108   : > { %1877 = vmatpush1.msra.mxu0 %v9697_v56  ;;  %1997 = vmatpush1.msra.mxu1 %v7398_v17  ;;  %v7902_v17 = vand.u32 4294901760, %v764_v11  ;;  %v2577_v56 = vsel %vm776_vm1, %v6352_v49, 0 }
 0x109   : > { %1878 = vmatprep.subr.mxu0 %v6946_v20  ;;  %1998 = vmatprep.subr.mxu1 %v6946_v20 }
 0x10a   : > { %1882 = vmatpush1.msra.mxu0 %v9698_v59  ;;  %2000 = vmatpush1.msra.mxu1 %v7411_v24  ;;  %9705 = vst [vmem:[#allocation12_spill] sm:$0xff] %v7902_v17  ;;  %v763_v24 = vld [vmem:[%s7257_s21 + $0x8] sm:$0xff]  ;;  %v7916_v31 = vsub.f32 %v764_v11, %v7902_v17  ;;  %s8738_s21 = scalar_lea.vmem %s9528_s7, %s6839_s8 }
 0x10b   : > { %1883 = vmatprep.subr.mxu0 %v6946_v20  ;;  %2001 = vmatprep.subr.mxu1 %v6946_v20 }
 0x10c   : > { %1887 = vmatpush1.msra.mxu0 %v9699_v63  ;;  %2003 = vmatpush1.msra.mxu1 %v7416_v26  ;;  %v9707_v26 = vand.u32 4294901760, %v7573_v12  ;;  %9708 = vst [vmem:[#allocation15_spill] sm:$0xff] %v7916_v31  ;;  %v6351_v63 = vld [vmem:[%s7252_s10 + $0x10] sm:$0xff] }
 0x10d   : > { %1888 = vmatprep.subr.mxu0 %v6946_v20  ;;  %2004 = vmatprep.subr.mxu1 %v6946_v20 }
 0x10e   : > { %1892 = vmatpush1.msra.mxu0 %v9700_v0  ;;  %2006 = vmatpush1.msra.mxu1 %v7428_v34  ;;  %v7918_v34 = vand.u32 4294901760, %v763_v24  ;;  %v8026_v0 = vand.u32 4294901760, %v2577_v56 }
 0x10f   : > { %1893 = vmatprep.subr.mxu0 %v6946_v20  ;;  %2007 = vmatprep.subr.mxu1 %v6946_v20 }
 0x110   : > { %1897 = vmatpush1.msra.mxu0 %v9701_v4  ;;  %2009 = vmatpush1.msra.mxu1 %v7450_v53  ;;  %9709 = vst [vmem:[#allocation13_spill] sm:$0xff] %v7918_v34  ;;  %v9711_v53 = vand.u32 4294901760, %v7600_v44  ;;  %v7935_v58 = vsub.f32 %v763_v24, %v7918_v34 }
 0x111   : > { %1910 = vmatprep.subr.mxu0 %v6946_v20  ;;  %2010 = vmatprep.subr.mxu1 %v6946_v20 }
 0x112   : > { %1914 = vmatpush2.msra.mxu0 %v9702_v5  ;;  %2012 = vmatpush1.msra.mxu1 %v7455_v61  ;;  %v7932_v61 = vand.u32 4294901760, %v7916_v31  ;;  %9713 = vst [vmem:[#allocation16_spill] sm:$0xff] %v7935_v58  ;;  %v7952_v35 = vand.u32 4294901760, %v7935_v58  ;;  %v8029_v5 = vand.u32 4294901760, %v6351_v63 }
 0x113   : > { %1915 = vmatprep.subr.mxu0 %v6946_v20  ;;  %2013 = vmatprep.subr.mxu1 %v6946_v20 }
 0x114   : > { %1919 = vmatpush2.msra.mxu0 %v9703_v9  ;;  %2015 = vmatpush1.msra.mxu1 %v9679_v10  ;;  %9712 = vst [vmem:[#allocation14_spill] sm:$0xff] %v7932_v61  ;;  %v2202_v21 = vsub.f32 %v7916_v31, %v7932_v61  ;;  %9717 = vst [vmem:[#allocation26_spill] sm:$0xff] %v7952_v35  ;;  %v2209_v46 = vsub.f32 %v7935_v58, %v7952_v35 }
 0x115   : > { %1920 = vmatprep.subr.mxu0 %v6946_v20  ;;  %2028 = vmatprep.subr.mxu1 %v6946_v20  ;;  %v8034_v9 = vsub.f32 %v2577_v56, %v8026_v0  ;;  %v8041_v11 = vsub.f32 %v6351_v63, %v8029_v5 }
 0x116   : > { %1924 = vmatpush2.msra.mxu0 %v9704_v15  ;;  %2030 = vmatpush2.msra.mxu1 %v9681_v7 }
 0x117   : > { %1925 = vmatprep.subr.mxu0 %v6946_v20  ;;  %2031 = vmatprep.subr.mxu1 %v6946_v20  ;;  %v2687_v15 = vand.u32 4294901760, %v8034_v9 }
 0x118   : > { %1929 = vmatpush2.msra.mxu0 %v9706_v22  ;;  %2033 = vmatpush2.msra.mxu1 %v7503_v2  ;;  %v2694_v22 = vand.u32 4294901760, %v8041_v11 }
 0x119   : > { %1930 = vmatprep.subr.mxu0 %v6946_v20  ;;  %2034 = vmatprep.subr.mxu1 %v6946_v20  ;;  %v2688_v24 = vsub.f32 %v8034_v9, %v2687_v15 }
 0x11a   : > { %1934 = vmatpush2.msra.mxu0 %v9707_v26  ;;  %2036 = vmatpush2.msra.mxu1 %v7509_v8  ;;  %v9715_v8 = vand.u32 4294901760, %v7616_v62  ;;  %v2695_v26 = vsub.f32 %v8041_v11, %v2694_v22 }
 0x11b   : > { %1935 = vmatprep.subr.mxu0 %v6946_v20  ;;  %2037 = vmatprep.subr.mxu1 %v6946_v20 }
 0x11c   : > { %1939 = vmatpush2.msra.mxu0 %v9710_v38  ;;  %2039 = vmatpush2.msra.mxu1 %v9682_v42  ;;  %v2689_v38 = vand.u32 4294901760, %v2688_v24 }
 0x11d   : > { %1940 = vmatprep.subr.mxu0 %v6946_v20  ;;  %2040 = vmatprep.subr.mxu1 %v6946_v20 }
 0x11e   : > { %1944 = vmatpush2.msra.mxu0 %v9711_v53  ;;  %2042 = vmatpush2.msra.mxu1 %v9683_v39  ;;  %v6369_v53 = vld [vmem:[%s7254_s18 + $0x148] sm:$0xff] }
 0x11f   : > { %1945 = vmatprep.subr.mxu0 %v6946_v20  ;;  %2043 = vmatprep.subr.mxu1 %v6946_v20 }
 0x120   : > { %1949 = vmatpush2.msra.mxu0 %v9715_v8  ;;  %2045 = vmatpush2.msra.mxu1 %v7562_v60  ;;  %v7955_v60 = vsub.f32 %v762_v43, %v7937_v6  ;;  %v2696_v43 = vand.u32 4294901760, %v2695_v26  ;;  %v6368_v8 = vld [vmem:[%s7254_s18 + $0x140] sm:$0xff] }
 0x121   : > { %1950 = vmatprep.subr.mxu0 %v6946_v20  ;;  %2046 = vmatprep.subr.mxu1 %v6946_v20  ;;  %v6360_v26 = vld [vmem:[%s7254_s18 + $0x100] sm:$0xff] }
 0x122   : > { %1954 = vmatpush2.msra.mxu0 %v9716_v18  ;;  %2048 = vmatpush2.msra.mxu1 %v7575_v32  ;;  %9718 = vst [vmem:[#allocation27_spill] sm:$0xff] %v7955_v60  ;;  %v7965_v32 = vand.u32 4294901760, %v2202_v21  ;;  %v8073_v18 = vand.u32 4294901760, %v6369_v53  ;;  %v6367_v21 = vld [vmem:[%s7254_s18 + $0x138] sm:$0xff] }
 0x123   : > { %1955 = vmatprep.subr.mxu0 %v6946_v20  ;;  %2049 = vmatprep.subr.mxu1 %v6946_v20 }
 0x124   : > { %1959 = vmatpush2.msra.mxu0 %v1578_v16  ;;  %1961 = vmatprep.mubr.f32.mxu0 %v7596_v13  ;;  %9719 = vst [vmem:[#allocation28_spill] sm:$0xff] %v7965_v32  ;;  %v7971_v16 = vand.u32 4294901760, %v7955_v60 }
 0x125   : > { %2051 = vmatpush2.msra.mxu1 %v7588_v30  ;;  %1963 = vmatmul.mubr.f32.vlgmr.msra.gmra.mxu0 %v7605_v28  ;;  %v7981_v30 = vand.u32 4294901760, %v2209_v46  ;;  %v9724_v46 = vld [vmem:[#allocation8_spill] sm:$0xff] }
 0x126   : > { %2052 = vmatprep.subr.mxu1 %v6946_v20  ;;  %2059 = vmatprep.mubr.f32.mxu1 %v7596_v13  ;;  %9720 = vst [vmem:[#allocation29_spill] sm:$0xff] %v7971_v16  ;;  %v2216_v2 = vsub.f32 %v7955_v60, %v7971_v16 }
 0x127   : > { %2054 = vmatpush2.msra.mxu1 %v7609_v23  ;;  %6587 = vmatprep.subr.mxu0 %v6946_v20  ;;  %9721 = vst [vmem:[#allocation30_spill] sm:$0xff] %v7981_v30 }
 0x128   : > { %2055 = vmatprep.subr.mxu1 %v6946_v20  ;;  %6588 = vmatpush3.xpose.msra.mxu0 %v7902_v17  ;;  %v7996_v14 = vand.u32 4294901760, %v2216_v2  ;;  %v8080_v2 = vand.u32 4294901760, %v6368_v8 }
 0x129   : > { %2057 = vmatpush2.msra.mxu1 %v7621_v41  ;;  %6589 = vmatprep.subr.mxu0 %v6946_v20  ;;  %v6347_v41 = vld [vmem:[%s8006_s23] ss:$0 sm:$0xff] }
 0x12a   : > { %2061 = vmatmul.mubr.f32.vlgmr.msra.gmra.mxu1 %v7605_v28  ;;  %6596 = vmatprep.subr.mxu1 %v6946_v20  ;;  %9722 = vst [vmem:[#allocation31_spill] sm:$0xff] %v7996_v14 }
 0x12b   : > { %6597 = vmatpush3.xpose.msra.mxu1 %v7965_v32  ;;  %6602 = vmatprep.mubr.msk.f32.mxu1 %vm6947_vm0, %v6946_v20 }
 0x12c   : > { %6598 = vmatprep.subr.mxu1 %v6946_v20  ;;  %6590 = vmatpush3.xpose.msra.mxu0 %v7918_v34 }
 0x12d   : > { %6591 = vmatprep.subr.mxu0 %v6946_v20  ;;  %6593 = vmatprep.mubr.msk.f32.mxu0 %vm6947_vm0, %v6946_v20 }
 0x12f   : > { %6599 = vmatpush3.xpose.msra.mxu1 %v7981_v30  ;;  %v6374_v30 = vld [vmem:[%s7254_s18 + $0x170] sm:$0xff] }
 0x130   : > { %6600 = vmatprep.subr.mxu1 %v6946_v20  ;;  %6592 = vmatpush3.xpose.msra.mxu0 %v7937_v6 }
 0x131   : > { %6605 = vmatprep.subr.mxu0 %v6946_v20 }
 0x133   : > { %6601 = vmatpush3.xpose.msra.mxu1 %v7996_v14  ;;  %v6375_v14 = vld [vmem:[%s7254_s18 + $0x178] sm:$0xff] }
 0x134   : > { %6614 = vmatprep.subr.mxu1 %v6946_v20 }
 0x139   : > { %v853_v37 = vpop.f32.mrf.mxu0 }
 0x13a   : > { %v854_v12 = vadd.f32 %v6347_v41, %v853_v37  ;;  %v6366_v41 = vld [vmem:[%s7254_s18 + $0x130] sm:$0xff]  ;;  %v8088_v37 = vsub.f32 %v6369_v53, %v8073_v18  ;;  %v6359_v53 = vld [vmem:[%s7254_s18 + $0xf8] sm:$0xff] }
 0x13b   : > { %v6551_v44 = vpop.f32.mrf.mxu0 }
 0x13c   : > { %v934_v62 = vpop.f32.mrf.mxu1  ;;  %v6365_v44 = vld [vmem:[%s7254_s18 + $0x128] sm:$0xff] }
 0x13d   : > { %v935_v23 = vadd.f32 %v934_v62, %v854_v12  ;;  %v8090_v12 = vand.u32 4294901760, %v6367_v21  ;;  %v9725_v62 = vld [vmem:[#allocation10_spill] sm:$0xff] }
 0x13e   : > { %v1010_v1 = vpop.f32.mrf.mxu0  ;;  %v6558_v27 = vpop.f32.mrf.mxu1 }
 0x13f   : > { %v1011_v10 = vadd.f32 %v1010_v1, %v935_v23  ;;  %v8099_v23 = vsub.f32 %v6368_v8, %v8080_v2  ;;  %v8101_v1 = vand.u32 4294901760, %v6366_v41  ;;  %v6364_v27 = vld [vmem:[%s7254_s18 + $0x120] sm:$0xff] }
 0x140   : > { %v6565_v33 = vpop.f32.mrf.mxu0 }
 0x141   : > { %v8111_v33 = vsub.f32 %v6367_v21, %v8090_v12 }
 0x142   : > { %v1085_v7 = vpop.f32.mrf.mxu1 }
 0x143   : > { %v1086_v42 = vadd.f32 %v1085_v7, %v1011_v10  ;;  %v9573_v10 = vand.u32 4294901760, %v8088_v37  ;;  %v8113_v7 = vand.u32 4294901760, %v6365_v44  ;;  %v9569_v49 = vand.u32 4294901760, %v8111_v33 }
 0x144   : > { %v1162_v39 = vpop.f32.mrf.mxu0  ;;  %v6572_v50 = vpop.f32.mrf.mxu1 }
 0x145   : > { %v1163_v48 = vadd.f32 %v1162_v39, %v1086_v42  ;;  %v6363_v42 = vld [vmem:[%s7254_s18 + $0x118] sm:$0xff]  ;;  %v8118_v39 = vand.u32 4294901760, %v6364_v27 }
 0x146   : > { %v6579_v25 = vpop.f32.mrf.mxu0  ;;  %v9726_v50 = vld [vmem:[#allocation11_spill] sm:$0xff] }
 0x147   : > { %v8124_v25 = vsub.f32 %v6366_v41, %v8101_v1  ;;  %v8145_v56 = vsub.f32 %v6364_v27, %v8118_v39  ;;  %v6358_v27 = vld [vmem:[%s7254_s18 + $0xf0] sm:$0xff] }
 0x148   : > { %v1235_v51 = vpop.f32.mrf.mxu1 }
 0x149   : > { %v8010_v40 = vadd.f32 %v1235_v51, %v1163_v48  ;;  %v9571_v48 = vand.u32 4294901760, %v8099_v23  ;;  %v8129_v51 = vand.u32 4294901760, %v6363_v42 }
 0x14a   : > { %v6586_v45 = vpop.f32.mrf.mxu1 }
 0x14b   : > { %9723 = vst [vmem:[#allocation32_spill] sm:$0xff] %v8010_v40  ;;  %v8013_v47 = vand.u32 4294901760, %v8010_v40  ;;  %v6362_v45 = vld [vmem:[%s7254_s18 + $0x110] sm:$0xff]  ;;  %v3185_v63 = vsub.f32 %v8099_v23, %v9571_v48  ;;  %v8211_v48 = vand.u32 4294901760, %v6358_v27 }
 0x14d   : > { %v2163_v52 = vsub.f32 %v8010_v40, %v8013_v47  ;;  %6603 = vmatmul.mubr.f32.vlgmr.msra.gmra.mxu1 %v8013_v47  ;;  %v3186_v8 = vand.u32 4294901760, %v3185_v63  ;;  %v8198_v63 = vand.u32 4294901760, %v6359_v53  ;;  %v8344_v40 = vand.u32 4294901760, %v6374_v30 }
 0x14e   : > { %6615 = vmatpush3.xpose.msra.mxu1 %v7902_v17  ;;  %6620 = vmatprep.mubr.msk.f32.mxu1 %vm6947_vm0, %v6946_v20 }
 0x14f   : > { %v2164_v55 = vand.u32 4294901760, %v2163_v52  ;;  %6616 = vmatprep.subr.mxu1 %v6946_v20 }
 0x151   : > { %v2165_v59 = vsub.f32 %v2163_v52, %v2164_v55 }
 0x152   : > { %6617 = vmatpush3.xpose.msra.mxu1 %v7918_v34 }
 0x153   : > { %6618 = vmatprep.subr.mxu1 %v6946_v20  ;;  %v2166_v4 = vand.u32 4294901760, %v2165_v59  ;;  %v9727_v59 = vld [vmem:[#allocation9_spill] sm:$0xff] }
 0x155   : > { %6594 = vmatmul.mubr.f32.vlgmr.msra.gmra.mxu0 %v2166_v4  ;;  %v8153_v4 = vand.u32 4294901760, %v6362_v45 }
 0x156   : > { %6606 = vmatpush3.xpose.msra.mxu0 %v7916_v31  ;;  %6619 = vmatpush3.xpose.msra.mxu1 %v7937_v6  ;;  %v6376_v31 = vld [vmem:[%s7254_s18 + $0x180] sm:$0xff] }
 0x157   : > { %6607 = vmatprep.subr.mxu0 %v6946_v20  ;;  %6632 = vmatprep.subr.mxu1 %v6946_v20  ;;  %v8183_v41 = vsub.f32 %v6362_v45, %v8153_v4 }
 0x158   : > { %6611 = vmatprep.mubr.msk.f32.mxu0 %vm6947_vm0, %v6946_v20 }
 0x159   : > { %6621 = vmatmul.mubr.f32.vlgmr.msra.gmra.mxu1 %v2164_v55  ;;  %v6361_v55 = vld [vmem:[%s7254_s18 + $0x108] sm:$0xff] }
 0x15a   : > { %6608 = vmatpush3.xpose.msra.mxu0 %v7935_v58  ;;  %6633 = vmatpush3.xpose.msra.mxu1 %v7902_v17  ;;  %v8162_v24 = vand.u32 4294901760, %v6361_v55  ;;  %v6377_v58 = vld [vmem:[%s7254_s18 + $0x188] sm:$0xff]  ;;  %v8331_v17 = vand.u32 4294901760, %v6375_v14 }
 0x15b   : > { %6609 = vmatprep.subr.mxu0 %v6946_v20  ;;  %6634 = vmatprep.subr.mxu1 %v6946_v20 }
 0x15c   : > { %6638 = vmatprep.mubr.msk.f32.mxu1 %vm6947_vm0, %v6946_v20 }
 0x15e   : > { %6610 = vmatpush3.xpose.msra.mxu0 %v7955_v60  ;;  %6635 = vmatpush3.xpose.msra.mxu1 %v7918_v34  ;;  %v8318_v34 = vand.u32 4294901760, %v6376_v31 }
 0x15f   : > { %6623 = vmatprep.subr.mxu0 %v6946_v20  ;;  %6636 = vmatprep.subr.mxu1 %v6946_v20 }
 0x161   : > { %6612 = vmatmul.mubr.f32.vlgmr.msra.gmra.mxu0 %v2163_v52  ;;  %v8139_v52 = vsub.f32 %v6365_v44, %v8113_v7  ;;  %v8191_v44 = vsub.f32 %v6361_v55, %v8162_v24 }
 0x162   : > { %6624 = vmatpush3.xpose.msra.mxu0 %v7932_v61  ;;  %6637 = vmatpush3.xpose.msra.mxu1 %v7937_v6  ;;  %v6378_v61 = vld [vmem:[%s7254_s18 + $0x190] sm:$0xff]  ;;  %v8305_v6 = vand.u32 4294901760, %v6377_v58 }
 0x163   : > { %6625 = vmatprep.subr.mxu0 %v6946_v20  ;;  %6629 = vmatprep.mubr.msk.f32.mxu0 %vm6947_vm0, %v6946_v20 }
 0x164   : > { %6648 = vmatprep.subr.mxu1 %v6946_v20 }
 0x165   : > { %6639 = vmatmul.mubr.f32.vlgmr.msra.gmra.mxu1 %v8013_v47 }
 0x166   : > { %6626 = vmatpush3.xpose.msra.mxu0 %v7952_v35  ;;  %6649 = vmatpush3.msra.mxu1 %v2689_v38 }
 0x167   : > { %6627 = vmatprep.subr.mxu0 %v6946_v20  ;;  %6650 = vmatprep.subr.mxu1 %v6946_v20 }
 0x168   : > { %6651 = vmatpush3.msra.mxu1 %v2696_v43  ;;  %6652 = vmatprep.mubr.msk.f32.mxu1 %vm6947_vm0, %v6946_v20  ;;  %v9572_v43 = vand.u32 4294901760, %v8145_v56 }
 0x169   : > { %6653 = vmatmul.mubr.f32.vlgmr.msra.gmra.mxu1 %v9724_v46  ;;  %6662 = vmatprep.subr.mxu1 %v6946_v20 }
 0x16a   : > { %6628 = vmatpush3.xpose.msra.mxu0 %v7971_v16  ;;  %6663 = vmatpush3.msra.mxu1 %v8026_v0  ;;  %v3213_v55 = vsub.f32 %v8145_v56, %v9572_v43  ;;  %v8222_v43 = vsub.f32 %v6359_v53, %v8198_v63 }
 0x16b   : > { %6641 = vmatprep.subr.mxu0 %v6946_v20  ;;  %6664 = vmatprep.subr.mxu1 %v6946_v20 }
 0x16c   : > { %6665 = vmatpush3.msra.mxu1 %v8029_v5  ;;  %6666 = vmatprep.mubr.msk.f32.mxu1 %vm6947_vm0, %v6946_v20 }
 0x16d   : > { %6630 = vmatmul.mubr.f32.vlgmr.msra.gmra.mxu0 %v8013_v47  ;;  %6667 = vmatmul.mubr.f32.vlgmr.msra.gmra.mxu1 %v9725_v62  ;;  %v3178_v47 = vsub.f32 %v8088_v37, %v9573_v10  ;;  %v8238_v62 = vsub.f32 %v6358_v27, %v8211_v48 }
 0x16e   : > { %6642 = vmatpush3.msra.mxu0 %v8026_v0  ;;  %6645 = vmatprep.mubr.msk.f32.mxu0 %vm6947_vm0, %v6946_v20 }
 0x16f   : > { %6643 = vmatprep.subr.mxu0 %v6946_v20  ;;  %6676 = vmatprep.subr.mxu1 %v6946_v20  ;;  %v3179_v38 = vand.u32 4294901760, %v3178_v47 }
 0x170   : > { %6644 = vmatpush3.msra.mxu0 %v8029_v5  ;;  %6677 = vmatpush3.msra.mxu1 %v8026_v0  ;;  %v9568_v0 = vand.u32 4294901760, %v8124_v25 }
 0x171   : > { %6646 = vmatmul.mubr.f32.vlgmr.msra.gmra.mxu0 %v9726_v50  ;;  %6655 = vmatprep.subr.mxu0 %v6946_v20  ;;  %v6379_v50 = vld [vmem:[%s7254_s18 + $0x198] sm:$0x7f] }
 0x172   : > { %6656 = vmatpush3.msra.mxu0 %v8034_v9  ;;  %6659 = vmatprep.mubr.msk.f32.mxu0 %vm6947_vm0, %v6946_v20  ;;  %v3192_v9 = vsub.f32 %v8111_v33, %v9569_v49  ;;  %v3199_v21 = vsub.f32 %v8124_v25, %v9568_v0  ;;  %v6357_v0 = vld [vmem:[%s7254_s18 + $0xe8] sm:$0xff] }
 0x173   : > { %6657 = vmatprep.subr.mxu0 %v6946_v20  ;;  %6678 = vmatprep.subr.mxu1 %v6946_v20  ;;  %v8224_v10 = vand.u32 4294901760, %v6357_v0 }
 0x174   : > { %6658 = vmatpush3.msra.mxu0 %v8041_v11  ;;  %6679 = vmatpush3.msra.mxu1 %v8029_v5  ;;  %v8160_v5 = vsub.f32 %v6363_v42, %v8129_v51  ;;  %v8185_v11 = vand.u32 4294901760, %v6360_v26  ;;  %v3193_v47 = vand.u32 4294901760, %v3192_v9 }
 0x175   : > { %6660 = vmatmul.mubr.f32.vlgmr.msra.gmra.mxu0 %v9727_v59  ;;  %6669 = vmatprep.subr.mxu0 %v6946_v20  ;;  %v3214_v59 = vand.u32 4294901760, %v3213_v55  ;;  %v8251_v27 = vsub.f32 %v6357_v0, %v8224_v10  ;;  %v8292_v0 = vand.u32 4294901760, %v6378_v61 }
 0x176   : > { %6670 = vmatpush3.msra.mxu0 %v2687_v15  ;;  %6673 = vmatprep.mubr.msk.f32.mxu0 %vm6947_vm0, %v6946_v20  ;;  %v9570_v15 = vand.u32 4294901760, %v8139_v52 }
 0x177   : > { %6671 = vmatprep.subr.mxu0 %v6946_v20  ;;  %6680 = vmatprep.mubr.msk.f32.mxu1 %vm6947_vm0, %v6946_v20 }
 0x178   : > { %6672 = vmatpush3.msra.mxu0 %v2694_v22  ;;  %6681 = vmatmul.mubr.f32.vlgmr.msra.gmra.mxu1 %v9724_v46  ;;  %v9574_v22 = vand.u32 4294901760, %v8160_v5  ;;  %v3206_v45 = vsub.f32 %v8139_v52, %v9570_v15  ;;  %v8209_v15 = vsub.f32 %v6360_v26, %v8185_v11 }
 0x179   : > { %6674 = vmatmul.mubr.f32.vlgmr.msra.gmra.mxu0 %v9724_v46  ;;  %3068 = vmatprep.subr.mxu0 %v6946_v20  ;;  %v6354_v46 = vld [vmem:[%s7254_s18 + $0xd0] sm:$0xff] }
 0x17a   : > { %3070 = vmatpush1.msra.mxu0 %v8073_v18  ;;  %3174 = vmatprep.subr.mxu1 %v6946_v20  ;;  %v1384_v42 = vpop.f32.mrf.mxu0  ;;  %v3207_v26 = vand.u32 4294901760, %v3206_v45 }
 0x17b   : > { %3071 = vmatprep.subr.mxu0 %v6946_v20  ;;  %3180 = vmatpush1.msra.mxu1 %v3179_v38  ;;  %v3200_v38 = vand.u32 4294901760, %v3199_v21  ;;  %v6356_v21 = vld [vmem:[%s7254_s18 + $0xe0] sm:$0xff] }
 0x17c   : > { %3073 = vmatpush1.msra.mxu0 %v8080_v2  ;;  %3181 = vmatprep.subr.mxu1 %v6946_v20  ;;  %v1386_v49 = vpop.f32.mrf.mxu0  ;;  %v8240_v16 = vand.u32 4294901760, %v6356_v21 }
 0x17d   : > { %3074 = vmatprep.subr.mxu0 %v6946_v20  ;;  %3187 = vmatpush1.msra.mxu1 %v3186_v8  ;;  %v3220_v49 = vsub.f32 %v8160_v5, %v9574_v22  ;;  %v6355_v22 = vld [vmem:[%s7254_s18 + $0xd8] sm:$0xff] }
 0x17e   : > { %3076 = vmatpush1.msra.mxu0 %v8090_v12  ;;  %3188 = vmatprep.subr.mxu1 %v6946_v20  ;;  %v8253_v45 = vand.u32 4294901760, %v6355_v22  ;;  %v8266_v35 = vsub.f32 %v6356_v21, %v8240_v16 }
 0x17f   : > { %3077 = vmatprep.subr.mxu0 %v6946_v20  ;;  %3194 = vmatpush1.msra.mxu1 %v3193_v47  ;;  %v1586_v9 = vpop.f32.mrf.mxu1  ;;  %v9729_v47 = vand.u32 4294901760, %v8183_v41 }
 0x180   : > { %3079 = vmatpush1.msra.mxu0 %v8101_v1  ;;  %3195 = vmatprep.subr.mxu1 %v6946_v20  ;;  %v8230_v8 = vadd.f32 %v1586_v9, %v1384_v42  ;;  %v3221_v42 = vand.u32 4294901760, %v3220_v49  ;;  %v8258_v49 = vand.u32 4294901760, %v6354_v46  ;;  %v8279_v21 = vsub.f32 %v6355_v22, %v8253_v45 }
 0x181   : > { %3080 = vmatprep.subr.mxu0 %v6946_v20  ;;  %3201 = vmatpush1.msra.mxu1 %v3200_v38  ;;  %v3227_v53 = vsub.f32 %v8183_v41, %v9729_v47  ;;  %v1588_v55 = vpop.f32.mrf.mxu1  ;;  %v9730_v38 = vand.u32 4294901760, %v8191_v44  ;;  %v8316_v22 = vsub.f32 %v6378_v61, %v8292_v0  ;;  %v8329_v61 = vsub.f32 %v6377_v58, %v8305_v6 }
 0x182   : > { %9728 = vst [vmem:[#allocation33_spill] sm:$0xff] %v8230_v8  ;;  %3082 = vmatpush1.msra.mxu0 %v8113_v7  ;;  %3202 = vmatprep.subr.mxu1 %v6946_v20  ;;  %v3066_v55 = vsel %vm1278_vm3, %v6379_v50, 0  ;;  %9731 = vst [vmem:[#allocation34_spill] sm:$0xff] %v8258_v49  ;;  %v8284_v60 = vsub.f32 %v6354_v46, %v8258_v49  ;;  %v8342_v58 = vsub.f32 %v6376_v31, %v8318_v34 }
 0x183   : > { %v3234_v9 = vsub.f32 %v8191_v44, %v9730_v38  ;;  %3083 = vmatprep.subr.mxu0 %v6946_v20  ;;  %3208 = vmatpush1.msra.mxu1 %v3207_v26  ;;  %v3228_v26 = vand.u32 4294901760, %v3227_v53  ;;  %v9732_v38 = vand.u32 4294901760, %v8209_v15  ;;  %v8270_v50 = vand.u32 4294901760, %v3066_v55  ;;  %9737 = vst [vmem:[#allocation35_spill] sm:$0xff] %v8316_v22  ;;  %9739 = vst [vmem:[#allocation36_spill] sm:$0xff] %v8329_v61 }
 0x184   : > { %3085 = vmatpush1.msra.mxu0 %v8118_v39  ;;  %3209 = vmatprep.subr.mxu1 %v6946_v20  ;;  %v9733_v53 = vand.u32 4294901760, %v8222_v43  ;;  %9741 = vst [vmem:[#allocation37_spill] sm:$0xff] %v8342_v58  ;;  %v8355_v31 = vsub.f32 %v6375_v14, %v8331_v17  ;;  %v8368_v14 = vsub.f32 %v6374_v30, %v8344_v40  ;;  %v8382_v30 = vand.u32 4294901760, %v6371_v36 }
 0x185   : > { %3086 = vmatprep.subr.mxu0 %v6946_v20  ;;  %3215 = vmatpush1.msra.mxu1 %v3214_v59  ;;  %v3241_v47 = vsub.f32 %v8209_v15, %v9732_v38  ;;  %v3235_v59 = vand.u32 4294901760, %v3234_v9  ;;  %v9734_v9 = vand.u32 4294901760, %v8238_v62  ;;  %v8297_v46 = vsub.f32 %v3066_v55, %v8270_v50 }
 0x186   : > { %3088 = vmatpush1.msra.mxu0 %v8129_v51  ;;  %3216 = vmatprep.subr.mxu1 %v6946_v20  ;;  %v3248_v38 = vsub.f32 %v8222_v43, %v9733_v53  ;;  %v9740_v55 = vand.u32 4294901760, %v8284_v60  ;;  %9745 = vst [vmem:[#allocation38_spill] sm:$0xff] %v8382_v30 }
 0x187   : > { %3089 = vmatprep.subr.mxu0 %v6946_v20  ;;  %3222 = vmatpush1.msra.mxu1 %v3221_v42  ;;  %v3242_v42 = vand.u32 4294901760, %v3241_v47  ;;  %v3255_v53 = vsub.f32 %v8238_v62, %v9734_v9  ;;  %v9742_v54 = vand.u32 4294901760, %v8297_v46 }
 0x188   : > { %3091 = vmatpush1.msra.mxu0 %v8153_v4  ;;  %3223 = vmatprep.subr.mxu1 %v6946_v20  ;;  %v3249_v47 = vand.u32 4294901760, %v3248_v38  ;;  %v9736_v38 = vand.u32 4294901760, %v8266_v35  ;;  %v3283_v32 = vsub.f32 %v8284_v60, %v9740_v55 }
 0x189   : > { %3092 = vmatprep.subr.mxu0 %v6946_v20  ;;  %3229 = vmatpush1.msra.mxu1 %v3228_v26  ;;  %v9735_v26 = vand.u32 4294901760, %v8251_v27  ;;  %v3302_v55 = vsub.f32 %v8297_v46, %v9742_v54  ;;  %v9743_v54 = vand.u32 4294901760, %v8316_v22 }
 0x18a   : > { %3094 = vmatpush1.msra.mxu0 %v8162_v24  ;;  %3230 = vmatprep.subr.mxu1 %v6946_v20  ;;  %v3284_v8 = vand.u32 4294901760, %v3283_v32 }
 0x18b   : > { %3095 = vmatprep.subr.mxu0 %v6946_v20  ;;  %3236 = vmatpush1.msra.mxu1 %v3235_v59  ;;  %v3262_v9 = vsub.f32 %v8251_v27, %v9735_v26  ;;  %v3256_v59 = vand.u32 4294901760, %v3255_v53  ;;  %v3269_v26 = vsub.f32 %v8266_v35, %v9736_v38  ;;  %v9738_v53 = vand.u32 4294901760, %v8279_v21 }
 0x18c   : > { %3097 = vmatpush1.msra.mxu0 %v8185_v11  ;;  %3237 = vmatprep.subr.mxu1 %v6946_v20  ;;  %v3303_v32 = vand.u32 4294901760, %v3302_v55 }
 0x18d   : > { %3098 = vmatprep.subr.mxu0 %v6946_v20  ;;  %3243 = vmatpush1.msra.mxu1 %v3242_v42  ;;  %v3263_v42 = vand.u32 4294901760, %v3262_v9  ;;  %v3276_v38 = vsub.f32 %v8279_v21, %v9738_v53  ;;  %v3270_v9 = vand.u32 4294901760, %v3269_v26  ;;  %v8370_v26 = vand.u32 4294901760, %v6372_v57 }
 0x18e   : > { %3100 = vmatpush1.msra.mxu0 %v8198_v63  ;;  %3244 = vmatprep.subr.mxu1 %v6946_v20 }
 0x18f   : > { %3101 = vmatprep.subr.mxu0 %v6946_v20  ;;  %3250 = vmatpush1.msra.mxu1 %v3249_v47  ;;  %v6373_v47 = vld [vmem:[%s7254_s18 + $0x168] sm:$0xff] }
 0x190   : > { %3103 = vmatpush1.msra.mxu0 %v8211_v48  ;;  %3251 = vmatprep.subr.mxu1 %v6946_v20  ;;  %v8357_v53 = vand.u32 4294901760, %v6373_v47 }
 0x191   : > { %3104 = vmatprep.subr.mxu0 %v6946_v20  ;;  %3257 = vmatpush1.msra.mxu1 %v3256_v59  ;;  %v3277_v59 = vand.u32 4294901760, %v3276_v38 }
 0x192   : > { %3106 = vmatpush1.msra.mxu0 %v8224_v10  ;;  %3258 = vmatprep.subr.mxu1 %v6946_v20  ;;  %v8380_v38 = vsub.f32 %v6373_v47, %v8357_v53  ;;  %v8393_v47 = vsub.f32 %v6372_v57, %v8370_v26 }
 0x193   : > { %3107 = vmatprep.subr.mxu0 %v6946_v20  ;;  %3264 = vmatpush1.msra.mxu1 %v3263_v42  ;;  %v3309_v42 = vsub.f32 %v8316_v22, %v9743_v54  ;;  %v6370_v22 = vld [vmem:[%s7254_s18 + $0x150] sm:$0xff]  ;;  %v8405_v54 = vsub.f32 %v6371_v36, %v8382_v30 }
 0x194   : > { %3109 = vmatpush1.msra.mxu0 %v8240_v16  ;;  %3265 = vmatprep.subr.mxu1 %v6946_v20 }
 0x195   : > { %3110 = vmatprep.subr.mxu0 %v6946_v20  ;;  %3271 = vmatpush1.msra.mxu1 %v3270_v9  ;;  %v9744_v9 = vand.u32 4294901760, %v8329_v61  ;;  %v3310_v55 = vand.u32 4294901760, %v3309_v42  ;;  %v9748_v42 = vand.u32 4294901760, %v8355_v31 }
 0x196   : > { %3112 = vmatpush1.msra.mxu0 %v8253_v45  ;;  %3272 = vmatprep.subr.mxu1 %v6946_v20 }
 0x197   : > { %3113 = vmatprep.subr.mxu0 %v6946_v20  ;;  %3278 = vmatpush1.msra.mxu1 %v3277_v59  ;;  %v3316_v19 = vsub.f32 %v8329_v61, %v9744_v9  ;;  %v9746_v59 = vand.u32 4294901760, %v8342_v58  ;;  %v8397_v61 = vand.u32 4294901760, %v6370_v22 }
 0x198   : > { %3115 = vmatpush1.msra.mxu0 %v8258_v49  ;;  %3279 = vmatprep.subr.mxu1 %v6946_v20  ;;  %v3330_v49 = vsub.f32 %v8355_v31, %v9748_v42 }
 0x199   : > { %3128 = vmatprep.subr.mxu0 %v6946_v20  ;;  %3285 = vmatpush1.msra.mxu1 %v3284_v8  ;;  %v3323_v9 = vsub.f32 %v8342_v58, %v9746_v59  ;;  %9747 = vst [vmem:[#allocation39_spill] sm:$0xff] %v8397_v61  ;;  %v3317_v8 = vand.u32 4294901760, %v3316_v19  ;;  %v9613_v59 = vand.u32 4294901760, %v8380_v38  ;;  %v9616_v58 = vand.u32 4294901760, %v8393_v47 }
 0x19a   : > { %3130 = vmatpush2.msra.mxu0 %v8270_v50  ;;  %3298 = vmatprep.subr.mxu1 %v6946_v20  ;;  %v8417_v36 = vsub.f32 %v6370_v22, %v8397_v61  ;;  %v3331_v42 = vand.u32 4294901760, %v3330_v49 }
 0x19b   : > { %3131 = vmatprep.subr.mxu0 %v6946_v20  ;;  %3304 = vmatpush2.msra.mxu1 %v3303_v32  ;;  %v3324_v57 = vand.u32 4294901760, %v3323_v9  ;;  %v9749_v32 = vand.u32 4294901760, %v8368_v14  ;;  %v9615_v9 = vand.u32 4294901760, %v8405_v54  ;;  %v3351_v22 = vsub.f32 %v8393_v47, %v9616_v58 }
 0x19c   : > { %3133 = vmatpush2.msra.mxu0 %v8292_v0  ;;  %3305 = vmatprep.subr.mxu1 %v6946_v20  ;;  %v9614_v49 = vand.u32 4294901760, %v8417_v36  ;;  %v2071_v58 = vlaneseq }
 0x19d   : > { %3134 = vmatprep.subr.mxu0 %v6946_v20  ;;  %3311 = vmatpush2.msra.mxu1 %v3310_v55  ;;  %v3337_v19 = vsub.f32 %v8368_v14, %v9749_v32  ;;  %v3344_v55 = vsub.f32 %v8380_v38, %v9613_v59  ;;  %v3358_v59 = vsub.f32 %v8405_v54, %v9615_v9 }
 0x19e   : > { %3136 = vmatpush2.msra.mxu0 %v8305_v6  ;;  %3312 = vmatprep.subr.mxu1 %v6946_v20 }
 0x19f   : > { %3137 = vmatprep.subr.mxu0 %v6946_v20  ;;  %3318 = vmatpush2.msra.mxu1 %v3317_v8  ;;  %v3338_v32 = vand.u32 4294901760, %v3337_v19  ;;  %v3345_v8 = vand.u32 4294901760, %v3344_v55  ;;  %v3365_v19 = vsub.f32 %v8417_v36, %v9614_v49  ;;  %v6948_v49 = vmov 1966171168  }
 0x1a0   : > { %3139 = vmatpush2.msra.mxu0 %v8318_v34  ;;  %3319 = vmatprep.subr.mxu1 %v6946_v20  ;;  %v2069_v9 = vunpack.c.l.s4 %v6948_v49 }
 0x1a1   : > { %3140 = vmatprep.subr.mxu0 %v6946_v20  ;;  %3325 = vmatpush2.msra.mxu1 %v3324_v57  ;;  %v3352_v57 = vand.u32 4294901760, %v3351_v22  ;;  %v3366_v55 = vand.u32 4294901760, %v3365_v19  ;;  %v9751_v19 = vld [vmem:[#allocation35_spill] sm:$0xff] }
 0x1a2   : > { %3142 = vmatpush2.msra.mxu0 %v8331_v17  ;;  %3326 = vmatprep.subr.mxu1 %v6946_v20 }
 0x1a3   : > { %3143 = vmatprep.subr.mxu0 %v6946_v20  ;;  %3332 = vmatpush2.msra.mxu1 %v3331_v42  ;;  %v3359_v42 = vand.u32 4294901760, %v3358_v59 }
 0x1a4   : > { %3145 = vmatpush2.msra.mxu0 %v8344_v40  ;;  %3333 = vmatprep.subr.mxu1 %v6946_v20 }
 0x1a5   : > { %3146 = vmatprep.subr.mxu0 %v6946_v20  ;;  %3339 = vmatpush2.msra.mxu1 %v3338_v32 }
 0x1a6   : > { %3148 = vmatpush2.msra.mxu0 %v8357_v53  ;;  %3340 = vmatprep.subr.mxu1 %v6946_v20 }
 0x1a7   : > { %3149 = vmatprep.subr.mxu0 %v6946_v20  ;;  %3346 = vmatpush2.msra.mxu1 %v3345_v8 }
 0x1a8   : > { %3151 = vmatpush2.msra.mxu0 %v8370_v26  ;;  %3347 = vmatprep.subr.mxu1 %v6946_v20 }
 0x1a9   : > { %3152 = vmatprep.subr.mxu0 %v6946_v20  ;;  %3353 = vmatpush2.msra.mxu1 %v3352_v57  ;;  %v9750_v57 = vld [vmem:[#allocation34_spill] sm:$0xff] }
 0x1aa   : > { %3154 = vmatpush2.msra.mxu0 %v8382_v30  ;;  %3354 = vmatprep.subr.mxu1 %v6946_v20 }
 0x1ab   : > { %3155 = vmatprep.subr.mxu0 %v6946_v20  ;;  %3360 = vmatpush2.msra.mxu1 %v3359_v42  ;;  %v9752_v42 = vld [vmem:[#allocation36_spill] sm:$0xff] }
 0x1ac   : > { %3157 = vmatpush2.msra.mxu0 %v8397_v61  ;;  %3163 = vmatprep.mubr.f32.mxu0 %v7683_v3 }
 0x1ad   : > { %3361 = vmatprep.subr.mxu1 %v6946_v20  ;;  %3376 = vmatprep.subr.mxu0 %v6946_v20 }
 0x1ae   : > { %3169 = vmatmul.mubr.f32.vlgmr.msra.gmra.mxu0 %v7689_v29  ;;  %3367 = vmatpush2.msra.mxu1 %v3366_v55  ;;  %v9753_v55 = vld [vmem:[#allocation37_spill] sm:$0xff] }
 0x1af   : > { %v8457_v59 = vpop.f32.mrf.mxu0  ;;  %3379 = vmatpush1.msra.mxu0 %v8088_v37  ;;  %3369 = vmatprep.mubr.f32.mxu1 %v7596_v13  ;;  %v9756_v29 = vld [vmem:[#allocation33_spill] sm:$0xff] }
 0x1b0   : > { %3380 = vmatprep.subr.mxu0 %v6946_v20  ;;  %3502 = vmatprep.subr.mxu1 %v6946_v20  ;;  %v1713_v3 = vadd.f32 %v8457_v59, %v9756_v29  ;;  %v9757_v13 = vld [vmem:[#allocation21_spill] sm:$0xff]  ;;  %v2072_v29 = vshrl.u32 %v2071_v58, 7 }
 0x1b1   : > { %3371 = vmatmul.mubr.f32.vlgmr.msra.gmra.mxu1 %v7605_v28  ;;  %3383 = vmatpush1.msra.mxu0 %v8099_v23  ;;  %v1714_v32 = vpop.f32.mrf.mxu0 }
 0x1b2   : > { %3504 = vmatpush1.msra.mxu1 %v8073_v18  ;;  %3384 = vmatprep.subr.mxu0 %v6946_v20  ;;  %v9754_v32 = vld [vmem:[#allocation19_spill] sm:$0xff] }
 0x1b3   : > { %3505 = vmatprep.subr.mxu1 %v6946_v20  ;;  %3387 = vmatpush1.msra.mxu0 %v8111_v33 }
 0x1b4   : > { %v8469_v22 = vpop.f32.mrf.mxu1  ;;  %3507 = vmatpush1.msra.mxu1 %v8080_v2  ;;  %3388 = vmatprep.subr.mxu0 %v6946_v20 }
 0x1b5   : > { %3508 = vmatprep.subr.mxu1 %v6946_v20  ;;  %3391 = vmatpush1.msra.mxu0 %v8124_v25  ;;  %v1815_v49 = vadd.f32 %v8469_v22, %v1713_v3 }
 0x1b6   : > { %3510 = vmatpush1.msra.mxu1 %v8090_v12  ;;  %3392 = vmatprep.subr.mxu0 %v6946_v20  ;;  %v1816_v8 = vpop.f32.mrf.mxu1 }
 0x1b7   : > { %3511 = vmatprep.subr.mxu1 %v6946_v20  ;;  %3395 = vmatpush1.msra.mxu0 %v8139_v52  ;;  %v9755_v8 = vld [vmem:[#allocation20_spill] sm:$0xff] }
 0x1b8   : > { %3513 = vmatpush1.msra.mxu1 %v8101_v1  ;;  %3396 = vmatprep.subr.mxu0 %v6946_v20 }
 0x1b9   : > { %3514 = vmatprep.subr.mxu1 %v6946_v20  ;;  %3399 = vmatpush1.msra.mxu0 %v8145_v56 }
 0x1ba   : > { %3516 = vmatpush1.msra.mxu1 %v8113_v7  ;;  %3400 = vmatprep.subr.mxu0 %v6946_v20 }
 0x1bb   : > { %3517 = vmatprep.subr.mxu1 %v6946_v20  ;;  %3403 = vmatpush1.msra.mxu0 %v8160_v5 }
 0x1bc   : > { %3519 = vmatpush1.msra.mxu1 %v8118_v39  ;;  %3404 = vmatprep.subr.mxu0 %v6946_v20 }
 0x1bd   : > { %3520 = vmatprep.subr.mxu1 %v6946_v20  ;;  %3407 = vmatpush1.msra.mxu0 %v8183_v41 }
 0x1be   : > { %3522 = vmatpush1.msra.mxu1 %v8129_v51  ;;  %3408 = vmatprep.subr.mxu0 %v6946_v20 }
 0x1bf   : > { %3523 = vmatprep.subr.mxu1 %v6946_v20  ;;  %3411 = vmatpush1.msra.mxu0 %v8191_v44 }
 0x1c0   : > { %3525 = vmatpush1.msra.mxu1 %v8153_v4  ;;  %3412 = vmatprep.subr.mxu0 %v6946_v20 }
 0x1c1   : > { %3526 = vmatprep.subr.mxu1 %v6946_v20  ;;  %3415 = vmatpush1.msra.mxu0 %v8209_v15 }
 0x1c2   : > { %3528 = vmatpush1.msra.mxu1 %v8162_v24  ;;  %3416 = vmatprep.subr.mxu0 %v6946_v20 }
 0x1c3   : > { %3529 = vmatprep.subr.mxu1 %v6946_v20  ;;  %3419 = vmatpush1.msra.mxu0 %v8222_v43 }
 0x1c4   : > { %3531 = vmatpush1.msra.mxu1 %v8185_v11  ;;  %3420 = vmatprep.subr.mxu0 %v6946_v20 }
 0x1c5   : > { %3532 = vmatprep.subr.mxu1 %v6946_v20  ;;  %3423 = vmatpush1.msra.mxu0 %v8238_v62 }
 0x1c6   : > { %3534 = vmatpush1.msra.mxu1 %v8198_v63  ;;  %3424 = vmatprep.subr.mxu0 %v6946_v20 }
 0x1c7   : > { %3535 = vmatprep.subr.mxu1 %v6946_v20  ;;  %3427 = vmatpush1.msra.mxu0 %v8251_v27 }
 0x1c8   : > { %3537 = vmatpush1.msra.mxu1 %v8211_v48  ;;  %3428 = vmatprep.subr.mxu0 %v6946_v20 }
 0x1c9   : > { %3538 = vmatprep.subr.mxu1 %v6946_v20  ;;  %3431 = vmatpush1.msra.mxu0 %v8266_v35 }
 0x1ca   : > { %3540 = vmatpush1.msra.mxu1 %v8224_v10  ;;  %3432 = vmatprep.subr.mxu0 %v6946_v20 }
 0x1cb   : > { %3541 = vmatprep.subr.mxu1 %v6946_v20  ;;  %3435 = vmatpush1.msra.mxu0 %v8279_v21 }
 0x1cc   : > { %3543 = vmatpush1.msra.mxu1 %v8240_v16  ;;  %3436 = vmatprep.subr.mxu0 %v6946_v20 }
 0x1cd   : > { %3544 = vmatprep.subr.mxu1 %v6946_v20  ;;  %3439 = vmatpush1.msra.mxu0 %v8284_v60 }
 0x1ce   : > { %3546 = vmatpush1.msra.mxu1 %v8253_v45  ;;  %3452 = vmatprep.subr.mxu0 %v6946_v20 }
 0x1cf   : > { %3547 = vmatprep.subr.mxu1 %v6946_v20  ;;  %3455 = vmatpush2.msra.mxu0 %v8297_v46 }
 0x1d0   : > { %3549 = vmatpush1.msra.mxu1 %v9750_v57  ;;  %3456 = vmatprep.subr.mxu0 %v6946_v20 }
 0x1d1   : > { %3562 = vmatprep.subr.mxu1 %v6946_v20  ;;  %3459 = vmatpush2.msra.mxu0 %v9751_v19 }
 0x1d2   : > { %3564 = vmatpush2.msra.mxu1 %v8270_v50  ;;  %3460 = vmatprep.subr.mxu0 %v6946_v20 }
 0x1d3   : > { %3565 = vmatprep.subr.mxu1 %v6946_v20  ;;  %3463 = vmatpush2.msra.mxu0 %v9752_v42 }
 0x1d4   : > { %3567 = vmatpush2.msra.mxu1 %v8292_v0  ;;  %3464 = vmatprep.subr.mxu0 %v6946_v20 }
 0x1d5   : > { %3568 = vmatprep.subr.mxu1 %v6946_v20  ;;  %3467 = vmatpush2.msra.mxu0 %v9753_v55 }
 0x1d6   : > { %3570 = vmatpush2.msra.mxu1 %v8305_v6  ;;  %3468 = vmatprep.subr.mxu0 %v6946_v20 }
 0x1d7   : > { %3571 = vmatprep.subr.mxu1 %v6946_v20  ;;  %3471 = vmatpush2.msra.mxu0 %v8355_v31 }
 0x1d8   : > { %3573 = vmatpush2.msra.mxu1 %v8318_v34  ;;  %3472 = vmatprep.subr.mxu0 %v6946_v20 }
 0x1d9   : > { %3574 = vmatprep.subr.mxu1 %v6946_v20  ;;  %3475 = vmatpush2.msra.mxu0 %v8368_v14 }
 0x1da   : > { %3576 = vmatpush2.msra.mxu1 %v8331_v17  ;;  %3476 = vmatprep.subr.mxu0 %v6946_v20 }
 0x1db   : > { %3577 = vmatprep.subr.mxu1 %v6946_v20  ;;  %3479 = vmatpush2.msra.mxu0 %v8380_v38 }
 0x1dc   : > { %3579 = vmatpush2.msra.mxu1 %v8344_v40  ;;  %3480 = vmatprep.subr.mxu0 %v6946_v20 }
 0x1dd   : > { %3580 = vmatprep.subr.mxu1 %v6946_v20  ;;  %3483 = vmatpush2.msra.mxu0 %v8393_v47 }
 0x1de   : > { %3582 = vmatpush2.msra.mxu1 %v8357_v53  ;;  %3484 = vmatprep.subr.mxu0 %v6946_v20 }
 0x1df   : > { %3583 = vmatprep.subr.mxu1 %v6946_v20  ;;  %3487 = vmatpush2.msra.mxu0 %v8405_v54 }
 0x1e0   : > { %3585 = vmatpush2.msra.mxu1 %v8370_v26  ;;  %3488 = vmatprep.subr.mxu0 %v6946_v20 }
 0x1e1   : > { %3586 = vmatprep.subr.mxu1 %v6946_v20  ;;  %3491 = vmatpush2.msra.mxu0 %v8417_v36 }
 0x1e2   : > { %3494 = vmatprep.mubr.f32.mxu0 %v9754_v32  ;;  %3588 = vmatpush2.msra.mxu1 %v8382_v30  ;;  %v9758_v32 = vand.u32 4294901760, %v8088_v37  ;;  %v9759_v30 = vld [vmem:[#allocation22_spill] sm:$0xff] }
 0x1e3   : > { %3497 = vmatmul.mubr.f32.vlgmr.msra.gmra.mxu0 %v9755_v8  ;;  %3589 = vmatprep.subr.mxu1 %v6946_v20  ;;  %v9760_v8 = vand.u32 4294901760, %v8099_v23 }
 0x1e4   : > { %3604 = vmatprep.subr.mxu0 %v6946_v20  ;;  %3591 = vmatpush2.msra.mxu1 %v8397_v61  ;;  %v2070_v61 = vunpack.c.0.s8 %v2069_v9 }
 0x1e5   : > { %v1964_v28 = vpop.f32.mrf.mxu0  ;;  %3595 = vmatprep.mubr.f32.mxu1 %v9757_v13  ;;  %3608 = vmatpush1.msra.mxu0 %v9758_v32  ;;  %v9761_v32 = vand.u32 4294901760, %v8111_v33  ;;  %v9764_v33 = vld [vmem:[#allocation32_spill] sm:$0xff] }
 0x1e6   : > { %3599 = vmatmul.mubr.f32.vlgmr.msra.gmra.mxu1 %v9759_v30  ;;  %3609 = vmatprep.subr.mxu0 %v6946_v20  ;;  %v1965_v37 = vadd.f32 %v1964_v28, %v1815_v49  ;;  %v8588_v23 = vsub.s32 %v2070_v61, %v2072_v29  ;;  %v6402_v13 = vld [vmem:[%s7254_s18 + $0x220] sm:$0xff] }
 0x1e7   : > { %3754 = vmatprep.subr.mxu1 %v6946_v20  ;;  %3613 = vmatpush1.msra.mxu0 %v9760_v8  ;;  %v1966_v59 = vpop.f32.mrf.mxu0 }
 0x1e8   : > { %3756 = vmatpush1.msra.mxu1 %v8073_v18  ;;  %3614 = vmatprep.subr.mxu0 %v6946_v20  ;;  %9762 = vst [vmem:[#allocation34_spill] sm:$0xff] %v8588_v23  ;;  %v9763_v18 = vand.u32 4294901760, %v8124_v25  ;;  %v6353_v59 = vld [vmem:[%s8006_s23 + $0x1] ss:$0 sm:$0xff] }
 0x1e9   : > { %3757 = vmatprep.subr.mxu1 %v6946_v20  ;;  %3618 = vmatpush1.msra.mxu0 %v9761_v32 }
 0x1ea   : > { %v2062_v30 = vpop.f32.mrf.mxu1  ;;  %3759 = vmatpush1.msra.mxu1 %v8080_v2  ;;  %3619 = vmatprep.subr.mxu0 %v6946_v20  ;;  %v9765_v2 = vand.u32 4294901760, %v8139_v52  ;;  %v9769_v52 = vand.u32 4294901760, %v8191_v44 }
 0x1eb   : > { %v2063_v3 = vadd.f32 %v2062_v30, %v1965_v37  ;;  %3760 = vmatprep.subr.mxu1 %v6946_v20  ;;  %3623 = vmatpush1.msra.mxu0 %v9763_v18 }
 0x1ec   : > { %3762 = vmatpush1.msra.mxu1 %v8090_v12  ;;  %3624 = vmatprep.subr.mxu0 %v6946_v20  ;;  %v2064_v28 = vpop.f32.mrf.mxu1  ;;  %v9766_v12 = vand.u32 4294901760, %v8145_v56  ;;  %v9772_v56 = vand.u32 4294901760, %v8238_v62  ;;  %v9775_v62 = vand.u32 4294901760, %v8279_v21 }
 0x1ed   : > { %v2066_v58 = vadd.f32 %v2063_v3, %v9764_v33  ;;  %3763 = vmatprep.subr.mxu1 %v6946_v20  ;;  %3628 = vmatpush1.msra.mxu0 %v9765_v2 }
 0x1ee   : > { %3765 = vmatpush1.msra.mxu1 %v8101_v1  ;;  %3629 = vmatprep.subr.mxu0 %v6946_v20  ;;  %v9767_v1 = vand.u32 4294901760, %v8160_v5  ;;  %v9774_v5 = vand.u32 4294901760, %v8266_v35  ;;  %v9777_v35 = vand.u32 4294901760, %v8297_v46  ;;  %v9791_v46 = vld [vmem:[#allocation28_spill] sm:$0xff] }
 0x1ef   : > { %v2074_v61 = vrot.slane %v2066_v58, %v8588_v23  ;;  %3766 = vmatprep.subr.mxu1 %v6946_v20  ;;  %3633 = vmatpush1.msra.mxu0 %v9766_v12  ;;  %v6403_v23 = vld [vmem:[%s7254_s18 + $0x228] sm:$0xff] }
 0x1f0   : > { %3768 = vmatpush1.msra.mxu1 %v8113_v7  ;;  %3634 = vmatprep.subr.mxu0 %v6946_v20  ;;  %v9768_v7 = vand.u32 4294901760, %v8183_v41 }
 0x1f1   : > { %v2075_v25 = vcombine.high %v2074_v61, %v2074_v61  ;;  %6349 = vst.sshfl [vmem:[%s8607_s24] sm:$0x1 pattern:$0x73625140] %v2074_v61  ;;  %3769 = vmatprep.subr.mxu1 %v6946_v20  ;;  %3638 = vmatpush1.msra.mxu0 %v9767_v1 }
 0x1f2   : > { %3771 = vmatpush1.msra.mxu1 %v8118_v39  ;;  %3639 = vmatprep.subr.mxu0 %v6946_v20  ;;  %v9770_v39 = vand.u32 4294901760, %v8209_v15 }
 0x1f3   : > { %6350 = vst.sshfl [vmem:[%s8607_s24 + $0x4] sm:$0x1 pattern:$0x73625140] %v2075_v25  ;;  %3772 = vmatprep.subr.mxu1 %v6946_v20  ;;  %3643 = vmatpush1.msra.mxu0 %v9768_v7 }
 0x1f4   : > { %3774 = vmatpush1.msra.mxu1 %v8129_v51  ;;  %3644 = vmatprep.subr.mxu0 %v6946_v20  ;;  %v9771_v51 = vand.u32 4294901760, %v8222_v43  ;;  %v9782_v43 = vand.u32 4294901760, %v8368_v14 }
 0x1f5   : > { %3775 = vmatprep.subr.mxu1 %v6946_v20  ;;  %3648 = vmatpush1.msra.mxu0 %v9769_v52 }
 0x1f6   : > { %3777 = vmatpush1.msra.mxu1 %v8153_v4  ;;  %3649 = vmatprep.subr.mxu0 %v6946_v20  ;;  %v9773_v4 = vand.u32 4294901760, %v8251_v27  ;;  %v9789_v27 = vld [vmem:[#allocation18_spill] sm:$0xff] }
 0x1f7   : > { %3778 = vmatprep.subr.mxu1 %v6946_v20  ;;  %3653 = vmatpush1.msra.mxu0 %v9770_v39 }
 0x1f8   : > { %3780 = vmatpush1.msra.mxu1 %v8162_v24  ;;  %3654 = vmatprep.subr.mxu0 %v6946_v20  ;;  %v9781_v24 = vand.u32 4294901760, %v8355_v31 }
 0x1f9   : > { %3781 = vmatprep.subr.mxu1 %v6946_v20  ;;  %3658 = vmatpush1.msra.mxu0 %v9771_v51 }
 0x1fa   : > { %3783 = vmatpush1.msra.mxu1 %v8185_v11  ;;  %3659 = vmatprep.subr.mxu0 %v6946_v20 }
 0x1fb   : > { %3784 = vmatprep.subr.mxu1 %v6946_v20  ;;  %3663 = vmatpush1.msra.mxu0 %v9772_v56 }
 0x1fc   : > { %3786 = vmatpush1.msra.mxu1 %v8198_v63  ;;  %3664 = vmatprep.subr.mxu0 %v6946_v20  ;;  %v9787_v63 = vld [vmem:[#allocation17_spill] sm:$0xff] }
 0x1fd   : > { %3787 = vmatprep.subr.mxu1 %v6946_v20  ;;  %3668 = vmatpush1.msra.mxu0 %v9773_v4  ;;  %v6384_v4 = vld [vmem:[%s7252_s10 + $0x28] sm:$0x3] }
 0x1fe   : > { %3789 = vmatpush1.msra.mxu1 %v8211_v48  ;;  %3669 = vmatprep.subr.mxu0 %v6946_v20  ;;  %v9776_v48 = vand.u32 4294901760, %v8284_v60  ;;  %v9779_v60 = vand.u32 4294901760, %v9752_v42 }
 0x1ff   : > { %3790 = vmatprep.subr.mxu1 %v6946_v20  ;;  %3673 = vmatpush1.msra.mxu0 %v9774_v5 }
 0x200   : > { %3792 = vmatpush1.msra.mxu1 %v8224_v10  ;;  %3674 = vmatprep.subr.mxu0 %v6946_v20  ;;  %v9780_v10 = vand.u32 4294901760, %v9753_v55 }
 0x201   : > { %3793 = vmatprep.subr.mxu1 %v6946_v20  ;;  %3678 = vmatpush1.msra.mxu0 %v9775_v62 }
 0x202   : > { %3795 = vmatpush1.msra.mxu1 %v8240_v16  ;;  %3679 = vmatprep.subr.mxu0 %v6946_v20  ;;  %v9778_v16 = vand.u32 4294901760, %v9751_v19 }
 0x203   : > { %3796 = vmatprep.subr.mxu1 %v6946_v20  ;;  %3683 = vmatpush1.msra.mxu0 %v9776_v48  ;;  %v4363_v48 = vsel %vm776_vm1, %v6384_v4, 0  ;;  %v9807_v4 = vld [vmem:[#allocation9_spill] sm:$0xff] }
 0x204   : > { %3798 = vmatpush1.msra.mxu1 %v8253_v45  ;;  %3696 = vmatprep.subr.mxu0 %v6946_v20  ;;  %v9788_v45 = vld [vmem:[#allocation38_spill] sm:$0xff] }
 0x205   : > { %3799 = vmatprep.subr.mxu1 %v6946_v20  ;;  %3700 = vmatpush2.msra.mxu0 %v9777_v35 }
 0x206   : > { %3801 = vmatpush1.msra.mxu1 %v9750_v57  ;;  %3701 = vmatprep.subr.mxu0 %v6946_v20 }
 0x207   : > { %3814 = vmatprep.subr.mxu1 %v6946_v20  ;;  %3705 = vmatpush2.msra.mxu0 %v9778_v16  ;;  %v6383_v16 = vld [vmem:[%s7252_s10 + $0x20] sm:$0xff]  ;;  %s6416_s10 = sshll.u32 (%p9873_p7), %s7008_s28, 2 }
 0x208   : > { %3816 = vmatpush2.msra.mxu1 %v8270_v50  ;;  %3706 = vmatprep.subr.mxu0 %v6946_v20  ;;  %v9790_v50 = vld [vmem:[#allocation39_spill] sm:$0xff]  ;;  %s6153_s11 = scalar_lea.vmem (%p9873_p7), %s9527_s6, %s6416_s10 }
 0x209   : > { %3817 = vmatprep.subr.mxu1 %v6946_v20  ;;  %3710 = vmatpush2.msra.mxu0 %v9779_v60  ;;  %v8759_v60 = vand.u32 4294901760, %v4363_v48 }
 0x20a   : > { %3819 = vmatpush2.msra.mxu1 %v8292_v0  ;;  %3711 = vmatprep.subr.mxu0 %v6946_v20 }
 0x20b   : > { %3820 = vmatprep.subr.mxu1 %v6946_v20  ;;  %3715 = vmatpush2.msra.mxu0 %v9780_v10 }
 0x20c   : > { %3822 = vmatpush2.msra.mxu1 %v8305_v6  ;;  %3716 = vmatprep.subr.mxu0 %v6946_v20  ;;  %v9783_v6 = vand.u32 4294901760, %v8380_v38  ;;  %v9794_v38 = vld [vmem:[#allocation13_spill] sm:$0xff] }
 0x20d   : > { %3823 = vmatprep.subr.mxu1 %v6946_v20  ;;  %3720 = vmatpush2.msra.mxu0 %v9781_v24  ;;  %v2254_v15 = vpop.f32.mrf.mxu1  ;;  %v8762_v24 = vand.u32 4294901760, %v6383_v16 }
 0x20e   : > { %3825 = vmatpush2.msra.mxu1 %v8318_v34  ;;  %3721 = vmatprep.subr.mxu0 %v6946_v20  ;;  %v9784_v34 = vand.u32 4294901760, %v8393_v47  ;;  %v9796_v47 = vld [vmem:[#allocation25_spill] sm:$0xff] }
 0x20f   : > { %3826 = vmatprep.subr.mxu1 %v6946_v20  ;;  %3725 = vmatpush2.msra.mxu0 %v9782_v43  ;;  %v6604_v41 = vpop.f32.mrf.mxu1  ;;  %v8767_v43 = vsub.f32 %v4363_v48, %v8759_v60 }
 0x210   : > { %3828 = vmatpush2.msra.mxu1 %v8331_v17  ;;  %3726 = vmatprep.subr.mxu0 %v6946_v20  ;;  %v9785_v17 = vand.u32 4294901760, %v8405_v54  ;;  %v9795_v54 = vld [vmem:[#allocation31_spill] sm:$0xff]  ;;  %v8774_v41 = vsub.f32 %v6383_v16, %v8762_v24 }
 0x211   : > { %3829 = vmatprep.subr.mxu1 %v6946_v20  ;;  %3730 = vmatpush2.msra.mxu0 %v9783_v6  ;;  %v9799_v6 = vld [vmem:[#allocation16_spill] sm:$0xff] }
 0x212   : > { %3831 = vmatpush2.msra.mxu1 %v8344_v40  ;;  %3731 = vmatprep.subr.mxu0 %v6946_v20  ;;  %v9786_v40 = vand.u32 4294901760, %v8417_v36 }
 0x213   : > { %3832 = vmatprep.subr.mxu1 %v6946_v20  ;;  %3735 = vmatpush2.msra.mxu0 %v9784_v34  ;;  %v4473_v34 = vand.u32 4294901760, %v8767_v43 }
 0x214   : > { %3834 = vmatpush2.msra.mxu1 %v8357_v53  ;;  %3736 = vmatprep.subr.mxu0 %v6946_v20  ;;  %v9792_v53 = vld [vmem:[#allocation12_spill] sm:$0xff] }
 0x215   : > { %3835 = vmatprep.subr.mxu1 %v6946_v20  ;;  %3740 = vmatpush2.msra.mxu0 %v9785_v17  ;;  %v2168_v11 = vpop.f32.mrf.mxu0  ;;  %v4480_v17 = vand.u32 4294901760, %v8774_v41 }
 0x216   : > { %3837 = vmatpush2.msra.mxu1 %v8370_v26  ;;  %3741 = vmatprep.subr.mxu0 %v6946_v20  ;;  %v9793_v26 = vld [vmem:[#allocation30_spill] sm:$0xff]  ;;  %v2255_v36 = vadd.f32 %v2254_v15, %v2168_v11  ;;  %v9798_v15 = vld [vmem:[#allocation15_spill] sm:$0xff] }
 0x217   : > { %3838 = vmatprep.subr.mxu1 %v6946_v20  ;;  %3745 = vmatpush2.msra.mxu0 %v9786_v40  ;;  %v6595_v44 = vpop.f32.mrf.mxu0  ;;  %v9800_v11 = vld [vmem:[#allocation27_spill] sm:$0xff]  ;;  %v4474_v40 = vsub.f32 %v8767_v43, %v4473_v34 }
 0x218   : > { %3747 = vmatprep.mubr.f32.mxu0 %v9787_v63  ;;  %3840 = vmatpush2.msra.mxu1 %v9788_v45  ;;  %v4481_v44 = vsub.f32 %v8774_v41, %v4480_v17  ;;  %v9801_v45 = vld [vmem:[#allocation14_spill] sm:$0xff] }
 0x219   : > { %3749 = vmatmul.mubr.f32.vlgmr.msra.gmra.mxu0 %v9789_v27  ;;  %3841 = vmatprep.subr.mxu1 %v6946_v20  ;;  %v2408_v0 = vpop.f32.mrf.mxu1 }
 0x21a   : > { %3843 = vmatpush2.msra.mxu1 %v9790_v50  ;;  %3845 = vmatprep.mubr.f32.mxu1 %v9787_v63  ;;  %v4482_v50 = vand.u32 4294901760, %v4481_v44 }
 0x21b   : > { %3847 = vmatmul.mubr.f32.vlgmr.msra.gmra.mxu1 %v9789_v27  ;;  %v6622_v21 = vpop.f32.mrf.mxu1  ;;  %6692 = vmatprep.subr.mxu1 %v6946_v20 }
 0x21c   : > { %6693 = vmatpush3.xpose.msra.mxu1 %v9791_v46  ;;  %6683 = vmatprep.subr.mxu0 %v6946_v20  ;;  %v6401_v21 = vld [vmem:[%s7254_s18 + $0x218] sm:$0xff] }
 0x21d   : > { %6694 = vmatprep.subr.mxu1 %v6946_v20  ;;  %6684 = vmatpush3.xpose.msra.mxu0 %v9792_v53 }
 0x21e   : > { %6685 = vmatprep.subr.mxu0 %v6946_v20  ;;  %6698 = vmatprep.mubr.msk.f32.mxu1 %vm6947_vm0, %v6946_v20 }
 0x21f   : > { %6689 = vmatprep.mubr.msk.f32.mxu0 %vm6947_vm0, %v6946_v20 }
 0x220   : > { %6695 = vmatpush3.xpose.msra.mxu1 %v9793_v26 }
 0x221   : > { %v2332_v31 = vpop.f32.mrf.mxu0  ;;  %6696 = vmatprep.subr.mxu1 %v6946_v20  ;;  %6686 = vmatpush3.xpose.msra.mxu0 %v9794_v38 }
 0x222   : > { %6687 = vmatprep.subr.mxu0 %v6946_v20  ;;  %v2333_v22 = vadd.f32 %v2332_v31, %v2255_v36  ;;  %v9802_v31 = vld [vmem:[#allocation26_spill] sm:$0xff]  ;;  %v6399_v36 = vld [vmem:[%s7254_s18 + $0x208] sm:$0xff] }
 0x223   : > { %v6613_v14 = vpop.f32.mrf.mxu0 }
 0x224   : > { %6697 = vmatpush3.xpose.msra.mxu1 %v9795_v54  ;;  %v2409_v42 = vadd.f32 %v2408_v0, %v2333_v22  ;;  %v4475_v0 = vand.u32 4294901760, %v4474_v40  ;;  %v6400_v14 = vld [vmem:[%s7254_s18 + $0x210] sm:$0xff]  ;;  %v6391_v40 = vld [vmem:[%s7254_s18 + $0x1c8] sm:$0xff] }
 0x225   : > { %v2562_v30 = vpop.f32.mrf.mxu1  ;;  %6710 = vmatprep.subr.mxu1 %v6946_v20  ;;  %6688 = vmatpush3.xpose.msra.mxu0 %v9796_v47  ;;  %v8813_v22 = vand.u32 4294901760, %v6400_v14 }
 0x226   : > { %6701 = vmatprep.subr.mxu0 %v6946_v20 }
 0x227   : > { %v6640_v9 = vpop.f32.mrf.mxu1 }
 0x228   : > { %v9803_v9 = vld [vmem:[#allocation8_spill] sm:$0xff] }
 0x229   : > { %v2733_v57 = vpop.f32.mrf.mxu1 }
 0x22b   : > { %v6654_v19 = vpop.f32.mrf.mxu1 }
 0x22c   : > { %v6398_v19 = vld [vmem:[%s7254_s18 + $0x200] sm:$0xff] }
 0x22d   : > { %v2488_v55 = vpop.f32.mrf.mxu0  ;;  %v2884_v8 = vpop.f32.mrf.mxu1 }
 0x22e   : > { %v2489_v49 = vadd.f32 %v2488_v55, %v2409_v42  ;;  %v8823_v55 = vand.u32 4294901760, %v6399_v36 }
 0x22f   : > { %v6631_v29 = vpop.f32.mrf.mxu0  ;;  %v6668_v37 = vpop.f32.mrf.mxu1 }
 0x230   : > { %v2563_v32 = vadd.f32 %v2562_v30, %v2489_v49  ;;  %v8806_v30 = vand.u32 4294901760, %v6401_v21  ;;  %v9805_v49 = vld [vmem:[#allocation10_spill] sm:$0xff]  ;;  %v8832_v29 = vsub.f32 %v6400_v14, %v8813_v22 }
 0x231   : > { %v2652_v3 = vpop.f32.mrf.mxu0  ;;  %v6396_v37 = vld [vmem:[%s7254_s18 + $0x1f0] sm:$0xff]  ;;  %v6390_v14 = vld [vmem:[%s7254_s18 + $0x1c0] sm:$0xff] }
 0x232   : > { %2567 = vst.msk [vmem:[%s8738_s21] sm:$0x3] %vm2566_vm5, %v2563_v32  ;;  %v2653_v18 = vadd.f32 %v6353_v59, %v2652_v3  ;;  %v8821_v42 = vsub.f32 %v6401_v21, %v8806_v30  ;;  %v8834_v59 = vand.u32 4294901760, %v6398_v19  ;;  %v8844_v3 = vsub.f32 %v6399_v36, %v8823_v55 }
 0x233   : > { %v6647_v28 = vpop.f32.mrf.mxu0 }
 0x234   : > { %v2734_v33 = vadd.f32 %v2733_v57, %v2653_v18  ;;  %v9804_v57 = vld [vmem:[#allocation29_spill] sm:$0xff]  ;;  %v9633_v32 = vand.u32 4294901760, %v8821_v42 }
 0x235   : > { %v2809_v58 = vpop.f32.mrf.mxu0  ;;  %v6395_v28 = vld [vmem:[%s7254_s18 + $0x1e8] sm:$0xff] }
 0x236   : > { %v2810_v2 = vadd.f32 %v2809_v58, %v2734_v33  ;;  %v8851_v33 = vand.u32 4294901760, %v6396_v37  ;;  %v9806_v58 = vld [vmem:[#allocation11_spill] sm:$0xff] }
 0x237   : > { %v6661_v61 = vpop.f32.mrf.mxu0 }
 0x238   : > { %v2885_v12 = vadd.f32 %v2884_v8, %v2810_v2  ;;  %v3034_v25 = vpop.f32.mrf.mxu1  ;;  %v6397_v8 = vld [vmem:[%s7254_s18 + $0x1f8] sm:$0xff]  ;;  %v9632_v2 = vand.u32 4294901760, %v8832_v29  ;;  %v8857_v61 = vsub.f32 %v6398_v19, %v8834_v59  ;;  %v8931_v19 = vand.u32 4294901760, %v6391_v40 }
 0x239   : > { %v2961_v1 = vpop.f32.mrf.mxu0  ;;  %v8846_v18 = vand.u32 4294901760, %v6397_v8 }
 0x23a   : > { %v2962_v7 = vadd.f32 %v2961_v1, %v2885_v12  ;;  %v6682_v52 = vpop.f32.mrf.mxu1  ;;  %v8862_v12 = vand.u32 4294901760, %v6395_v28  ;;  %v4964_v1 = vsub.f32 %v8821_v42, %v9633_v32  ;;  %v6410_v32 = vld [vmem:[%s7254_s18 + $0x260] sm:$0xff] }
 0x23b   : > { %v6675_v39 = vpop.f32.mrf.mxu0  ;;  %v8872_v52 = vsub.f32 %v6397_v8, %v8846_v18 }
 0x23c   : > { %v8743_v51 = vadd.f32 %v3034_v25, %v2962_v7  ;;  %v6394_v25 = vld [vmem:[%s7254_s18 + $0x1e0] sm:$0xff]  ;;  %v9630_v7 = vand.u32 4294901760, %v8844_v3  ;;  %v6393_v39 = vld [vmem:[%s7254_s18 + $0x1d8] sm:$0xff] }
 0x23d   : > { %v8886_v48 = vand.u32 4294901760, %v6394_v25  ;;  %v8895_v16 = vand.u32 4294901760, %v6393_v39 }
 0x23e   : > { %9797 = vst [vmem:[#allocation35_spill] sm:$0xff] %v8743_v51  ;;  %v8746_v56 = vand.u32 4294901760, %v8743_v51 }
 0x23f   : > { %v8924_v21 = vsub.f32 %v6393_v39, %v8895_v16 }
 0x240   : > { %v3949_v5 = vsub.f32 %v8743_v51, %v8746_v56  ;;  %6699 = vmatmul.mubr.f32.vlgmr.msra.gmra.mxu1 %v8746_v56 }
 0x241   : > { %6711 = vmatpush3.xpose.msra.mxu1 %v9792_v53  ;;  %6716 = vmatprep.mubr.msk.f32.mxu1 %vm6947_vm0, %v6946_v20 }
 0x242   : > { %v3950_v62 = vand.u32 4294901760, %v3949_v5  ;;  %6712 = vmatprep.subr.mxu1 %v6946_v20 }
 0x244   : > { %v3951_v35 = vsub.f32 %v3949_v5, %v3950_v62 }
 0x245   : > { %6713 = vmatpush3.xpose.msra.mxu1 %v9794_v38 }
 0x246   : > { %6714 = vmatprep.subr.mxu1 %v6946_v20  ;;  %v3952_v10 = vand.u32 4294901760, %v3951_v35  ;;  %v8893_v35 = vsub.f32 %v6395_v28, %v8862_v12 }
 0x248   : > { %6690 = vmatmul.mubr.f32.vlgmr.msra.gmra.mxu0 %v3952_v10  ;;  %v4965_v10 = vand.u32 4294901760, %v4964_v1  ;;  %v8944_v1 = vand.u32 4294901760, %v6390_v14 }
 0x249   : > { %6702 = vmatpush3.xpose.msra.mxu0 %v9798_v15  ;;  %6715 = vmatpush3.xpose.msra.mxu1 %v9796_v47  ;;  %v6406_v15 = vld [vmem:[%s7254_s18 + $0x240] sm:$0xff] }
 0x24a   : > { %6703 = vmatprep.subr.mxu0 %v6946_v20  ;;  %6728 = vmatprep.subr.mxu1 %v6946_v20 }
 0x24b   : > { %6707 = vmatprep.mubr.msk.f32.mxu0 %vm6947_vm0, %v6946_v20 }
 0x24c   : > { %6717 = vmatmul.mubr.f32.vlgmr.msra.gmra.mxu1 %v3950_v62  ;;  %v9628_v62 = vand.u32 4294901760, %v8857_v61 }
 0x24d   : > { %6704 = vmatpush3.xpose.msra.mxu0 %v9799_v6  ;;  %6729 = vmatpush3.xpose.msra.mxu1 %v9792_v53  ;;  %v6404_v53 = vld [vmem:[%s7254_s18 + $0x230] sm:$0xff] }
 0x24e   : > { %6705 = vmatprep.subr.mxu0 %v6946_v20  ;;  %6730 = vmatprep.subr.mxu1 %v6946_v20 }
 0x24f   : > { %6734 = vmatprep.mubr.msk.f32.mxu1 %vm6947_vm0, %v6946_v20 }
 0x251   : > { %6706 = vmatpush3.xpose.msra.mxu0 %v9800_v11  ;;  %6731 = vmatpush3.xpose.msra.mxu1 %v9794_v38  ;;  %v6407_v11 = vld [vmem:[%s7254_s18 + $0x248] sm:$0xff]  ;;  %v9077_v38 = vand.u32 4294901760, %v6406_v15 }
 0x252   : > { %6719 = vmatprep.subr.mxu0 %v6946_v20  ;;  %6732 = vmatprep.subr.mxu1 %v6946_v20 }
 0x254   : > { %6708 = vmatmul.mubr.f32.vlgmr.msra.gmra.mxu0 %v3949_v5  ;;  %v4971_v5 = vsub.f32 %v8832_v29, %v9632_v2 }
 0x255   : > { %6720 = vmatpush3.xpose.msra.mxu0 %v9801_v45  ;;  %6733 = vmatpush3.xpose.msra.mxu1 %v9796_v47  ;;  %v9064_v47 = vand.u32 4294901760, %v6407_v11 }
 0x256   : > { %6721 = vmatprep.subr.mxu0 %v6946_v20  ;;  %6725 = vmatprep.mubr.msk.f32.mxu0 %vm6947_vm0, %v6946_v20  ;;  %v4972_v44 = vand.u32 4294901760, %v4971_v5  ;;  %v9631_v5 = vand.u32 4294901760, %v8924_v21 }
 0x257   : > { %6744 = vmatprep.subr.mxu1 %v6946_v20 }
 0x258   : > { %6735 = vmatmul.mubr.f32.vlgmr.msra.gmra.mxu1 %v8746_v56 }
 0x259   : > { %6722 = vmatpush3.xpose.msra.mxu0 %v9802_v31  ;;  %6745 = vmatpush3.msra.mxu1 %v4475_v0  ;;  %v4985_v0 = vsub.f32 %v8857_v61, %v9628_v62  ;;  %v6408_v31 = vld [vmem:[%s7254_s18 + $0x250] sm:$0xff] }
 0x25a   : > { %6723 = vmatprep.subr.mxu0 %v6946_v20  ;;  %6746 = vmatprep.subr.mxu1 %v6946_v20  ;;  %v9051_v6 = vand.u32 4294901760, %v6408_v31 }
 0x25b   : > { %6747 = vmatpush3.msra.mxu1 %v4482_v50  ;;  %6748 = vmatprep.mubr.msk.f32.mxu1 %vm6947_vm0, %v6946_v20  ;;  %v8916_v50 = vsub.f32 %v6394_v25, %v8886_v48  ;;  %v4986_v28 = vand.u32 4294901760, %v4985_v0 }
 0x25c   : > { %6749 = vmatmul.mubr.f32.vlgmr.msra.gmra.mxu1 %v9803_v9  ;;  %6758 = vmatprep.subr.mxu1 %v6946_v20 }
 0x25d   : > { %6724 = vmatpush3.xpose.msra.mxu0 %v9804_v57  ;;  %6759 = vmatpush3.msra.mxu1 %v8759_v60  ;;  %v6409_v57 = vld [vmem:[%s7254_s18 + $0x258] sm:$0xff] }
 0x25e   : > { %6737 = vmatprep.subr.mxu0 %v6946_v20  ;;  %6760 = vmatprep.subr.mxu1 %v6946_v20  ;;  %v9038_v45 = vand.u32 4294901760, %v6409_v57 }
 0x25f   : > { %6761 = vmatpush3.msra.mxu1 %v8762_v24  ;;  %6762 = vmatprep.mubr.msk.f32.mxu1 %vm6947_vm0, %v6946_v20 }
 0x260   : > { %6726 = vmatmul.mubr.f32.vlgmr.msra.gmra.mxu0 %v8746_v56  ;;  %6763 = vmatmul.mubr.f32.vlgmr.msra.gmra.mxu1 %v9805_v49  ;;  %v8878_v56 = vsub.f32 %v6396_v37, %v8851_v33  ;;  %v6389_v37 = vld [vmem:[%s7254_s18 + $0x1b8] sm:$0xff] }
 0x261   : > { %6738 = vmatpush3.msra.mxu0 %v8759_v60  ;;  %6741 = vmatprep.mubr.msk.f32.mxu0 %vm6947_vm0, %v6946_v20  ;;  %v8957_v0 = vand.u32 4294901760, %v6389_v37 }
 0x262   : > { %6739 = vmatprep.subr.mxu0 %v6946_v20  ;;  %6772 = vmatprep.subr.mxu1 %v6946_v20 }
 0x263   : > { %6740 = vmatpush3.msra.mxu0 %v8762_v24  ;;  %6773 = vmatpush3.msra.mxu1 %v8759_v60  ;;  %v6392_v60 = vld [vmem:[%s7254_s18 + $0x1d0] sm:$0xff] }
 0x264   : > { %6742 = vmatmul.mubr.f32.vlgmr.msra.gmra.mxu0 %v9806_v58  ;;  %6751 = vmatprep.subr.mxu0 %v6946_v20  ;;  %v9629_v58 = vand.u32 4294901760, %v8916_v50 }
 0x265   : > { %6752 = vmatpush3.msra.mxu0 %v8767_v43  ;;  %6755 = vmatprep.mubr.msk.f32.mxu0 %vm6947_vm0, %v6946_v20  ;;  %v9627_v43 = vand.u32 4294901760, %v8872_v52 }
 0x266   : > { %6753 = vmatprep.subr.mxu0 %v6946_v20  ;;  %6774 = vmatprep.subr.mxu1 %v6946_v20 }
 0x267   : > { %6754 = vmatpush3.msra.mxu0 %v8774_v41  ;;  %6775 = vmatpush3.msra.mxu1 %v8762_v24  ;;  %v4978_v24 = vsub.f32 %v8844_v3, %v9630_v7  ;;  %v8918_v41 = vand.u32 4294901760, %v6392_v60 }
 0x268   : > { %6756 = vmatmul.mubr.f32.vlgmr.msra.gmra.mxu0 %v9807_v4  ;;  %6765 = vmatprep.subr.mxu0 %v6946_v20 }
 0x269   : > { %6766 = vmatpush3.msra.mxu0 %v4473_v34  ;;  %6769 = vmatprep.mubr.msk.f32.mxu0 %vm6947_vm0, %v6946_v20  ;;  %v9626_v34 = vand.u32 4294901760, %v8878_v56  ;;  %v4979_v36 = vand.u32 4294901760, %v4978_v24  ;;  %v8942_v25 = vsub.f32 %v6392_v60, %v8918_v41 }
 0x26a   : > { %6767 = vmatprep.subr.mxu0 %v6946_v20  ;;  %6776 = vmatprep.mubr.msk.f32.mxu1 %vm6947_vm0, %v6946_v20 }
 0x26b   : > { %6768 = vmatpush3.msra.mxu0 %v4480_v17  ;;  %6777 = vmatmul.mubr.f32.vlgmr.msra.gmra.mxu1 %v9803_v9  ;;  %v9625_v17 = vand.u32 4294901760, %v8893_v35  ;;  %v4999_v49 = vsub.f32 %v8878_v56, %v9626_v34  ;;  %v6387_v34 = vld [vmem:[%s7254_s18 + $0x1a8] sm:$0xff] }
 0x26c   : > { %6770 = vmatmul.mubr.f32.vlgmr.msra.gmra.mxu0 %v9803_v9  ;;  %4854 = vmatprep.subr.mxu0 %v6946_v20  ;;  %v4992_v9 = vsub.f32 %v8872_v52, %v9627_v43  ;;  %v6411_v43 = vld [vmem:[%s7254_s18 + $0x268] sm:$0x7f] }
 0x26d   : > { %4856 = vmatpush1.msra.mxu0 %v8806_v30  ;;  %4960 = vmatprep.subr.mxu1 %v6946_v20  ;;  %v5006_v4 = vsub.f32 %v8893_v35, %v9625_v17  ;;  %v5000_v17 = vand.u32 4294901760, %v4999_v49  ;;  %v5020_v49 = vsub.f32 %v8924_v21, %v9631_v5  ;;  %v4852_v7 = vsel %vm1278_vm3, %v6411_v43, 0 }
 0x26e   : > { %4857 = vmatprep.subr.mxu0 %v6946_v20  ;;  %4966 = vmatpush1.msra.mxu1 %v4965_v10  ;;  %v3170_v8 = vpop.f32.mrf.mxu0  ;;  %v6388_v10 = vld [vmem:[%s7254_s18 + $0x1b0] sm:$0xff]  ;;  %v4993_v60 = vand.u32 4294901760, %v4992_v9  ;;  %v8971_v9 = vsub.f32 %v6390_v14, %v8944_v1  ;;  %v8984_v14 = vsub.f32 %v6389_v37, %v8957_v0  ;;  %v9003_v43 = vand.u32 4294901760, %v4852_v7 }
 0x26f   : > { %4859 = vmatpush1.msra.mxu0 %v8813_v22  ;;  %4967 = vmatprep.subr.mxu1 %v6946_v20 }
 0x270   : > { %4860 = vmatprep.subr.mxu0 %v6946_v20  ;;  %4973 = vmatpush1.msra.mxu1 %v4972_v44  ;;  %v3172_v39 = vpop.f32.mrf.mxu0  ;;  %v8955_v44 = vsub.f32 %v6391_v40, %v8931_v19  ;;  %v5013_v40 = vsub.f32 %v8916_v50, %v9629_v58  ;;  %v8986_v58 = vand.u32 4294901760, %v6387_v34 }
 0x271   : > { %4862 = vmatpush1.msra.mxu0 %v8823_v55  ;;  %4974 = vmatprep.subr.mxu1 %v6946_v20  ;;  %v3372_v24 = vpop.f32.mrf.mxu1 }
 0x272   : > { %4863 = vmatprep.subr.mxu0 %v6946_v20  ;;  %4980 = vmatpush1.msra.mxu1 %v4979_v36  ;;  %v8959_v39 = vadd.f32 %v3372_v24, %v3170_v8  ;;  %v9634_v36 = vand.u32 4294901760, %v8942_v25  ;;  %v8973_v8 = vand.u32 4294901760, %v6388_v10  ;;  %v6386_v24 = vld [vmem:[%s7254_s18 + $0x1a0] sm:$0xff] }
 0x273   : > { %4865 = vmatpush1.msra.mxu0 %v8834_v59  ;;  %4981 = vmatprep.subr.mxu1 %v6946_v20  ;;  %v3374_v62 = vpop.f32.mrf.mxu1 }
 0x274   : > { %9808 = vst [vmem:[#allocation36_spill] sm:$0xff] %v8959_v39  ;;  %4866 = vmatprep.subr.mxu0 %v6946_v20  ;;  %4987 = vmatpush1.msra.mxu1 %v4986_v28  ;;  %v5007_v62 = vand.u32 4294901760, %v5006_v4  ;;  %v9635_v28 = vand.u32 4294901760, %v8955_v44  ;;  %v8991_v4 = vand.u32 4294901760, %v6386_v24  ;;  %v5027_v5 = vsub.f32 %v8942_v25, %v9634_v36 }
 0x275   : > { %4868 = vmatpush1.msra.mxu0 %v8846_v18  ;;  %4988 = vmatprep.subr.mxu1 %v6946_v20  ;;  %v8999_v2 = vsub.f32 %v6388_v10, %v8973_v8  ;;  %v9012_v10 = vsub.f32 %v6387_v34, %v8986_v58  ;;  %v9025_v36 = vand.u32 4294901760, %v6410_v32  ;;  %v9130_v39 = vand.u32 4294901760, %v6402_v13 }
 0x276   : > { %4869 = vmatprep.subr.mxu0 %v6946_v20  ;;  %4994 = vmatpush1.msra.mxu1 %v4993_v60  ;;  %v5014_v60 = vand.u32 4294901760, %v5013_v40  ;;  %v5034_v40 = vsub.f32 %v8955_v44, %v9635_v28  ;;  %v9017_v37 = vsub.f32 %v6386_v24, %v8991_v4  ;;  %v9030_v24 = vsub.f32 %v4852_v7, %v9003_v43 }
 0x277   : > { %4871 = vmatpush1.msra.mxu0 %v8851_v33  ;;  %4995 = vmatprep.subr.mxu1 %v6946_v20  ;;  %v9049_v34 = vsub.f32 %v6410_v32, %v9025_v36  ;;  %v9062_v32 = vsub.f32 %v6409_v57, %v9038_v45  ;;  %v9075_v57 = vsub.f32 %v6408_v31, %v9051_v6 }
 0x278   : > { %4872 = vmatprep.subr.mxu0 %v6946_v20  ;;  %5001 = vmatpush1.msra.mxu1 %v5000_v17  ;;  %v5021_v17 = vand.u32 4294901760, %v5020_v49  ;;  %v9809_v49 = vand.u32 4294901760, %v8971_v9  ;;  %v9814_v7 = vand.u32 4294901760, %v9017_v37  ;;  %v9816_v26 = vand.u32 4294901760, %v9030_v24  ;;  %9820 = vst [vmem:[#allocation32_spill] sm:$0xff] %v9130_v39 }
 0x279   : > { %4874 = vmatpush1.msra.mxu0 %v8862_v12  ;;  %5002 = vmatprep.subr.mxu1 %v6946_v20  ;;  %9813 = vst [vmem:[#allocation37_spill] sm:$0xff] %v9062_v32  ;;  %9815 = vst [vmem:[#allocation33_spill] sm:$0xff] %v9075_v57  ;;  %v9088_v31 = vsub.f32 %v6407_v11, %v9064_v47  ;;  %v9101_v11 = vsub.f32 %v6406_v15, %v9077_v38  ;;  %v9115_v15 = vand.u32 4294901760, %v6403_v23 }
 0x27a   : > { %4875 = vmatprep.subr.mxu0 %v6946_v20  ;;  %5008 = vmatpush1.msra.mxu1 %v5007_v62  ;;  %v5028_v62 = vand.u32 4294901760, %v5027_v5  ;;  %v5041_v28 = vsub.f32 %v8971_v9, %v9809_v49  ;;  %v5035_v5 = vand.u32 4294901760, %v5034_v40  ;;  %v9811_v40 = vand.u32 4294901760, %v8999_v2 }
 0x27b   : > { %4877 = vmatpush1.msra.mxu0 %v8886_v48  ;;  %5009 = vmatprep.subr.mxu1 %v6946_v20  ;;  %v5069_v54 = vsub.f32 %v9017_v37, %v9814_v7  ;;  %v5088_v7 = vsub.f32 %v9030_v24, %v9816_v26  ;;  %v9817_v26 = vand.u32 4294901760, %v9049_v34 }
 0x27c   : > { %4878 = vmatprep.subr.mxu0 %v6946_v20  ;;  %5015 = vmatpush1.msra.mxu1 %v5014_v60  ;;  %v9810_v60 = vand.u32 4294901760, %v8984_v14 }
 0x27d   : > { %4880 = vmatpush1.msra.mxu0 %v8895_v16  ;;  %5016 = vmatprep.subr.mxu1 %v6946_v20  ;;  %v5070_v46 = vand.u32 4294901760, %v5069_v54  ;;  %v5089_v54 = vand.u32 4294901760, %v5088_v7 }
 0x27e   : > { %4881 = vmatprep.subr.mxu0 %v6946_v20  ;;  %5022 = vmatpush1.msra.mxu1 %v5021_v17  ;;  %v5048_v49 = vsub.f32 %v8984_v14, %v9810_v60  ;;  %v5042_v17 = vand.u32 4294901760, %v5041_v28  ;;  %v5055_v60 = vsub.f32 %v8999_v2, %v9811_v40 }
 0x27f   : > { %4883 = vmatpush1.msra.mxu0 %v8918_v41  ;;  %5023 = vmatprep.subr.mxu1 %v6946_v20 }
 0x280   : > { %4884 = vmatprep.subr.mxu0 %v6946_v20  ;;  %5029 = vmatpush1.msra.mxu1 %v5028_v62  ;;  %v5049_v28 = vand.u32 4294901760, %v5048_v49  ;;  %v9812_v62 = vand.u32 4294901760, %v9012_v10  ;;  %v5056_v49 = vand.u32 4294901760, %v5055_v60  ;;  %v9103_v60 = vand.u32 4294901760, %v6404_v53 }
 0x281   : > { %4886 = vmatpush1.msra.mxu0 %v8931_v19  ;;  %5030 = vmatprep.subr.mxu1 %v6946_v20 }
 0x282   : > { %4887 = vmatprep.subr.mxu0 %v6946_v20  ;;  %5036 = vmatpush1.msra.mxu1 %v5035_v5  ;;  %v5062_v40 = vsub.f32 %v9012_v10, %v9812_v62  ;;  %v6405_v5 = vld [vmem:[%s7254_s18 + $0x238] sm:$0xff] }
 0x283   : > { %4889 = vmatpush1.msra.mxu0 %v8944_v1  ;;  %5037 = vmatprep.subr.mxu1 %v6946_v20  ;;  %v9090_v62 = vand.u32 4294901760, %v6405_v5 }
 0x284   : > { %4890 = vmatprep.subr.mxu0 %v6946_v20  ;;  %5043 = vmatpush1.msra.mxu1 %v5042_v17  ;;  %v5063_v17 = vand.u32 4294901760, %v5062_v40 }
 0x285   : > { %4892 = vmatpush1.msra.mxu0 %v8957_v0  ;;  %5044 = vmatprep.subr.mxu1 %v6946_v20  ;;  %v9113_v40 = vsub.f32 %v6405_v5, %v9090_v62  ;;  %v9126_v5 = vsub.f32 %v6404_v53, %v9103_v60 }
 0x286   : > { %4893 = vmatprep.subr.mxu0 %v6946_v20  ;;  %5050 = vmatpush1.msra.mxu1 %v5049_v28  ;;  %v5095_v28 = vsub.f32 %v9049_v34, %v9817_v26  ;;  %v9138_v26 = vsub.f32 %v6403_v23, %v9115_v15  ;;  %v9150_v23 = vsub.f32 %v6402_v13, %v9130_v39 }
 0x287   : > { %4895 = vmatpush1.msra.mxu0 %v8973_v8  ;;  %5051 = vmatprep.subr.mxu1 %v6946_v20 }
 0x288   : > { %4896 = vmatprep.subr.mxu0 %v6946_v20  ;;  %5057 = vmatpush1.msra.mxu1 %v5056_v49  ;;  %v9818_v49 = vand.u32 4294901760, %v9062_v32  ;;  %v5096_v7 = vand.u32 4294901760, %v5095_v28  ;;  %v9821_v28 = vand.u32 4294901760, %v9088_v31 }
 0x289   : > { %4898 = vmatpush1.msra.mxu0 %v8986_v58  ;;  %5058 = vmatprep.subr.mxu1 %v6946_v20 }
 0x28a   : > { %4899 = vmatprep.subr.mxu0 %v6946_v20  ;;  %5064 = vmatpush1.msra.mxu1 %v5063_v17  ;;  %v5102_v51 = vsub.f32 %v9062_v32, %v9818_v49  ;;  %v9819_v17 = vand.u32 4294901760, %v9075_v57  ;;  %v5116_v32 = vsub.f32 %v9088_v31, %v9821_v28 }
 0x28b   : > { %4901 = vmatpush1.msra.mxu0 %v8991_v4  ;;  %5065 = vmatprep.subr.mxu1 %v6946_v20 }
 0x28c   : > { %4914 = vmatprep.subr.mxu0 %v6946_v20  ;;  %5071 = vmatpush1.msra.mxu1 %v5070_v46  ;;  %v5109_v49 = vsub.f32 %v9075_v57, %v9819_v17  ;;  %v5103_v46 = vand.u32 4294901760, %v5102_v51  ;;  %v9646_v17 = vand.u32 4294901760, %v9113_v40  ;;  %v9649_v57 = vand.u32 4294901760, %v9126_v5 }
 0x28d   : > { %4916 = vmatpush2.msra.mxu0 %v9003_v43  ;;  %5084 = vmatprep.subr.mxu1 %v6946_v20  ;;  %v5117_v28 = vand.u32 4294901760, %v5116_v32  ;;  %v9647_v32 = vand.u32 4294901760, %v9150_v23 }
 0x28e   : > { %4917 = vmatprep.subr.mxu0 %v6946_v20  ;;  %5090 = vmatpush2.msra.mxu1 %v5089_v54  ;;  %v5110_v53 = vand.u32 4294901760, %v5109_v49  ;;  %v9822_v54 = vand.u32 4294901760, %v9101_v11  ;;  %v9648_v49 = vand.u32 4294901760, %v9138_v26  ;;  %v5137_v13 = vsub.f32 %v9126_v5, %v9649_v57  ;;  %v9832_v57 = vld [vmem:[#allocation22_spill] sm:$0xff] }
 0x28f   : > { %4919 = vmatpush2.msra.mxu0 %v9025_v36  ;;  %5091 = vmatprep.subr.mxu1 %v6946_v20 }
 0x290   : > { %4920 = vmatprep.subr.mxu0 %v6946_v20  ;;  %5097 = vmatpush2.msra.mxu1 %v5096_v7  ;;  %v5123_v51 = vsub.f32 %v9101_v11, %v9822_v54  ;;  %v5130_v7 = vsub.f32 %v9113_v40, %v9646_v17  ;;  %v5144_v17 = vsub.f32 %v9138_v26, %v9648_v49  ;;  %v9830_v49 = vld [vmem:[#allocation21_spill] sm:$0xff] }
 0x291   : > { %4922 = vmatpush2.msra.mxu0 %v9038_v45  ;;  %5098 = vmatprep.subr.mxu1 %v6946_v20 }
 0x292   : > { %4923 = vmatprep.subr.mxu0 %v6946_v20  ;;  %5104 = vmatpush2.msra.mxu1 %v5103_v46  ;;  %v5124_v54 = vand.u32 4294901760, %v5123_v51  ;;  %v5131_v46 = vand.u32 4294901760, %v5130_v7  ;;  %v5151_v51 = vsub.f32 %v9150_v23, %v9647_v32 }
 0x293   : > { %4925 = vmatpush2.msra.mxu0 %v9051_v6  ;;  %5105 = vmatprep.subr.mxu1 %v6946_v20 }
 0x294   : > { %4926 = vmatprep.subr.mxu0 %v6946_v20  ;;  %5111 = vmatpush2.msra.mxu1 %v5110_v53  ;;  %v5138_v53 = vand.u32 4294901760, %v5137_v13  ;;  %v5152_v7 = vand.u32 4294901760, %v5151_v51 }
 0x295   : > { %4928 = vmatpush2.msra.mxu0 %v9064_v47  ;;  %5112 = vmatprep.subr.mxu1 %v6946_v20 }
 0x296   : > { %4929 = vmatprep.subr.mxu0 %v6946_v20  ;;  %5118 = vmatpush2.msra.mxu1 %v5117_v28  ;;  %v5145_v28 = vand.u32 4294901760, %v5144_v17  ;;  %v9824_v17 = vld [vmem:[#allocation24_spill] sm:$0xff] }
 0x297   : > { %4931 = vmatpush2.msra.mxu0 %v9077_v38  ;;  %5119 = vmatprep.subr.mxu1 %v6946_v20 }
 0x298   : > { %4932 = vmatprep.subr.mxu0 %v6946_v20  ;;  %5125 = vmatpush2.msra.mxu1 %v5124_v54  ;;  %v9823_v54 = vld [vmem:[#allocation23_spill] sm:$0xff] }
 0x299   : > { %4934 = vmatpush2.msra.mxu0 %v9090_v62  ;;  %5126 = vmatprep.subr.mxu1 %v6946_v20 }
 0x29a   : > { %4935 = vmatprep.subr.mxu0 %v6946_v20  ;;  %5132 = vmatpush2.msra.mxu1 %v5131_v46 }
 0x29b   : > { %4937 = vmatpush2.msra.mxu0 %v9103_v60  ;;  %5133 = vmatprep.subr.mxu1 %v6946_v20 }
 0x29c   : > { %4938 = vmatprep.subr.mxu0 %v6946_v20  ;;  %5139 = vmatpush2.msra.mxu1 %v5138_v53 }
 0x29d   : > { %4940 = vmatpush2.msra.mxu0 %v9115_v15  ;;  %5140 = vmatprep.subr.mxu1 %v6946_v20 }
 0x29e   : > { %4941 = vmatprep.subr.mxu0 %v6946_v20  ;;  %5146 = vmatpush2.msra.mxu1 %v5145_v28  ;;  %v9825_v28 = vld [vmem:[#allocation37_spill] sm:$0xff] }
 0x29f   : > { %4943 = vmatpush2.msra.mxu0 %v9130_v39  ;;  %4949 = vmatprep.mubr.f32.mxu0 %v9823_v54  ;;  %v9827_v54 = vld [vmem:[#allocation36_spill] sm:$0xff] }
 0x2a0   : > { %5147 = vmatprep.subr.mxu1 %v6946_v20  ;;  %5162 = vmatprep.subr.mxu0 %v6946_v20 }
 0x2a1   : > { %4955 = vmatmul.mubr.f32.vlgmr.msra.gmra.mxu0 %v9824_v17  ;;  %5153 = vmatpush2.msra.mxu1 %v5152_v7  ;;  %v9826_v7 = vld [vmem:[#allocation33_spill] sm:$0xff] }
 0x2a2   : > { %5165 = vmatpush1.msra.mxu0 %v8821_v42  ;;  %5155 = vmatprep.mubr.f32.mxu1 %v9787_v63 }
 0x2a3   : > { %v9192_v13 = vpop.f32.mrf.mxu0  ;;  %5166 = vmatprep.subr.mxu0 %v6946_v20  ;;  %5288 = vmatprep.subr.mxu1 %v6946_v20 }
 0x2a4   : > { %5157 = vmatmul.mubr.f32.vlgmr.msra.gmra.mxu1 %v9789_v27  ;;  %5169 = vmatpush1.msra.mxu0 %v8832_v29  ;;  %v3499_v17 = vadd.f32 %v9192_v13, %v9827_v54  ;;  %v9831_v13 = vand.u32 4294901760, %v8821_v42  ;;  %v9834_v42 = vand.u32 4294901760, %v8844_v3 }
 0x2a5   : > { %5290 = vmatpush1.msra.mxu1 %v8806_v30  ;;  %5170 = vmatprep.subr.mxu0 %v6946_v20  ;;  %v3500_v46 = vpop.f32.mrf.mxu0 }
 0x2a6   : > { %v9200_v53 = vpop.f32.mrf.mxu1  ;;  %5291 = vmatprep.subr.mxu1 %v6946_v20  ;;  %5173 = vmatpush1.msra.mxu0 %v8844_v3  ;;  %v9828_v46 = vld [vmem:[#allocation19_spill] sm:$0xff]  ;;  %v9837_v3 = vld [vmem:[#allocation34_spill] sm:$0xff] }
 0x2a7   : > { %5293 = vmatpush1.msra.mxu1 %v8813_v22  ;;  %5174 = vmatprep.subr.mxu0 %v6946_v20  ;;  %v3601_v32 = vadd.f32 %v9200_v53, %v3499_v17 }
 0x2a8   : > { %5294 = vmatprep.subr.mxu1 %v6946_v20  ;;  %5177 = vmatpush1.msra.mxu0 %v8857_v61  ;;  %v3602_v51 = vpop.f32.mrf.mxu1 }
 0x2a9   : > { %5296 = vmatpush1.msra.mxu1 %v8823_v55  ;;  %5178 = vmatprep.subr.mxu0 %v6946_v20  ;;  %v9829_v51 = vld [vmem:[#allocation20_spill] sm:$0xff] }
 0x2aa   : > { %5297 = vmatprep.subr.mxu1 %v6946_v20  ;;  %5181 = vmatpush1.msra.mxu0 %v8872_v52 }
 0x2ab   : > { %5299 = vmatpush1.msra.mxu1 %v8834_v59  ;;  %5182 = vmatprep.subr.mxu0 %v6946_v20 }
 0x2ac   : > { %5300 = vmatprep.subr.mxu1 %v6946_v20  ;;  %5185 = vmatpush1.msra.mxu0 %v8878_v56 }
 0x2ad   : > { %5302 = vmatpush1.msra.mxu1 %v8846_v18  ;;  %5186 = vmatprep.subr.mxu0 %v6946_v20 }
 0x2ae   : > { %5303 = vmatprep.subr.mxu1 %v6946_v20  ;;  %5189 = vmatpush1.msra.mxu0 %v8893_v35 }
 0x2af   : > { %5305 = vmatpush1.msra.mxu1 %v8851_v33  ;;  %5190 = vmatprep.subr.mxu0 %v6946_v20 }
 0x2b0   : > { %5306 = vmatprep.subr.mxu1 %v6946_v20  ;;  %5193 = vmatpush1.msra.mxu0 %v8916_v50 }
 0x2b1   : > { %5308 = vmatpush1.msra.mxu1 %v8862_v12  ;;  %5194 = vmatprep.subr.mxu0 %v6946_v20 }
 0x2b2   : > { %5309 = vmatprep.subr.mxu1 %v6946_v20  ;;  %5197 = vmatpush1.msra.mxu0 %v8924_v21 }
 0x2b3   : > { %5311 = vmatpush1.msra.mxu1 %v8886_v48  ;;  %5198 = vmatprep.subr.mxu0 %v6946_v20 }
 0x2b4   : > { %5312 = vmatprep.subr.mxu1 %v6946_v20  ;;  %5201 = vmatpush1.msra.mxu0 %v8942_v25 }
 0x2b5   : > { %5314 = vmatpush1.msra.mxu1 %v8895_v16  ;;  %5202 = vmatprep.subr.mxu0 %v6946_v20 }
 0x2b6   : > { %5315 = vmatprep.subr.mxu1 %v6946_v20  ;;  %5205 = vmatpush1.msra.mxu0 %v8955_v44 }
 0x2b7   : > { %5317 = vmatpush1.msra.mxu1 %v8918_v41  ;;  %5206 = vmatprep.subr.mxu0 %v6946_v20 }
 0x2b8   : > { %5318 = vmatprep.subr.mxu1 %v6946_v20  ;;  %5209 = vmatpush1.msra.mxu0 %v8971_v9 }
 0x2b9   : > { %5320 = vmatpush1.msra.mxu1 %v8931_v19  ;;  %5210 = vmatprep.subr.mxu0 %v6946_v20 }
 0x2ba   : > { %5321 = vmatprep.subr.mxu1 %v6946_v20  ;;  %5213 = vmatpush1.msra.mxu0 %v8984_v14 }
 0x2bb   : > { %5323 = vmatpush1.msra.mxu1 %v8944_v1  ;;  %5214 = vmatprep.subr.mxu0 %v6946_v20 }
 0x2bc   : > { %5324 = vmatprep.subr.mxu1 %v6946_v20  ;;  %5217 = vmatpush1.msra.mxu0 %v8999_v2 }
 0x2bd   : > { %5326 = vmatpush1.msra.mxu1 %v8957_v0  ;;  %5218 = vmatprep.subr.mxu0 %v6946_v20 }
 0x2be   : > { %5327 = vmatprep.subr.mxu1 %v6946_v20  ;;  %5221 = vmatpush1.msra.mxu0 %v9012_v10 }
 0x2bf   : > { %5329 = vmatpush1.msra.mxu1 %v8973_v8  ;;  %5222 = vmatprep.subr.mxu0 %v6946_v20 }
 0x2c0   : > { %5330 = vmatprep.subr.mxu1 %v6946_v20  ;;  %5225 = vmatpush1.msra.mxu0 %v9017_v37 }
 0x2c1   : > { %5332 = vmatpush1.msra.mxu1 %v8986_v58  ;;  %5238 = vmatprep.subr.mxu0 %v6946_v20 }
 0x2c2   : > { %5333 = vmatprep.subr.mxu1 %v6946_v20  ;;  %5241 = vmatpush2.msra.mxu0 %v9030_v24 }
 0x2c3   : > { %5335 = vmatpush1.msra.mxu1 %v8991_v4  ;;  %5242 = vmatprep.subr.mxu0 %v6946_v20 }
 0x2c4   : > { %5348 = vmatprep.subr.mxu1 %v6946_v20  ;;  %5245 = vmatpush2.msra.mxu0 %v9049_v34 }
 0x2c5   : > { %5350 = vmatpush2.msra.mxu1 %v9003_v43  ;;  %5246 = vmatprep.subr.mxu0 %v6946_v20 }
 0x2c6   : > { %5351 = vmatprep.subr.mxu1 %v6946_v20  ;;  %5249 = vmatpush2.msra.mxu0 %v9825_v28 }
 0x2c7   : > { %5353 = vmatpush2.msra.mxu1 %v9025_v36  ;;  %5250 = vmatprep.subr.mxu0 %v6946_v20 }
 0x2c8   : > { %5354 = vmatprep.subr.mxu1 %v6946_v20  ;;  %5253 = vmatpush2.msra.mxu0 %v9826_v7 }
 0x2c9   : > { %5356 = vmatpush2.msra.mxu1 %v9038_v45  ;;  %5254 = vmatprep.subr.mxu0 %v6946_v20 }
 0x2ca   : > { %5357 = vmatprep.subr.mxu1 %v6946_v20  ;;  %5257 = vmatpush2.msra.mxu0 %v9088_v31 }
 0x2cb   : > { %5359 = vmatpush2.msra.mxu1 %v9051_v6  ;;  %5258 = vmatprep.subr.mxu0 %v6946_v20 }
 0x2cc   : > { %5360 = vmatprep.subr.mxu1 %v6946_v20  ;;  %5261 = vmatpush2.msra.mxu0 %v9101_v11 }
 0x2cd   : > { %5362 = vmatpush2.msra.mxu1 %v9064_v47  ;;  %5262 = vmatprep.subr.mxu0 %v6946_v20 }
 0x2ce   : > { %5363 = vmatprep.subr.mxu1 %v6946_v20  ;;  %5265 = vmatpush2.msra.mxu0 %v9113_v40 }
 0x2cf   : > { %5365 = vmatpush2.msra.mxu1 %v9077_v38  ;;  %5266 = vmatprep.subr.mxu0 %v6946_v20 }
 0x2d0   : > { %5366 = vmatprep.subr.mxu1 %v6946_v20  ;;  %5269 = vmatpush2.msra.mxu0 %v9126_v5 }
 0x2d1   : > { %5368 = vmatpush2.msra.mxu1 %v9090_v62  ;;  %5270 = vmatprep.subr.mxu0 %v6946_v20 }
 0x2d2   : > { %5369 = vmatprep.subr.mxu1 %v6946_v20  ;;  %5273 = vmatpush2.msra.mxu0 %v9138_v26 }
 0x2d3   : > { %5371 = vmatpush2.msra.mxu1 %v9103_v60  ;;  %5274 = vmatprep.subr.mxu0 %v6946_v20 }
 0x2d4   : > { %5372 = vmatprep.subr.mxu1 %v6946_v20  ;;  %5277 = vmatpush2.msra.mxu0 %v9150_v23 }
 0x2d5   : > { %5280 = vmatprep.mubr.f32.mxu0 %v9828_v46  ;;  %5374 = vmatpush2.msra.mxu1 %v9115_v15 }
 0x2d6   : > { %5283 = vmatmul.mubr.f32.vlgmr.msra.gmra.mxu0 %v9829_v51  ;;  %5375 = vmatprep.subr.mxu1 %v6946_v20  ;;  %v9833_v51 = vand.u32 4294901760, %v8832_v29  ;;  %v9835_v29 = vld [vmem:[#allocation35_spill] sm:$0xff] }
 0x2d7   : > { %5390 = vmatprep.subr.mxu0 %v6946_v20  ;;  %5377 = vmatpush2.msra.mxu1 %v9130_v39 }
 0x2d8   : > { %5381 = vmatprep.mubr.f32.mxu1 %v9830_v49  ;;  %5394 = vmatpush1.msra.mxu0 %v9831_v13 }
 0x2d9   : > { %v3750_v54 = vpop.f32.mrf.mxu0  ;;  %5385 = vmatmul.mubr.f32.vlgmr.msra.gmra.mxu1 %v9832_v57  ;;  %5395 = vmatprep.subr.mxu0 %v6946_v20 }
 0x2da   : > { %v3751_v46 = vadd.f32 %v3750_v54, %v3601_v32  ;;  %5540 = vmatprep.subr.mxu1 %v6946_v20  ;;  %5399 = vmatpush1.msra.mxu0 %v9833_v51 }
 0x2db   : > { %5542 = vmatpush1.msra.mxu1 %v8806_v30  ;;  %v3848_v39 = vpop.f32.mrf.mxu1  ;;  %5400 = vmatprep.subr.mxu0 %v6946_v20  ;;  %v3752_v49 = vpop.f32.mrf.mxu0  ;;  %v9836_v30 = vand.u32 4294901760, %v8857_v61  ;;  %v9839_v61 = vand.u32 4294901760, %v8878_v56  ;;  %v9846_v56 = vand.u32 4294901760, %v8984_v14  ;;  %v9861_v14 = vld [vmem:[#allocation28_spill] sm:$0xff] }
 0x2dc   : > { %v3849_v53 = vadd.f32 %v3848_v39, %v3751_v46  ;;  %5543 = vmatprep.subr.mxu1 %v6946_v20  ;;  %5404 = vmatpush1.msra.mxu0 %v9834_v42 }
 0x2dd   : > { %5545 = vmatpush1.msra.mxu1 %v8813_v22  ;;  %5405 = vmatprep.subr.mxu0 %v6946_v20  ;;  %v3850_v57 = vpop.f32.mrf.mxu1  ;;  %v9838_v22 = vand.u32 4294901760, %v8872_v52  ;;  %v9845_v52 = vand.u32 4294901760, %v8971_v9  ;;  %v9860_v9 = vld [vmem:[#allocation32_spill] sm:$0xff] }
 0x2de   : > { %v3852_v32 = vadd.f32 %v3849_v53, %v9835_v29  ;;  %5546 = vmatprep.subr.mxu1 %v6946_v20  ;;  %5409 = vmatpush1.msra.mxu0 %v9836_v30 }
 0x2df   : > { %5548 = vmatpush1.msra.mxu1 %v8823_v55  ;;  %5410 = vmatprep.subr.mxu0 %v6946_v20  ;;  %v9840_v55 = vand.u32 4294901760, %v8893_v35  ;;  %v9848_v35 = vand.u32 4294901760, %v9012_v10  ;;  %v9865_v10 = vld [vmem:[#allocation31_spill] sm:$0xff] }
 0x2e0   : > { %v3860_v39 = vrot.slane %v3852_v32, %v9837_v3  ;;  %5549 = vmatprep.subr.mxu1 %v6946_v20  ;;  %5414 = vmatpush1.msra.mxu0 %v9838_v22 }
 0x2e1   : > { %5551 = vmatpush1.msra.mxu1 %v8834_v59  ;;  %5415 = vmatprep.subr.mxu0 %v6946_v20  ;;  %v9841_v59 = vand.u32 4294901760, %v8916_v50  ;;  %v9851_v50 = vand.u32 4294901760, %v9049_v34 }
 0x2e2   : > { %v3861_v17 = vcombine.high %v3860_v39, %v3860_v39  ;;  %6380 = vst.sshfl [vmem:[%s8607_s24 + $0x1] sm:$0x1 pattern:$0x73625140] %v3860_v39  ;;  %5552 = vmatprep.subr.mxu1 %v6946_v20  ;;  %5419 = vmatpush1.msra.mxu0 %v9839_v61 }
 0x2e3   : > { %5554 = vmatpush1.msra.mxu1 %v8846_v18  ;;  %5420 = vmatprep.subr.mxu0 %v6946_v20  ;;  %v9842_v18 = vand.u32 4294901760, %v8924_v21  ;;  %v9853_v21 = vand.u32 4294901760, %v9826_v7  ;;  %v6385_v7 = vld [vmem:[%s8006_s23 + $0x2] ss:$0 sm:$0xff] }
 0x2e4   : > { %6381 = vst.sshfl [vmem:[%s8607_s24 + $0x5] sm:$0x1 pattern:$0x73625140] %v3861_v17  ;;  %5555 = vmatprep.subr.mxu1 %v6946_v20  ;;  %5424 = vmatpush1.msra.mxu0 %v9840_v55 }
 0x2e5   : > { %5557 = vmatpush1.msra.mxu1 %v8851_v33  ;;  %5425 = vmatprep.subr.mxu0 %v6946_v20  ;;  %v9843_v33 = vand.u32 4294901760, %v8942_v25  ;;  %v9855_v25 = vand.u32 4294901760, %v9101_v11 }
 0x2e6   : > { %5558 = vmatprep.subr.mxu1 %v6946_v20  ;;  %5429 = vmatpush1.msra.mxu0 %v9841_v59 }
 0x2e7   : > { %5560 = vmatpush1.msra.mxu1 %v8862_v12  ;;  %5430 = vmatprep.subr.mxu0 %v6946_v20  ;;  %v9844_v12 = vand.u32 4294901760, %v8955_v44 }
 0x2e8   : > { %5561 = vmatprep.subr.mxu1 %v6946_v20  ;;  %5434 = vmatpush1.msra.mxu0 %v9842_v18 }
 0x2e9   : > { %5563 = vmatpush1.msra.mxu1 %v8886_v48  ;;  %5435 = vmatprep.subr.mxu0 %v6946_v20  ;;  %v9847_v48 = vand.u32 4294901760, %v8999_v2  ;;  %v9850_v2 = vand.u32 4294901760, %v9030_v24  ;;  %v9866_v24 = vld [vmem:[#allocation25_spill] sm:$0xff] }
 0x2ea   : > { %5564 = vmatprep.subr.mxu1 %v6946_v20  ;;  %5439 = vmatpush1.msra.mxu0 %v9843_v33 }
 0x2eb   : > { %5566 = vmatpush1.msra.mxu1 %v8895_v16  ;;  %5440 = vmatprep.subr.mxu0 %v6946_v20  ;;  %v9849_v16 = vand.u32 4294901760, %v9017_v37  ;;  %v9864_v37 = vld [vmem:[#allocation13_spill] sm:$0xff] }
 0x2ec   : > { %5567 = vmatprep.subr.mxu1 %v6946_v20  ;;  %5444 = vmatpush1.msra.mxu0 %v9844_v12 }
 0x2ed   : > { %5569 = vmatpush1.msra.mxu1 %v8918_v41  ;;  %5445 = vmatprep.subr.mxu0 %v6946_v20  ;;  %v9852_v41 = vand.u32 4294901760, %v9825_v28 }
 0x2ee   : > { %5570 = vmatprep.subr.mxu1 %v6946_v20  ;;  %5449 = vmatpush1.msra.mxu0 %v9845_v52 }
 0x2ef   : > { %5572 = vmatpush1.msra.mxu1 %v8931_v19  ;;  %5450 = vmatprep.subr.mxu0 %v6946_v20  ;;  %v9854_v19 = vand.u32 4294901760, %v9088_v31 }
 0x2f0   : > { %5573 = vmatprep.subr.mxu1 %v6946_v20  ;;  %5454 = vmatpush1.msra.mxu0 %v9846_v56  ;;  %v9867_v56 = vld [vmem:[#allocation15_spill] sm:$0xff] }
 0x2f1   : > { %5575 = vmatpush1.msra.mxu1 %v8944_v1  ;;  %5455 = vmatprep.subr.mxu0 %v6946_v20 }
 0x2f2   : > { %5576 = vmatprep.subr.mxu1 %v6946_v20  ;;  %5459 = vmatpush1.msra.mxu0 %v9847_v48  ;;  %v9868_v48 = vld [vmem:[#allocation16_spill] sm:$0xff] }
 0x2f3   : > { %5578 = vmatpush1.msra.mxu1 %v8957_v0  ;;  %5460 = vmatprep.subr.mxu0 %v6946_v20 }
 0x2f4   : > { %5579 = vmatprep.subr.mxu1 %v6946_v20  ;;  %5464 = vmatpush1.msra.mxu0 %v9848_v35  ;;  %v9869_v35 = vld [vmem:[#allocation27_spill] sm:$0xff] }
 0x2f5   : > { %5581 = vmatpush1.msra.mxu1 %v8973_v8  ;;  %5465 = vmatprep.subr.mxu0 %v6946_v20 }
 0x2f6   : > { %5582 = vmatprep.subr.mxu1 %v6946_v20  ;;  %5469 = vmatpush1.msra.mxu0 %v9849_v16  ;;  %v9870_v16 = vld [vmem:[#allocation14_spill] sm:$0xff] }
 0x2f7   : > { %5584 = vmatpush1.msra.mxu1 %v8986_v58  ;;  %5482 = vmatprep.subr.mxu0 %v6946_v20 }
 0x2f8   : > { %5585 = vmatprep.subr.mxu1 %v6946_v20  ;;  %5486 = vmatpush2.msra.mxu0 %v9850_v2  ;;  %v9871_v2 = vld [vmem:[#allocation26_spill] sm:$0xff] }
 0x2f9   : > { %5587 = vmatpush1.msra.mxu1 %v8991_v4  ;;  %5487 = vmatprep.subr.mxu0 %v6946_v20  ;;  %v9862_v4 = vld [vmem:[#allocation12_spill] sm:$0xff] }
 0x2fa   : > { %5600 = vmatprep.subr.mxu1 %v6946_v20  ;;  %5491 = vmatpush2.msra.mxu0 %v9851_v50  ;;  %v9872_v50 = vld [vmem:[#allocation29_spill] sm:$0xff] }
 0x2fb   : > { %5602 = vmatpush2.msra.mxu1 %v9003_v43  ;;  %5492 = vmatprep.subr.mxu0 %v6946_v20 }
 0x2fc   : > { %5603 = vmatprep.subr.mxu1 %v6946_v20  ;;  %5496 = vmatpush2.msra.mxu0 %v9852_v41 }
 0x2fd   : > { %5605 = vmatpush2.msra.mxu1 %v9025_v36  ;;  %5497 = vmatprep.subr.mxu0 %v6946_v20 }
 0x2fe   : > { %5606 = vmatprep.subr.mxu1 %v6946_v20  ;;  %5501 = vmatpush2.msra.mxu0 %v9853_v21 }
 0x2ff   : > { %5608 = vmatpush2.msra.mxu1 %v9038_v45  ;;  %5502 = vmatprep.subr.mxu0 %v6946_v20  ;;  %v9856_v45 = vand.u32 4294901760, %v9113_v40 }
 0x300   : > { %5609 = vmatprep.subr.mxu1 %v6946_v20  ;;  %5506 = vmatpush2.msra.mxu0 %v9854_v19  ;;  %v4040_v58 = vpop.f32.mrf.mxu1 }
 0x301   : > { %5611 = vmatpush2.msra.mxu1 %v9051_v6  ;;  %5507 = vmatprep.subr.mxu0 %v6946_v20  ;;  %v9857_v6 = vand.u32 4294901760, %v9126_v5 }
 0x302   : > { %5612 = vmatprep.subr.mxu1 %v6946_v20  ;;  %5511 = vmatpush2.msra.mxu0 %v9855_v25  ;;  %v6700_v1 = vpop.f32.mrf.mxu1 }
 0x303   : > { %5614 = vmatpush2.msra.mxu1 %v9064_v47  ;;  %5512 = vmatprep.subr.mxu0 %v6946_v20  ;;  %v9858_v47 = vand.u32 4294901760, %v9138_v26 }
 0x304   : > { %5615 = vmatprep.subr.mxu1 %v6946_v20  ;;  %5516 = vmatpush2.msra.mxu0 %v9856_v45 }
 0x305   : > { %5617 = vmatpush2.msra.mxu1 %v9077_v38  ;;  %5517 = vmatprep.subr.mxu0 %v6946_v20  ;;  %v9859_v38 = vand.u32 4294901760, %v9150_v23 }
 0x306   : > { %5618 = vmatprep.subr.mxu1 %v6946_v20  ;;  %5521 = vmatpush2.msra.mxu0 %v9857_v6 }
 0x307   : > { %5620 = vmatpush2.msra.mxu1 %v9090_v62  ;;  %5522 = vmatprep.subr.mxu0 %v6946_v20 }
 0x308   : > { %5621 = vmatprep.subr.mxu1 %v6946_v20  ;;  %5526 = vmatpush2.msra.mxu0 %v9858_v47  ;;  %v3954_v44 = vpop.f32.mrf.mxu0 }
 0x309   : > { %5623 = vmatpush2.msra.mxu1 %v9103_v60  ;;  %5527 = vmatprep.subr.mxu0 %v6946_v20  ;;  %v4041_v62 = vadd.f32 %v4040_v58, %v3954_v44 }
 0x30a   : > { %5624 = vmatprep.subr.mxu1 %v6946_v20  ;;  %5531 = vmatpush2.msra.mxu0 %v9859_v38  ;;  %v6691_v0 = vpop.f32.mrf.mxu0 }
 0x30b   : > { %5533 = vmatprep.mubr.f32.mxu0 %v9787_v63  ;;  %5626 = vmatpush2.msra.mxu1 %v9115_v15 }
 0x30c   : > { %5535 = vmatmul.mubr.f32.vlgmr.msra.gmra.mxu0 %v9789_v27  ;;  %5627 = vmatprep.subr.mxu1 %v6946_v20  ;;  %v4194_v36 = vpop.f32.mrf.mxu1 }
 0x30d   : > { %5629 = vmatpush2.msra.mxu1 %v9860_v9  ;;  %5631 = vmatprep.mubr.f32.mxu1 %v9787_v63  ;;  %v9863_v63 = vld [vmem:[#allocation30_spill] sm:$0xff] }
 0x30e   : > { %5633 = vmatmul.mubr.f32.vlgmr.msra.gmra.mxu1 %v9789_v27  ;;  %v6718_v8 = vpop.f32.mrf.mxu1  ;;  %6788 = vmatprep.subr.mxu1 %v6946_v20 }
 0x30f   : > { %6789 = vmatpush3.xpose.msra.mxu1 %v9861_v14  ;;  %6779 = vmatprep.subr.mxu0 %v6946_v20 }
 0x310   : > { %6790 = vmatprep.subr.mxu1 %v6946_v20  ;;  %6780 = vmatpush3.xpose.msra.mxu0 %v9862_v4 }
 0x311   : > { %6781 = vmatprep.subr.mxu0 %v6946_v20  ;;  %6794 = vmatprep.mubr.msk.f32.mxu1 %vm6947_vm0, %v6946_v20 }
 0x312   : > { %6785 = vmatprep.mubr.msk.f32.mxu0 %vm6947_vm0, %v6946_v20 }
 0x313   : > { %6791 = vmatpush3.xpose.msra.mxu1 %v9863_v63 }
 0x314   : > { %v4118_v27 = vpop.f32.mrf.mxu0  ;;  %6792 = vmatprep.subr.mxu1 %v6946_v20  ;;  %6782 = vmatpush3.xpose.msra.mxu0 %v9864_v37 }
 0x315   : > { %6783 = vmatprep.subr.mxu0 %v6946_v20  ;;  %v4119_v31 = vadd.f32 %v4118_v27, %v4041_v62 }
 0x316   : > { %v6709_v43 = vpop.f32.mrf.mxu0 }
 0x317   : > { %6793 = vmatpush3.xpose.msra.mxu1 %v9865_v10  ;;  %v4195_v26 = vadd.f32 %v4194_v36, %v4119_v31 }
 0x318   : > { %v4348_v34 = vpop.f32.mrf.mxu1  ;;  %6806 = vmatprep.subr.mxu1 %v6946_v20  ;;  %6784 = vmatpush3.xpose.msra.mxu0 %v9866_v24 }
 0x319   : > { %6797 = vmatprep.subr.mxu0 %v6946_v20 }
 0x31a   : > { %v6736_v60 = vpop.f32.mrf.mxu1 }
 0x31c   : > { %v4519_v40 = vpop.f32.mrf.mxu1 }
 0x31e   : > { %v6750_v11 = vpop.f32.mrf.mxu1 }
 0x320   : > { %v4274_v15 = vpop.f32.mrf.mxu0  ;;  %v4670_v5 = vpop.f32.mrf.mxu1 }
 0x321   : > { %v4275_v23 = vadd.f32 %v4274_v15, %v4195_v26 }
 0x322   : > { %v6727_v28 = vpop.f32.mrf.mxu0  ;;  %v6764_v13 = vpop.f32.mrf.mxu1 }
 0x323   : > { %v4349_v54 = vadd.f32 %v4348_v34, %v4275_v23 }
 0x324   : > { %v4438_v46 = vpop.f32.mrf.mxu0 }
 0x325   : > { %6382 = vst.msk [vmem:[%s8738_s21 + $0x2] sm:$0x3] %vm2566_vm5, %v4349_v54  ;;  %v4439_v51 = vadd.f32 %v6385_v7, %v4438_v46 }
 0x326   : > { %v6743_v49 = vpop.f32.mrf.mxu0 }
 0x327   : > { %v4520_v53 = vadd.f32 %v4519_v40, %v4439_v51 }
 0x328   : > { %v4595_v42 = vpop.f32.mrf.mxu0 }
 0x329   : > { %v4596_v57 = vadd.f32 %v4595_v42, %v4520_v53 }
 0x32a   : > { %v6757_v29 = vpop.f32.mrf.mxu0 }
 0x32b   : > { %v4671_v32 = vadd.f32 %v4670_v5, %v4596_v57  ;;  %v4820_v30 = vpop.f32.mrf.mxu1 }
 0x32c   : > { %v4747_v39 = vpop.f32.mrf.mxu0 }
 0x32d   : > { %v4748_v22 = vadd.f32 %v4747_v39, %v4671_v32  ;;  %v6778_v17 = vpop.f32.mrf.mxu1 }
 0x32e   : > { %v6771_v61 = vpop.f32.mrf.mxu0 }
 0x32f   : > { %v4821_v55 = vadd.f32 %v4820_v30, %v4748_v22 }
 0x331   : > { %v5734_v59 = vand.u32 4294901760, %v4821_v55 }
 0x333   : > { %v5735_v18 = vsub.f32 %v4821_v55, %v5734_v59  ;;  %6795 = vmatmul.mubr.f32.vlgmr.msra.gmra.mxu1 %v5734_v59 }
 0x334   : > { %6807 = vmatpush3.xpose.msra.mxu1 %v9862_v4  ;;  %6812 = vmatprep.mubr.msk.f32.mxu1 %vm6947_vm0, %v6946_v20 }
 0x335   : > { %v5736_v33 = vand.u32 4294901760, %v5735_v18  ;;  %6808 = vmatprep.subr.mxu1 %v6946_v20 }
 0x337   : > { %v5737_v12 = vsub.f32 %v5735_v18, %v5736_v33 }
 0x338   : > { %6809 = vmatpush3.xpose.msra.mxu1 %v9864_v37 }
 0x339   : > { %6810 = vmatprep.subr.mxu1 %v6946_v20  ;;  %v5738_v52 = vand.u32 4294901760, %v5737_v12 }
 0x33b   : > { %6786 = vmatmul.mubr.f32.vlgmr.msra.gmra.mxu0 %v5738_v52 }
 0x33c   : > { %6798 = vmatpush3.xpose.msra.mxu0 %v9867_v56  ;;  %6811 = vmatpush3.xpose.msra.mxu1 %v9866_v24 }
 0x33d   : > { %6799 = vmatprep.subr.mxu0 %v6946_v20  ;;  %6824 = vmatprep.subr.mxu1 %v6946_v20 }
 0x33e   : > { %6803 = vmatprep.mubr.msk.f32.mxu0 %vm6947_vm0, %v6946_v20 }
 0x33f   : > { %6813 = vmatmul.mubr.f32.vlgmr.msra.gmra.mxu1 %v5736_v33 }
 0x340   : > { %6800 = vmatpush3.xpose.msra.mxu0 %v9868_v48  ;;  %6825 = vmatpush3.xpose.msra.mxu1 %v9862_v4 }
 0x341   : > { %6801 = vmatprep.subr.mxu0 %v6946_v20  ;;  %6826 = vmatprep.subr.mxu1 %v6946_v20 }
 0x342   : > { %6830 = vmatprep.mubr.msk.f32.mxu1 %vm6947_vm0, %v6946_v20 }
 0x344   : > { %6802 = vmatpush3.xpose.msra.mxu0 %v9869_v35  ;;  %6827 = vmatpush3.xpose.msra.mxu1 %v9864_v37 }
 0x345   : > { %6815 = vmatprep.subr.mxu0 %v6946_v20  ;;  %6828 = vmatprep.subr.mxu1 %v6946_v20 }
 0x347   : > { %6804 = vmatmul.mubr.f32.vlgmr.msra.gmra.mxu0 %v5735_v18 }
 0x348   : > { %6816 = vmatpush3.xpose.msra.mxu0 %v9870_v16  ;;  %6829 = vmatpush3.xpose.msra.mxu1 %v9866_v24 }
 0x349   : > { %6817 = vmatprep.subr.mxu0 %v6946_v20  ;;  %6821 = vmatprep.mubr.msk.f32.mxu0 %vm6947_vm0, %v6946_v20 }
 0x34b   : > { %6831 = vmatmul.mubr.f32.vlgmr.msra.gmra.mxu1 %v5734_v59 }
 0x34c   : > { %6818 = vmatpush3.xpose.msra.mxu0 %v9871_v2 }
 0x34d   : > { %6819 = vmatprep.subr.mxu0 %v6946_v20 }
 0x350   : > { %6820 = vmatpush3.xpose.msra.mxu0 %v9872_v50 }
 0x353   : > { %6822 = vmatmul.mubr.f32.vlgmr.msra.gmra.mxu0 %v5734_v59 }
 0x361   : > { %v4956_v41 = vpop.f32.mrf.mxu0 }
 0x363   : > { %v4958_v21 = vpop.f32.mrf.mxu0 }
 0x364   : > { %v5158_v19 = vpop.f32.mrf.mxu1 }
 0x365   : > { %v5159_v58 = vadd.f32 %v5158_v19, %v4956_v41 }
 0x366   : > { %v5160_v25 = vpop.f32.mrf.mxu1 }
 0x396   : > { %v5284_v1 = vpop.f32.mrf.mxu0 }
 0x397   : > { %v5285_v44 = vadd.f32 %v5284_v1, %v5159_v58 }
 0x398   : > { %v5286_v45 = vpop.f32.mrf.mxu0 }
 0x399   : > { %v5386_v6 = vpop.f32.mrf.mxu1 }
 0x39a   : > { %v5387_v38 = vadd.f32 %v5386_v6, %v5285_v44 }
 0x39b   : > { %v5388_v47 = vpop.f32.mrf.mxu1 }
 0x3cc   : > { %v5536_v0 = vpop.f32.mrf.mxu0 }
 0x3cd   : > { %v5537_v36 = vadd.f32 %v5536_v0, %v5387_v38 }
 0x3ce   : > { %v5634_v9 = vpop.f32.mrf.mxu1  ;;  %v5538_v20 = vpop.f32.mrf.mxu0 }
 0x3cf   : > { %v5635_v8 = vadd.f32 %v5634_v9, %v5537_v36 }
 0x3d0   : > { %v5636_v14 = vpop.f32.mrf.mxu1 }
 0x3d1   : > { %v5638_v4 = vadd.f32 %v5635_v8, %v4821_v55 }
 0x3d3   : > { %v5646_v63 = vrot.slane %v5638_v4, %v9837_v3 }
 0x3d5   : > { %v5647_v27 = vcombine.high %v5646_v63, %v5646_v63  ;;  %6412 = vst.sshfl [vmem:[%s8607_s24 + $0x2] sm:$0x1 pattern:$0x73625140] %v5646_v63 }
 0x3d7   : > { %6413 = vst.sshfl [vmem:[%s8607_s24 + $0x6] sm:$0x1 pattern:$0x73625140] %v5647_v27 }
 0x3dc   : > { %v6170_v13 = vld [vmem:[%s8607_s24] sm:$0xf] (%p9873_p7) }
 0x3dd   : > { %6171 = vst [vmem:[%s6153_s11] sm:$0xf] (%p9873_p7), %v6170_v13 }
 0x3de   : > { %v6172_v54 = vld [vmem:[%s8607_s24 + $0x4] sm:$0xf] (%p9873_p7) }
 0x3df   : > { %6173 = vst [vmem:[%s6153_s11 + $0x8] sm:$0xf] (%p9873_p7), %v6172_v54 }
 0x3f3   : > { %v5826_v37 = vpop.f32.mrf.mxu1 }
 0x3f5   : > { %v6796_v43 = vpop.f32.mrf.mxu1 }
 0x3fb   : > { %v5740_v10 = vpop.f32.mrf.mxu0 }
 0x3fc   : > { %v5827_v11 = vadd.f32 %v5826_v37, %v5740_v10 }
 0x3fd   : > { %v6787_v34 = vpop.f32.mrf.mxu0 }
 0x3ff   : > { %v5980_v24 = vpop.f32.mrf.mxu1 }
 0x401   : > { %v6814_v62 = vpop.f32.mrf.mxu1 }
 0x407   : > { %v5904_v60 = vpop.f32.mrf.mxu0 }
 0x408   : > { %v5905_v15 = vadd.f32 %v5904_v60, %v5827_v11 }
 0x409   : > { %v6805_v31 = vpop.f32.mrf.mxu0 }
 0x40a   : > { %v5981_v5 = vadd.f32 %v5980_v24, %v5905_v15 }
 0x40b   : > { %v6134_v40 = vpop.f32.mrf.mxu1 }
 0x40d   : > { %v6832_v26 = vpop.f32.mrf.mxu1 }
 0x413   : > { %v6060_v23 = vpop.f32.mrf.mxu0 }
 0x414   : > { %v6061_v28 = vadd.f32 %v6060_v23, %v5981_v5  ;;  %6151 = sbr.rel (!%p9873_p7) target bundleno = 1049 (0x419), region = 128 }
 0x415   : > { %v6823_v3 = vpop.f32.mrf.mxu0 }
 0x416   : > { %v6135_v7 = vadd.f32 %v6134_v40, %v6061_v28 }
 0x418   : > { %6414 = vst.msk [vmem:[%s8738_s21 + $0x4] sm:$0x3] %vm2566_vm5, %v6135_v7 }
 0x419 PF: > { %p18_p8 = scmp.ge.s32.totalorder %s7011_s29, 4   ;;  %s9874_s24 = smov %s6932_s25 }
 0x41a   : > { %s9875_s25 = smov %s6936_s26  ;;  %s9876_s26 = smov %s7021_s9 }
 0x41b   : > { %s9877_s27 = smov %s7011_s29  ;;  %20 = sbr.rel (!%p18_p8) target bundleno = 3 (0x3), region = 238 }
 0x420   :  { %6222 = vsyncpa [#allocation5], 1 }
 0x421   :  { %6224 = vsyncpa [#allocation5 + $0x1], 1 }

// kernel: smpl_forward.3
= control target key start
LH: loop header
LB: loop body
LE: loop exit
PB: predicated region body
PF: predicated region fallthrough
CT: control target
= control target key end

     0   :  { %vm30_vm0 = vcmask 195584   ;;  %v2051_v9 = vmov 0.0   ;;  %s2532_s0 = inlined_call_operand.vmem [shape: f32[32,24], index: 0, kind: input, shape index: {}]   ;;  %s2533_s1 = inlined_call_operand.vmem [shape: f32[24,256], index: 1, kind: input, shape index: {}]   ;;  %s2534_s2 = inlined_call_operand.vmem [shape: f32[19,256], index: 2, kind: input, shape index: {}]   ;;  %s2535_s3 = inlined_call_operand.vmem [shape: f32[2,3,256], index: 3, kind: input, shape index: {}]   ;;  %s2536_s4 = inlined_call_operand.hbm [shape: f32[2,3,256], index: 4, kind: output, shape index: {0}]   ;;  %s2537_s5 = inlined_call_operand.vmem [shape: f32[2,3,19], index: 5, kind: output, shape index: {1}]  }
   0x1   :  { %v29_v0 = vld [vmem:[%s2533_s1 + $0x28] sm:$0xff]  ;;  %v28_v1 = vld [vmem:[%s2533_s1 + $0x20] sm:$0xff]  ;;  %v27_v2 = vld [vmem:[%s2533_s1 + $0x18] sm:$0xff]  ;;  %113 = vmatprep.mubr.f32.mxu0 %v2051_v9  ;;  %252 = vmatprep.mubr.f32.mxu1 %v2051_v9 }
   0x2   :  { %v2094_v3 = vand.u32 4294901760, %v29_v0  ;;  %v2096_v4 = vand.u32 4294901760, %v28_v1  ;;  %v2098_v5 = vand.u32 4294901760, %v27_v2  ;;  %v26_v6 = vld [vmem:[%s2533_s1 + $0x10] sm:$0xff]  ;;  %v25_v7 = vld [vmem:[%s2533_s1 + $0x8] sm:$0xff]  ;;  %v24_v8 = vld [vmem:[%s2533_s1] sm:$0xff] }
   0x3   :  { %v2111_v10 = vand.u32 4294901760, %v26_v6  ;;  %v2113_v11 = vand.u32 4294901760, %v25_v7  ;;  %v2115_v12 = vand.u32 4294901760, %v24_v8  ;;  %v20_v13 = vld [vmem:[%s2532_s0] sm:$0xff]  ;;  %v21_v14 = vld [vmem:[%s2532_s0 + $0x8] sm:$0xff] }
   0x4   :  { %70 = vmatprep.subr.mxu0 %v2094_v3  ;;  %v2125_v15 = vsub.f32 %v29_v0, %v2094_v3  ;;  %v32_v16 = vsel %vm30_vm0, %v20_v13, 0  ;;  %v2129_v17 = vsub.f32 %v28_v1, %v2096_v4  ;;  %v2132_v18 = vsub.f32 %v27_v2, %v2098_v5 }
   0x5   :  { %11 = vsyncpa [#allocation3], 0  ;;  %72 = vmatpush1.msra.mxu0 %v2096_v4  ;;  %v2135_v19 = vand.u32 4294901760, %v32_v16  ;;  %v2138_v20 = vsub.f32 %v26_v6, %v2111_v10  ;;  %v2141_v21 = vsub.f32 %v25_v7, %v2113_v11  ;;  %v35_v22 = vsel %vm30_vm0, %v21_v14, 0  ;;  %v22_v39 = vld [vmem:[%s2532_s0 + $0x10] sm:$0xff]  ;;  %v23_v40 = vld [vmem:[%s2532_s0 + $0x18] sm:$0xff] }
   0x6   :  { %74 = vmatprep.subr.mxu0 %v2098_v5  ;;  %v186_v23 = vand.u32 4294901760, %v2125_v15  ;;  %v192_v24 = vand.u32 4294901760, %v2129_v17  ;;  %v198_v25 = vand.u32 4294901760, %v2132_v18  ;;  %v2148_v26 = vand.u32 4294901760, %v35_v22  ;;  %v712_v1 = vld [vmem:[%s2534_s2 + $0x28] sm:$0x7] }
   0x7   :  { %76 = vmatpush1.msra.mxu0 %v2111_v10  ;;  %v2152_v27 = vsub.f32 %v32_v16, %v2135_v19  ;;  %v204_v28 = vand.u32 4294901760, %v2138_v20  ;;  %v210_v29 = vand.u32 4294901760, %v2141_v21  ;;  %v2157_v30 = vsub.f32 %v24_v8, %v2115_v12  ;;  %v710_v8 = vld [vmem:[%s2534_s2 + $0x18] sm:$0xff] }
   0x8   :  { %78 = vmatprep.subr.mxu0 %v2113_v11  ;;  %v187_v31 = vsub.f32 %v2125_v15, %v186_v23  ;;  %v193_v32 = vsub.f32 %v2129_v17, %v192_v24  ;;  %v199_v33 = vsub.f32 %v2132_v18, %v198_v25  ;;  %v2170_v34 = vsub.f32 %v35_v22, %v2148_v26 }
   0x9   :  { %80 = vmatpush1.msra.mxu0 %v2115_v12  ;;  %v116_v35 = vand.u32 4294901760, %v2152_v27  ;;  %v205_v36 = vsub.f32 %v2138_v20, %v204_v28  ;;  %v211_v37 = vsub.f32 %v2141_v21, %v210_v29  ;;  %v216_v38 = vand.u32 4294901760, %v2157_v30 }
   0xa   :  { %v188_v41 = vand.u32 4294901760, %v187_v31  ;;  %v194_v42 = vand.u32 4294901760, %v193_v32  ;;  %v200_v43 = vand.u32 4294901760, %v199_v33  ;;  %309 = vmatprep.subr.mxu0 %v2125_v15  ;;  %v127_v44 = vand.u32 4294901760, %v2170_v34 }
   0xb   :  { %v117_v45 = vsub.f32 %v2152_v27, %v116_v35  ;;  %v206_v46 = vand.u32 4294901760, %v205_v36  ;;  %v217_v47 = vsub.f32 %v2157_v30, %v216_v38  ;;  %v212_v48 = vand.u32 4294901760, %v211_v37 }
   0xc   :  { %189 = vmatprep.subr.mxu1 %v188_v41  ;;  %v128_v49 = vsub.f32 %v2170_v34, %v127_v44  ;;  %v38_v50 = vsel %vm30_vm0, %v22_v39, 0  ;;  %v41_v51 = vsel %vm30_vm0, %v23_v40, 0  ;;  %v2278_v2 = vand.u32 4294901760, %v712_v1 }
   0xd   :  { %v118_v52 = vand.u32 4294901760, %v117_v45  ;;  %195 = vmatpush1.msra.mxu1 %v194_v42  ;;  %v218_v53 = vand.u32 4294901760, %v217_v47  ;;  %v2200_v54 = vand.u32 4294901760, %v38_v50  ;;  %v2202_v55 = vand.u32 4294901760, %v41_v51 }
   0xe   :  { %201 = vmatprep.subr.mxu1 %v200_v43  ;;  %v129_v56 = vand.u32 4294901760, %v128_v49  ;;  %2565 = vst [vmem:[#allocation5_spill] sm:$0xff] %v2278_v2  ;;  %vm821_vm1 = vcmask 1040384   ;;  %vm824_vm2 = vcmask 1041408  }
   0xf   :  { %119 = vmatmul.mubr.f32.vlgmr.msra.gmra.mxu0 %v118_v52  ;;  %207 = vmatpush1.msra.mxu1 %v206_v46  ;;  %v137_v57 = vsub.f32 %v38_v50, %v2200_v54  ;;  %v148_v58 = vsub.f32 %v41_v51, %v2202_v55 }
  0x10   :  { %124 = vmatprep.mubr.f32.mxu0 %v2051_v9  ;;  %213 = vmatprep.subr.mxu1 %v212_v48 }
  0x11   :  { %219 = vmatpush1.msra.mxu1 %v218_v53  ;;  %312 = vmatpush1.msra.mxu0 %v2129_v17  ;;  %v138_v59 = vand.u32 4294901760, %v137_v57  ;;  %v149_v60 = vand.u32 4294901760, %v148_v58  ;;  %v708_v17 = vld [vmem:[%s2534_s2 + $0x8] sm:$0xff] }
  0x12   :  { %254 = vmatmul.mubr.f32.vlgmr.msra.gmra.mxu1 %v2135_v19  ;;  %417 = vmatprep.subr.mxu1 %v2094_v3  ;;  %v2335_v22 = vand.u32 4294901760, %v708_v17 }
  0x13   :  { %130 = vmatmul.mubr.f32.gmra.mxu0 %v129_v56  ;;  %419 = vmatpush1.msra.mxu1 %v2096_v4  ;;  %v139_v61 = vsub.f32 %v137_v57, %v138_v59  ;;  %v150_v62 = vsub.f32 %v148_v58, %v149_v60 }
  0x14   :  { %135 = vmatprep.mubr.f32.mxu0 %v2051_v9  ;;  %259 = vmatprep.mubr.f32.mxu1 %v2051_v9 }
  0x15   :  { %v140_v63 = vand.u32 4294901760, %v139_v61  ;;  %315 = vmatprep.subr.mxu0 %v2132_v18  ;;  %421 = vmatprep.subr.mxu1 %v2098_v5  ;;  %v151_v0 = vand.u32 4294901760, %v150_v62 }
  0x16   :  { %261 = vmatmul.mubr.f32.gmra.mxu1 %v2148_v26  ;;  %318 = vmatpush1.msra.mxu0 %v2138_v20 }
  0x17   :  { %141 = vmatmul.mubr.f32.gmra.mxu0 %v140_v63  ;;  %266 = vmatprep.mubr.f32.mxu1 %v2051_v9 }
  0x18   :  { %146 = vmatprep.mubr.f32.mxu0 %v2051_v9  ;;  %423 = vmatpush1.msra.mxu1 %v2111_v10 }
  0x19   :  { %321 = vmatprep.subr.mxu0 %v2141_v21  ;;  %425 = vmatprep.subr.mxu1 %v2113_v11 }
  0x1a   :  { %268 = vmatmul.mubr.f32.gmra.mxu1 %v2200_v54  ;;  %324 = vmatpush1.msra.mxu0 %v2157_v30 }
  0x1b   :  { %152 = vmatmul.mubr.f32.gmra.mxu0 %v151_v0  ;;  %273 = vmatprep.mubr.f32.mxu1 %v2051_v9 }
  0x1c   :  { %357 = vmatprep.mubr.f32.mxu0 %v2051_v9  ;;  %427 = vmatpush1.msra.mxu1 %v2115_v12 }
  0x1d   :  { %526 = vmatprep.subr.mxu0 %v186_v23  ;;  %635 = vmatprep.subr.mxu1 %v2094_v3  ;;  %v711_v3 = vld [vmem:[%s2534_s2 + $0x20] sm:$0x7] }
  0x1e   :  { %275 = vmatmul.mubr.f32.gmra.mxu1 %v2202_v55 }
  0x1f   :  { %360 = vmatmul.mubr.f32.vlgmr.msra.gmra.mxu0 %v2152_v27  ;;  %460 = vmatprep.mubr.f32.mxu1 %v2051_v9 }
  0x20   :  { %365 = vmatprep.mubr.f32.mxu0 %v2051_v9  ;;  %530 = vmatpush1.msra.mxu0 %v192_v24 }
  0x21   :  { %534 = vmatprep.subr.mxu0 %v198_v25 }
  0x22   :  { %464 = vmatmul.mubr.f32.vlgmr.msra.gmra.mxu1 %v116_v35  ;;  %538 = vmatpush1.msra.mxu0 %v204_v28 }
  0x23   :  { %368 = vmatmul.mubr.f32.gmra.mxu0 %v2170_v34  ;;  %637 = vmatpush1.msra.mxu1 %v2096_v4  ;;  %v2283_v4 = vand.u32 4294901760, %v711_v3 }
  0x24   :  { %373 = vmatprep.mubr.f32.mxu0 %v2051_v9  ;;  %469 = vmatprep.mubr.f32.mxu1 %v2051_v9 }
  0x25   :  { %639 = vmatprep.subr.mxu1 %v2098_v5  ;;  %542 = vmatprep.subr.mxu0 %v210_v29  ;;  %v2286_v5 = vsub.f32 %v712_v1, %v2278_v2  ;;  %v2290_v6 = vsub.f32 %v711_v3, %v2283_v4  ;;  %v713_v3 = vld [vmem:[%s2535_s3] sm:$0x77] }
  0x26   :  { %473 = vmatmul.mubr.f32.gmra.mxu1 %v127_v44  ;;  %546 = vmatpush1.msra.mxu0 %v216_v38 }
  0x27   :  { %376 = vmatmul.mubr.f32.gmra.mxu0 %v137_v57  ;;  %478 = vmatprep.mubr.f32.mxu1 %v2051_v9  ;;  %2566 = vst [vmem:[#allocation6_spill] sm:$0xff] %v2286_v5  ;;  %v2294_v7 = vand.u32 4294901760, %v2286_v5 }
  0x28   :  { %381 = vmatprep.mubr.f32.mxu0 %v2051_v9  ;;  %641 = vmatpush1.msra.mxu1 %v2111_v10  ;;  %v2302_v10 = vand.u32 4294901760, %v710_v8 }
  0x29   :  { %643 = vmatprep.subr.mxu1 %v2113_v11  ;;  %859 = vmatprep.subr.mxu0 %v2278_v2  ;;  %2567 = vst [vmem:[#allocation7_spill] sm:$0xff] %v2294_v7  ;;  %v709_v11 = vld [vmem:[%s2534_s2 + $0x10] sm:$0xff] }
  0x2a   :  { %482 = vmatmul.mubr.f32.gmra.mxu1 %v138_v59  ;;  %v2312_v14 = vsub.f32 %v710_v8, %v2302_v10  ;;  %v2314_v15 = vand.u32 4294901760, %v709_v11 }
  0x2b   :  { %384 = vmatmul.mubr.f32.gmra.mxu0 %v148_v58  ;;  %487 = vmatprep.mubr.f32.mxu1 %v2051_v9 }
  0x2c   :  { %579 = vmatprep.mubr.f32.mxu0 %v2051_v9  ;;  %645 = vmatpush1.msra.mxu1 %v2115_v12  ;;  %v947_v12 = vsub.f32 %v2286_v5, %v2294_v7  ;;  %v2330_v20 = vand.u32 4294901760, %v2312_v14  ;;  %v2333_v21 = vsub.f32 %v709_v11, %v2314_v15 }
  0x2e   :  { %491 = vmatmul.mubr.f32.gmra.mxu1 %v149_v60  ;;  %v2317_v16 = vand.u32 4294901760, %v947_v12  ;;  %2571 = vst [vmem:[#allocation11_spill] sm:$0xff] %v2330_v20  ;;  %2572 = vst [vmem:[#allocation12_spill] sm:$0xff] %v2333_v21  ;;  %v959_v24 = vsub.f32 %v2312_v14, %v2330_v20  ;;  %v2343_v25 = vand.u32 4294901760, %v2333_v21 }
  0x2f   :  { %581 = vmatmul.mubr.f32.vlgmr.msra.gmra.mxu0 %v2135_v19  ;;  %678 = vmatprep.mubr.f32.mxu1 %v2051_v9 }
  0x30   :  { %586 = vmatprep.mubr.f32.mxu0 %v2051_v9  ;;  %861 = vmatpush1.xpose.msra.mxu0 %v2283_v4  ;;  %2569 = vst [vmem:[#allocation9_spill] sm:$0xff] %v2317_v16  ;;  %2573 = vst [vmem:[#allocation13_spill] sm:$0xff] %v2343_v25  ;;  %v2353_v28 = vand.u32 4294901760, %v959_v24  ;;  %v965_v29 = vsub.f32 %v2333_v21, %v2343_v25 }
  0x31   :  { %863 = vmatprep.subr.mxu0 %v2302_v10  ;;  %949 = vmatprep.subr.mxu1 %v2317_v16 }
  0x32   :  { %680 = vmatmul.mubr.f32.vlgmr.msra.gmra.mxu1 %v2135_v19  ;;  %v707_v19 = vld [vmem:[%s2534_s2] sm:$0xff]  ;;  %2576 = vst [vmem:[#allocation16_spill] sm:$0xff] %v2353_v28  ;;  %v2365_v32 = vand.u32 4294901760, %v965_v29 }
  0x33   :  { %588 = vmatmul.mubr.f32.gmra.mxu0 %v2148_v26  ;;  %685 = vmatprep.mubr.f32.mxu1 %v2051_v9  ;;  %v2337_v23 = vand.u32 4294901760, %v707_v19 }
  0x34   :  { %593 = vmatprep.mubr.f32.mxu0 %v2051_v9  ;;  %865 = vmatpush1.xpose.msra.mxu0 %v2314_v15  ;;  %2579 = vst [vmem:[#allocation19_spill] sm:$0xff] %v2365_v32 }
  0x35   :  { %v2349_v27 = vsub.f32 %v707_v19, %v2337_v23  ;;  %867 = vmatprep.subr.mxu0 %v2335_v22 }
  0x36   :  { %687 = vmatmul.mubr.f32.gmra.mxu1 %v2148_v26  ;;  %v2346_v26 = vsub.f32 %v708_v17, %v2335_v22 }
  0x37   :  { %595 = vmatmul.mubr.f32.gmra.mxu0 %v2200_v54  ;;  %692 = vmatprep.mubr.f32.mxu1 %v2051_v9  ;;  %2575 = vst [vmem:[#allocation15_spill] sm:$0xff] %v2349_v27  ;;  %v2361_v31 = vand.u32 4294901760, %v2349_v27 }
  0x38   :  { %600 = vmatprep.mubr.f32.mxu0 %v2051_v9  ;;  %2574 = vst [vmem:[#allocation14_spill] sm:$0xff] %v2346_v26  ;;  %869 = vmatpush1.xpose.msra.mxu0 %v2337_v23  ;;  %v2358_v30 = vand.u32 4294901760, %v2346_v26 }
  0x39   :  { %2578 = vst [vmem:[#allocation18_spill] sm:$0xff] %v2361_v31  ;;  %1048 = vmatprep.subr.mxu0 %v2286_v5  ;;  %v977_v34 = vsub.f32 %v2349_v27, %v2361_v31 }
  0x3a   :  { %694 = vmatmul.mubr.f32.gmra.mxu1 %v2200_v54  ;;  %2577 = vst [vmem:[#allocation17_spill] sm:$0xff] %v2358_v30  ;;  %v971_v33 = vsub.f32 %v2346_v26, %v2358_v30  ;;  %v715_v54 = vlaneseq }
  0x3b   :  { %602 = vmatmul.mubr.f32.gmra.mxu0 %v2202_v55  ;;  %699 = vmatprep.mubr.f32.mxu1 %v2051_v9  ;;  %v2300_v9 = vand.u32 4294901760, %v2290_v6  ;;  %v2374_v36 = vand.u32 4294901760, %v977_v34 }
  0x3c   :  { %v2372_v35 = vand.u32 4294901760, %v971_v33  ;;  %v716_v59 = vshrl.u32 %v715_v54, 7  ;;  %v2023_v33 = vld [vmem:[%s2535_s3 + $0x8] sm:$0x77]  ;;  %s2052_s3 = smov [#allocation2]  }
  0x3d   :  { %2568 = vst [vmem:[#allocation8_spill] sm:$0xff] %v2300_v9  ;;  %v953_v13 = vsub.f32 %v2290_v6, %v2300_v9  ;;  %2581 = vst [vmem:[#allocation21_spill] sm:$0xff] %v2374_v36  ;;  %s2008_s26 = sshll.u32 %s2052_s3, 4  ;;  %s2009_s26 = int_to_ptr.vmem [resolvable:$true] %s2008_s26 }
  0x3e   :  { %701 = vmatmul.mubr.f32.gmra.mxu1 %v2202_v55  ;;  %2580 = vst [vmem:[#allocation20_spill] sm:$0xff] %v2372_v35  ;;  %v717_v0 = vsub.s32 0, %v716_v59  ;;  %v737_v8 = vsub.s32 1, %v716_v59  ;;  %v757_v11 = vsub.s32 2, %v716_v59  ;;  %v741_v17 = vsub.s32 5, %v716_v59  ;;  %s2029_s27 = scalar_lea.vmem %s2009_s26, 256  ;;  %p2034_p1 = scmp.lt.s32.totalorder %s2009_s26, %s2009_s26 }
  0x3f   :  { %v2322_v18 = vand.u32 4294901760, %v953_v13  ;;  %v721_v13 = vsub.s32 4, %v716_v59  ;;  %v761_v19 = vsub.s32 6, %v716_v59  ;;  %p2030_p0 = scmp.ne.s32.totalorder %s2009_s26, %s2029_s27  ;;  %p2035_p2 = scmp.lt.s32.totalorder %s2029_s27, %s2029_s27 }
  0x40   :  { %v2385_v54 = vrot.slane %v713_v3, %v717_v0  ;;  %v2389_v31 = vrot.slane %v713_v3, %v757_v11  ;;  %v2393_v59 = vrot.slane %v713_v3, %v741_v17  ;;  %v2399_v20 = vrot.slane %v2023_v33, %v737_v8 }
  0x41   :  { %2570 = vst [vmem:[#allocation10_spill] sm:$0xff] %v2322_v18  ;;  %955 = vmatpush1.xpose.msra.mxu1 %v2322_v18  ;;  %v2391_v30 = vrot.slane %v713_v3, %v721_v13  ;;  %v2403_v7 = vrot.slane %v2023_v33, %v721_v13  ;;  %p2036_p3 = por %p2035_p2, %p2034_p1 }
  0x42   :  { %961 = vmatprep.subr.mxu1 %v2353_v28 }
  0x43   :  { %p2037_p4 = pnand %p2036_p3, %p2030_p0 }
  0x45   :  { %967 = vmatpush1.xpose.msra.mxu1 %v2365_v32  ;;  %v2387_v32 = vrot.slane %v713_v3, %v737_v8 }
  0x46   :  { %973 = vmatprep.subr.mxu1 %v2372_v35 }
  0x49   :  { %979 = vmatpush1.xpose.msra.mxu1 %v2374_v36 }
  0x4a   :  { %1133 = vmatprep.subr.mxu1 %v2278_v2 }
  0xcf   :  { %v120_v37 = vpop.f32.mrf.mxu0 }
  0xd1   :  { %v122_v38 = vpop.f32.mrf.mxu0 }
  0xd2   :  { %v255_v39 = vpop.f32.mrf.mxu1 }
  0xd3   :  { %v131_v40 = vpop.f32.mrf.mxu0  ;;  %v256_v24 = vadd.f32 %v255_v39, %v120_v37  ;;  %v2395_v37 = vrot.slane %v713_v3, %v761_v19  ;;  %v2397_v39 = vrot.slane %v2023_v33, %v717_v0  ;;  %v2405_v3 = vrot.slane %v2023_v33, %v741_v17 }
  0xd4   :  { %v257_v41 = vpop.f32.mrf.mxu1  ;;  %v2407_v0 = vrot.slane %v2023_v33, %v761_v19 }
  0xd5   :  { %v133_v42 = vpop.f32.mrf.mxu0  ;;  %v258_v5 = vadd.f32 %v257_v41, %v122_v38  ;;  %v2401_v38 = vrot.slane %v2023_v33, %v757_v11 }
  0xd6   :  { %v262_v43 = vpop.f32.mrf.mxu1 }
  0xd7   :  { %v142_v44 = vpop.f32.mrf.mxu0  ;;  %v263_v41 = vadd.f32 %v262_v43, %v131_v40 }
  0xd8   :  { %v264_v45 = vpop.f32.mrf.mxu1 }
  0xd9   :  { %v144_v46 = vpop.f32.mrf.mxu0 }
  0xda   :  { %v269_v47 = vpop.f32.mrf.mxu1 }
  0xdb   :  { %v153_v48 = vpop.f32.mrf.mxu0 }
  0xdc   :  { %v271_v49 = vpop.f32.mrf.mxu1 }
  0xdd   :  { %v155_v50 = vpop.f32.mrf.mxu0 }
  0xde   :  { %v276_v51 = vpop.f32.mrf.mxu1 }
  0xdf   :  { %v361_v52 = vpop.f32.mrf.mxu0  ;;  %v277_v11 = vadd.f32 %v276_v51, %v153_v48 }
  0xe0   :  { %v278_v53 = vpop.f32.mrf.mxu1  ;;  %v362_v36 = vadd.f32 %v361_v52, %v256_v24  ;;  %v265_v52 = vadd.f32 %v264_v45, %v133_v42  ;;  %v270_v24 = vadd.f32 %v269_v47, %v142_v44 }
  0xe1   :  { %v363_v55 = vpop.f32.mrf.mxu0  ;;  %v279_v2 = vadd.f32 %v278_v53, %v155_v50 }
  0xe2   :  { %v465_v56 = vpop.f32.mrf.mxu1  ;;  %v364_v18 = vadd.f32 %v363_v55, %v258_v5  ;;  %v272_v5 = vadd.f32 %v271_v49, %v144_v46 }
  0xe3   :  { %v369_v57 = vpop.f32.mrf.mxu0  ;;  %v466_v25 = vadd.f32 %v465_v56, %v362_v36 }
  0xe4   :  { %v467_v58 = vpop.f32.mrf.mxu1  ;;  %v370_v36 = vadd.f32 %v369_v57, %v263_v41 }
  0xe5   :  { %v371_v60 = vpop.f32.mrf.mxu0  ;;  %v468_v27 = vadd.f32 %v467_v58, %v364_v18 }
  0xe6   :  { %v474_v61 = vpop.f32.mrf.mxu1  ;;  %v372_v55 = vadd.f32 %v371_v60, %v265_v52 }
  0xe7   :  { %v377_v62 = vpop.f32.mrf.mxu0  ;;  %v475_v44 = vadd.f32 %v474_v61, %v370_v36 }
  0xe8   :  { %v476_v63 = vpop.f32.mrf.mxu1  ;;  %v378_v56 = vadd.f32 %v377_v62, %v270_v24 }
  0xe9   :  { %v379_v1 = vpop.f32.mrf.mxu0  ;;  %v477_v47 = vadd.f32 %v476_v63, %v372_v55 }
  0xea   :  { %v483_v12 = vpop.f32.mrf.mxu1  ;;  %v380_v45 = vadd.f32 %v379_v1, %v272_v5 }
  0xeb   :  { %v385_v29 = vpop.f32.mrf.mxu0  ;;  %v484_v18 = vadd.f32 %v483_v12, %v378_v56 }
  0xec   :  { %v485_v34 = vpop.f32.mrf.mxu1 }
  0xed   :  { %v387_v35 = vpop.f32.mrf.mxu0  ;;  %v486_v60 = vadd.f32 %v485_v34, %v380_v45 }
  0xee   :  { %v492_v28 = vpop.f32.mrf.mxu1  ;;  %v388_v57 = vadd.f32 %v387_v35, %v279_v2 }
  0xef   :  { %v582_v16 = vpop.f32.mrf.mxu0 }
  0xf0   :  { %v494_v9 = vpop.f32.mrf.mxu1  ;;  %v583_v26 = vadd.f32 %v582_v16, %v466_v25  ;;  %v386_v25 = vadd.f32 %v385_v29, %v277_v11 }
  0xf1   :  { %v584_v21 = vpop.f32.mrf.mxu0  ;;  %v495_v61 = vadd.f32 %v494_v9, %v388_v57 }
  0xf2   :  { %v681_v8 = vpop.f32.mrf.mxu1  ;;  %v585_v40 = vadd.f32 %v584_v21, %v468_v27  ;;  %v493_v27 = vadd.f32 %v492_v28, %v386_v25 }
  0xf3   :  { %v589_v42 = vpop.f32.mrf.mxu0  ;;  %v682_v43 = vadd.f32 %v681_v8, %v583_v26 }
  0xf4   :  { %v683_v16 = vpop.f32.mrf.mxu1  ;;  %v590_v62 = vadd.f32 %v589_v42, %v475_v44 }
  0xf5   :  { %v725_v58 = vmul.f32 %v2385_v54, %v682_v43  ;;  %v745_v13 = vmul.f32 %v2387_v32, %v682_v43  ;;  %v591_v46 = vpop.f32.mrf.mxu0  ;;  %v684_v49 = vadd.f32 %v683_v16, %v585_v40  ;;  %v765_v48 = vmul.f32 %v2389_v31, %v682_v43 }
  0xf6   :  { %v688_v21 = vpop.f32.mrf.mxu1  ;;  %v592_v50 = vadd.f32 %v591_v46, %v477_v47 }
  0xf7   :  { %v729_v26 = vrot.slane %v725_v58, 5  ;;  %v726_v51 = vmul.f32 %v2391_v30, %v684_v49  ;;  %v596_v53 = vpop.f32.mrf.mxu0  ;;  %v746_v63 = vmul.f32 %v2393_v59, %v684_v49  ;;  %v766_v1 = vmul.f32 %v2395_v37, %v684_v49 }
  0xf8   :  { %v689_v12 = vadd.f32 %v688_v21, %v590_v62  ;;  %v690_v17 = vpop.f32.mrf.mxu1  ;;  %v749_v2 = vrot.slane %v745_v13, 6  ;;  %v769_v34 = vrot.slane %v765_v48, 7  ;;  %v597_v41 = vadd.f32 %v596_v53, %v484_v18 }
  0xf9   :  { %v733_v19 = vadd.f32 %v729_v26, %v682_v43  ;;  %v730_v35 = vrot.slane %v726_v51, 5  ;;  %v598_v29 = vpop.f32.mrf.mxu0  ;;  %v691_v33 = vadd.f32 %v690_v17, %v592_v50  ;;  %v750_v36 = vrot.slane %v746_v63, 6 }
  0xfa   :  { %v775_v28 = vmul.f32 %v2385_v54, %v689_v12  ;;  %v785_v52 = vmul.f32 %v2387_v32, %v689_v12  ;;  %v695_v24 = vpop.f32.mrf.mxu1  ;;  %v795_v55 = vmul.f32 %v2389_v31, %v689_v12  ;;  %v770_v56 = vrot.slane %v766_v1, 7 }
  0xfb   :  { %v753_v5 = vadd.f32 %v749_v2, %v733_v19  ;;  %v734_v9 = vadd.f32 %v730_v35, %v684_v49  ;;  %v776_v11 = vmul.f32 %v2391_v30, %v691_v33  ;;  %v786_v40 = vmul.f32 %v2393_v59, %v691_v33  ;;  %v603_v42 = vpop.f32.mrf.mxu0 }
  0xfc   :  { %v779_v8 = vrot.slane %v775_v28, 5  ;;  %v697_v43 = vpop.f32.mrf.mxu1  ;;  %v599_v54 = vadd.f32 %v598_v29, %v486_v60  ;;  %v796_v32 = vmul.f32 %v2395_v37, %v691_v33  ;;  %v789_v18 = vrot.slane %v785_v52, 6 }
  0xfd   :  { %v2420_v44 = vadd.f32 %v769_v34, %v753_v5  ;;  %v754_v45 = vadd.f32 %v750_v36, %v734_v9  ;;  %v799_v16 = vrot.slane %v795_v55, 7  ;;  %v780_v25 = vrot.slane %v776_v11, 5  ;;  %v605_v37 = vpop.f32.mrf.mxu0 }
  0xfe   :  { %v783_v47 = vadd.f32 %v779_v8, %v689_v12  ;;  %v702_v58 = vpop.f32.mrf.mxu1  ;;  %v790_v30 = vrot.slane %v786_v40, 6  ;;  %v604_v46 = vadd.f32 %v603_v42, %v493_v27  ;;  %v696_v62 = vadd.f32 %v695_v24, %v597_v41 }
  0xff   :  { %v807_v31 = vrot.slane %v2420_v44, 3  ;;  %v774_v13 = vadd.f32 %v770_v56, %v754_v45  ;;  %v811_v59 = vrot.slane %v2420_v44, 6  ;;  %v784_v57 = vadd.f32 %v780_v25, %v691_v33 }
 0x100   :  { %v793_v49 = vadd.f32 %v789_v18, %v783_v47  ;;  %v800_v48 = vrot.slane %v796_v32, 7  ;;  %v698_v21 = vadd.f32 %v697_v43, %v599_v54  ;;  %v703_v26 = vadd.f32 %v702_v58, %v604_v46  ;;  %v704_v33 = vpop.f32.mrf.mxu1 }
 0x101   :  { %v808_v60 = vrot.slane %v774_v13, 3  ;;  %v794_v51 = vadd.f32 %v790_v30, %v784_v57  ;;  %v1371_v53 = vmul.f32 %v2397_v39, %v696_v62  ;;  %v1391_v63 = vmul.f32 %v2399_v20, %v696_v62 }
 0x102   :  { %v803_v50 = vadd.f32 %v799_v16, %v793_v49  ;;  %v812_v1 = vrot.slane %v774_v13, 6  ;;  %v1411_v27 = vmul.f32 %v2401_v38, %v696_v62  ;;  %v1372_v12 = vmul.f32 %v2403_v7, %v698_v21 }
 0x103   :  { %v1392_v17 = vmul.f32 %v2405_v3, %v698_v21  ;;  %v804_v19 = vadd.f32 %v800_v48, %v794_v51  ;;  %v1375_v2 = vrot.slane %v1371_v53, 5  ;;  %v606_v35 = vadd.f32 %v605_v37, %v495_v61 }
 0x104   :  { %v1412_v29 = vmul.f32 %v2407_v0, %v698_v21  ;;  %v817_v34 = vrot.slane %v803_v50, 1  ;;  %v1395_v41 = vrot.slane %v1391_v63, 6  ;;  %v1415_v28 = vrot.slane %v1411_v27, 7 }
 0x105   :  { %v1376_v52 = vrot.slane %v1372_v12, 5  ;;  %v818_v24 = vrot.slane %v804_v19, 1  ;;  %v1379_v5 = vadd.f32 %v1375_v2, %v696_v62  ;;  %v1421_v9 = vmul.f32 %v2397_v39, %v703_v26 }
 0x106   :  { %v1431_v36 = vmul.f32 %v2399_v20, %v703_v26  ;;  %v1396_v56 = vrot.slane %v1392_v17, 6  ;;  %v705_v8 = vadd.f32 %v704_v33, %v606_v35  ;;  %v823_v11 = vsel %vm821_vm1, %v808_v60, %v812_v1 }
 0x107   :  { %v1380_v55 = vadd.f32 %v1376_v52, %v698_v21  ;;  %v1399_v40 = vadd.f32 %v1395_v41, %v1379_v5  ;;  %v1425_v61 = vrot.slane %v1421_v9, 5  ;;  %v1441_v42 = vmul.f32 %v2401_v38, %v703_v26  ;;  %v2582_v41 = vld [vmem:[#allocation5_spill] sm:$0xff]  ;;  %v2584_v52 = vld [vmem:[#allocation14_spill] sm:$0xff]  ;;  %v2585_v5 = vld [vmem:[#allocation15_spill] sm:$0xff] }
 0x108   :  { %v826_v43 = vsel %vm824_vm2, %v823_v11, %v818_v24  ;;  %v1416_v45 = vrot.slane %v1412_v29, 7  ;;  %v1422_v54 = vmul.f32 %v2403_v7, %v705_v8  ;;  %v1432_v32 = vmul.f32 %v2405_v3, %v705_v8  ;;  %v2586_v9 = vld [vmem:[#allocation7_spill] sm:$0xff] }
 0x109   :  { %v1400_v44 = vadd.f32 %v1396_v56, %v1380_v55  ;;  %v1419_v39 = vadd.f32 %v1415_v28, %v1399_v40  ;;  %v1429_v47 = vadd.f32 %v1425_v61, %v703_v26  ;;  %v1435_v20 = vrot.slane %v1431_v36, 6  ;;  %v2583_v28 = vld [vmem:[#allocation12_spill] sm:$0xff]  ;;  %v2588_v56 = vld [vmem:[#allocation11_spill] sm:$0xff]  ;;  %v2590_v40 = vld [vmem:[#allocation13_spill] sm:$0xff] }
 0x10a   :  { %v2438_v18 = vand.u32 4294901760, %v826_v43  ;;  %v1426_v16 = vrot.slane %v1422_v54, 5  ;;  %v1442_v25 = vmul.f32 %v2407_v0, %v705_v8  ;;  %v1445_v30 = vrot.slane %v1441_v42, 7  ;;  %v2587_v55 = vld [vmem:[#allocation8_spill] sm:$0xff]  ;;  %v2591_v61 = vld [vmem:[#allocation10_spill] sm:$0xff] }
 0x10b   :  { %v1420_v58 = vadd.f32 %v1416_v45, %v1400_v44  ;;  %v1439_v13 = vadd.f32 %v1435_v20, %v1429_v47  ;;  %v822_v38 = vsel %vm821_vm1, %v807_v31, %v811_v59  ;;  %v1436_v49 = vrot.slane %v1432_v32, 6  ;;  %v2593_v44 = vld [vmem:[#allocation16_spill] sm:$0xff]  ;;  %v2594_v54 = vld [vmem:[#allocation18_spill] sm:$0xff]  ;;  %v2595_v32 = vld [vmem:[#allocation19_spill] sm:$0xff] }
 0x10c   :  { %1013 = vmatprep.mubr.f32.mxu1 %v2438_v18  ;;  %v1430_v46 = vadd.f32 %v1426_v16, %v705_v8  ;;  %v825_v7 = vsel %vm824_vm2, %v822_v38, %v817_v34  ;;  %v1453_v3 = vrot.slane %v1419_v39, 3  ;;  %v903_v60 = vsub.f32 %v826_v43, %v2438_v18  ;;  %v2589_v8 = vld [vmem:[#allocation9_spill] sm:$0xff]  ;;  %v2596_v47 = vld [vmem:[#allocation20_spill] sm:$0xff] }
 0x10d   :  { %v1449_v57 = vadd.f32 %v1445_v30, %v1439_v13  ;;  %v2444_v62 = vand.u32 4294901760, %v825_v7  ;;  %v1457_v48 = vrot.slane %v1419_v39, 6  ;;  %v1446_v0 = vrot.slane %v1442_v25, 7  ;;  %v2598_v13 = vld [vmem:[#allocation6_spill] sm:$0xff] }
 0x10e   :  { %v1440_v37 = vadd.f32 %v1436_v49, %v1430_v46  ;;  %v829_v21 = vcombine.low %v825_v7, %v826_v43  ;;  %v1454_v26 = vrot.slane %v1420_v58, 3  ;;  %v1458_v50 = vrot.slane %v1420_v58, 6  ;;  %v2592_v43 = vld [vmem:[#allocation17_spill] sm:$0xff] }
 0x10f   :  { %v909_v51 = vsub.f32 %v825_v7, %v2444_v62  ;;  %1015 = vmatmul.mubr.f32.vlgmr.msra.gmra.mxu1 %v2444_v62  ;;  %v904_v31 = vand.u32 4294901760, %v903_v60  ;;  %v1463_v59 = vrot.slane %v1449_v57, 1  ;;  %v1467_v2 = vsel %vm821_vm1, %v1453_v3, %v1457_v48 }
 0x110   :  { %v1450_v53 = vadd.f32 %v1446_v0, %v1440_v37  ;;  %1135 = vmatpush1.xpose.msra.mxu1 %v2283_v4  ;;  %831 = vst [vmem:[#allocation2] sm:$0x77] %v829_v21  ;;  %v1468_v19 = vsel %vm821_vm1, %v1454_v26, %v1458_v50 }
 0x111   :  { %1137 = vmatprep.subr.mxu1 %v2302_v10  ;;  %1179 = vmatprep.mubr.f32.mxu1 %v904_v31  ;;  %v905_v63 = vsub.f32 %v903_v60, %v904_v31  ;;  %v910_v1 = vand.u32 4294901760, %v909_v51  ;;  %v1469_v29 = vsel %vm824_vm2, %v1467_v2, %v1463_v59 }
 0x112   :  { %v1464_v27 = vrot.slane %v1450_v53, 1  ;;  %v1553_v42 = vand.u32 4294901760, %v1469_v29 }
 0x113   :  { %v906_v12 = vand.u32 4294901760, %v905_v63  ;;  %v911_v17 = vsub.f32 %v909_v51, %v910_v1 }
 0x114   :  { %1139 = vmatpush1.xpose.msra.mxu1 %v2314_v15  ;;  %v1470_v35 = vsel %vm824_vm2, %v1468_v19, %v1464_v27  ;;  %v1554_v39 = vsub.f32 %v1469_v29, %v1553_v42 }
 0x115   :  { %907 = vmatprep.mubr.f32.mxu0 %v906_v12  ;;  %1141 = vmatprep.subr.mxu1 %v2335_v22  ;;  %v912_v33 = vand.u32 4294901760, %v911_v17  ;;  %v1473_v34 = vcombine.low %v1469_v29, %v1470_v35  ;;  %v2466_v24 = vand.u32 4294901760, %v1470_v35 }
 0x116   :  { %v1555_v16 = vand.u32 4294901760, %v1554_v39 }
 0x117   :  { %913 = vmatmul.mubr.f32.vlgmr.msra.gmra.mxu0 %v912_v33  ;;  %1476 = vst [vmem:[#allocation2 + $0x8] sm:$0x77] %v1473_v34  ;;  %v1548_v36 = vsub.f32 %v1470_v35, %v2466_v24 }
 0x118   :  { %1051 = vmatpush1.xpose.msra.mxu0 %v2290_v6  ;;  %1143 = vmatpush1.xpose.msra.mxu1 %v2337_v23  ;;  %v1556_v25 = vsub.f32 %v1554_v39, %v1555_v16 }
 0x119   :  { %1098 = vmatprep.mubr.f32.mxu0 %v903_v60  ;;  %1054 = vmatprep.subr.mxu0 %v2312_v14  ;;  %v1549_v11 = vand.u32 4294901760, %v1548_v36 }
 0x11a   :  { %1305 = vmatprep.subr.mxu1 %v2582_v41  ;;  %v1557_v58 = vand.u32 4294901760, %v1556_v25 }
 0x11b   :  { %1183 = vmatmul.mubr.f32.vlgmr.msra.gmra.mxu1 %v910_v1  ;;  %v1550_v45 = vsub.f32 %v1548_v36, %v1549_v11 }
 0x11c   :  { %1057 = vmatpush1.xpose.msra.mxu0 %v2583_v28  ;;  %1307 = vmatpush1.xpose.msra.mxu1 %v2283_v4 }
 0x11d   :  { %1349 = vmatprep.mubr.f32.mxu1 %v2438_v18  ;;  %1060 = vmatprep.subr.mxu0 %v2584_v52  ;;  %v1551_v20 = vand.u32 4294901760, %v1550_v45 }
 0x11e   :  { %1309 = vmatprep.subr.mxu1 %v2302_v10 }
 0x120   :  { %1063 = vmatpush1.xpose.msra.mxu0 %v2585_v5  ;;  %1311 = vmatpush1.xpose.msra.mxu1 %v2314_v15 }
 0x121   :  { %1217 = vmatprep.subr.mxu0 %v2586_v9  ;;  %1313 = vmatprep.subr.mxu1 %v2335_v22 }
 0x123   :  { %1101 = vmatmul.mubr.f32.vlgmr.msra.gmra.mxu0 %v909_v51 }
 0x124   :  { %1221 = vmatpush1.xpose.msra.mxu0 %v2587_v55  ;;  %1271 = vmatprep.mubr.f32.mxu0 %v2438_v18  ;;  %v2597_v18 = vld [vmem:[#allocation21_spill] sm:$0xff] }
 0x125   :  { %1315 = vmatpush1.xpose.msra.mxu1 %v2337_v23  ;;  %1225 = vmatprep.subr.mxu0 %v2588_v56 }
 0x126   :  { %1594 = vmatprep.subr.mxu1 %v2589_v8 }
 0x128   :  { %1351 = vmatmul.mubr.f32.vlgmr.msra.gmra.mxu1 %v2444_v62  ;;  %1229 = vmatpush1.xpose.msra.mxu0 %v2590_v40 }
 0x129   :  { %1600 = vmatpush1.xpose.msra.mxu1 %v2591_v61  ;;  %1658 = vmatprep.mubr.f32.mxu1 %v2466_v24 }
 0x12a   :  { %1233 = vmatprep.subr.mxu0 %v2592_v43  ;;  %1606 = vmatprep.subr.mxu1 %v2593_v44 }
 0x12c   :  { %1237 = vmatpush1.xpose.msra.mxu0 %v2594_v54 }
 0x12d   :  { %1612 = vmatpush1.xpose.msra.mxu1 %v2595_v32  ;;  %1504 = vmatprep.subr.mxu0 %v2582_v41 }
 0x12e   :  { %1618 = vmatprep.subr.mxu1 %v2596_v47 }
 0x12f   :  { %1273 = vmatmul.mubr.f32.vlgmr.msra.gmra.mxu0 %v2444_v62 }
 0x130   :  { %1506 = vmatpush1.xpose.msra.mxu0 %v2283_v4  ;;  %1552 = vmatprep.mubr.f32.mxu0 %v1551_v20 }
 0x131   :  { %1624 = vmatpush1.xpose.msra.mxu1 %v2597_v18  ;;  %1508 = vmatprep.subr.mxu0 %v2302_v10 }
 0x132   :  { %1778 = vmatprep.subr.mxu1 %v2582_v41 }
 0x134   :  { %1660 = vmatmul.mubr.f32.vlgmr.msra.gmra.mxu1 %v1553_v42  ;;  %1510 = vmatpush1.xpose.msra.mxu0 %v2314_v15 }
 0x135   :  { %1780 = vmatpush1.xpose.msra.mxu1 %v2283_v4  ;;  %1824 = vmatprep.mubr.f32.mxu1 %v1549_v11 }
 0x136   :  { %1512 = vmatprep.subr.mxu0 %v2335_v22  ;;  %1782 = vmatprep.subr.mxu1 %v2302_v10 }
 0x138   :  { %1514 = vmatpush1.xpose.msra.mxu0 %v2337_v23 }
 0x139   :  { %1784 = vmatpush1.xpose.msra.mxu1 %v2314_v15  ;;  %1693 = vmatprep.subr.mxu0 %v2598_v13 }
 0x13a   :  { %1786 = vmatprep.subr.mxu1 %v2335_v22 }
 0x13b   :  { %1558 = vmatmul.mubr.f32.vlgmr.msra.gmra.mxu0 %v1557_v58 }
 0x13c   :  { %1696 = vmatpush1.xpose.msra.mxu0 %v2290_v6  ;;  %1743 = vmatprep.mubr.f32.mxu0 %v1548_v36 }
 0x13d   :  { %1788 = vmatpush1.xpose.msra.mxu1 %v2337_v23  ;;  %1699 = vmatprep.subr.mxu0 %v2312_v14 }
 0x13e   :  { %1950 = vmatprep.subr.mxu1 %v2582_v41 }
 0x140   :  { %1828 = vmatmul.mubr.f32.vlgmr.msra.gmra.mxu1 %v1555_v16  ;;  %1702 = vmatpush1.xpose.msra.mxu0 %v2583_v28 }
 0x141   :  { %1952 = vmatpush1.xpose.msra.mxu1 %v2283_v4  ;;  %1994 = vmatprep.mubr.f32.mxu1 %v2466_v24 }
 0x142   :  { %1705 = vmatprep.subr.mxu0 %v2584_v52  ;;  %1954 = vmatprep.subr.mxu1 %v2302_v10 }
 0x144   :  { %1708 = vmatpush1.xpose.msra.mxu0 %v2585_v5 }
 0x145   :  { %1956 = vmatpush1.xpose.msra.mxu1 %v2314_v15  ;;  %1862 = vmatprep.subr.mxu0 %v2586_v9 }
 0x146   :  { %1958 = vmatprep.subr.mxu1 %v2335_v22 }
 0x147   :  { %1746 = vmatmul.mubr.f32.vlgmr.msra.gmra.mxu0 %v1554_v39 }
 0x148   :  { %1866 = vmatpush1.xpose.msra.mxu0 %v2587_v55  ;;  %1916 = vmatprep.mubr.f32.mxu0 %v2466_v24 }
 0x149   :  { %1960 = vmatpush1.xpose.msra.mxu1 %v2337_v23  ;;  %1870 = vmatprep.subr.mxu0 %v2588_v56 }
 0x14c   :  { %1996 = vmatmul.mubr.f32.vlgmr.msra.gmra.mxu1 %v1553_v42  ;;  %1874 = vmatpush1.xpose.msra.mxu0 %v2590_v40 }
 0x14d   :  { %1878 = vmatprep.subr.mxu0 %v2592_v43 }
 0x150   :  { %1882 = vmatpush1.xpose.msra.mxu0 %v2594_v54 }
 0x153   :  { %1918 = vmatmul.mubr.f32.vlgmr.msra.gmra.mxu0 %v1553_v42 }
 0x154   :  { %2040 = shalt.err (!%p2037_p4)
}
 0x155   :  { %s2053_s28 = smov 128   ;;  %s2054_s29 = smov 8   ;;  %vm1356_vm3 = vcmask 149504  }
 0x156   :  { %2014 = dma.vmem_to_hbm [thread:$0]  %s2009_s26, 256, %s2536_s4, [#allocation3], %s2053_s28, %s2053_s28, %s2054_s29  }
 0x1cf   :  { %v1016_v4 = vpop.f32.mrf.mxu1 }
 0x1d1   :  { %v1018_v6 = vpop.f32.mrf.mxu1 }
 0x1d7   :  { %v914_v10 = vpop.f32.mrf.mxu0 }
 0x1d8   :  { %v1017_v38 = vadd.f32 %v1016_v4, %v914_v10 }
 0x1d9   :  { %v916_v14 = vpop.f32.mrf.mxu0 }
 0x1db   :  { %v1184_v15 = vpop.f32.mrf.mxu1 }
 0x1dd   :  { %v1186_v22 = vpop.f32.mrf.mxu1 }
 0x1e3   :  { %v1102_v23 = vpop.f32.mrf.mxu0 }
 0x1e4   :  { %v1103_v49 = vadd.f32 %v1102_v23, %v1017_v38 }
 0x1e5   :  { %v1104_v30 = vpop.f32.mrf.mxu0 }
 0x1e6   :  { %v1185_v3 = vadd.f32 %v1184_v15, %v1103_v49 }
 0x1e8   :  { %v1352_v46 = vpop.f32.mrf.mxu1 }
 0x1ea   :  { %v1354_v7 = vpop.f32.mrf.mxu1 }
 0x1ef   :  { %v1274_v57 = vpop.f32.mrf.mxu0 }
 0x1f0   :  { %v1275_v62 = vadd.f32 %v1274_v57, %v1185_v3 }
 0x1f1   :  { %v1276_v60 = vpop.f32.mrf.mxu0 }
 0x1f2   :  { %v1353_v48 = vadd.f32 %v1352_v46, %v1275_v62 }
 0x1f4   :  { %1357 = vst.msk [vmem:[%s2537_s5] sm:$0x7] %vm1356_vm3, %v1353_v48  ;;  %v1661_v37 = vpop.f32.mrf.mxu1 }
 0x1f6   :  { %v1663_v0 = vpop.f32.mrf.mxu1 }
 0x1fb   :  { %v1559_v21 = vpop.f32.mrf.mxu0 }
 0x1fc   :  { %v1662_v53 = vadd.f32 %v1661_v37, %v1559_v21 }
 0x1fd   :  { %v1561_v26 = vpop.f32.mrf.mxu0 }
 0x200   :  { %v1829_v50 = vpop.f32.mrf.mxu1 }
 0x202   :  { %v1831_v51 = vpop.f32.mrf.mxu1 }
 0x207   :  { %v1747_v31 = vpop.f32.mrf.mxu0 }
 0x208   :  { %v1748_v1 = vadd.f32 %v1747_v31, %v1662_v53 }
 0x209   :  { %v1749_v59 = vpop.f32.mrf.mxu0 }
 0x20a   :  { %v1830_v12 = vadd.f32 %v1829_v50, %v1748_v1 }
 0x20c   :  { %v1997_v63 = vpop.f32.mrf.mxu1 }
 0x20e   :  { %v1999_v27 = vpop.f32.mrf.mxu1 }
 0x213   :  { %v1919_v17 = vpop.f32.mrf.mxu0 }
 0x214   :  { %v1920_v19 = vadd.f32 %v1919_v17, %v1830_v12 }
 0x215   :  { %v1921_v2 = vpop.f32.mrf.mxu0 }
 0x216   :  { %v1998_v35 = vadd.f32 %v1997_v63, %v1920_v19 }
 0x218   :  { %2024 = vst.msk [vmem:[%s2537_s5 + $0x4] sm:$0x7] %vm1356_vm3, %v1998_v35 }
 0x219   :  { %2049 = dma.done.wait [#allocation3], 256  }
 0x21a   :  { %2050 = vsyncadd [#allocation3], 4294967040 }
 0x21b   :  { %2022 = vsyncpa [#allocation3], 1 }

</bundles_post_ra>
